<compile_context>
chip_gen: v5e
topology: v5e:2x2
jax: 0.10.0
libtpu: 0.0.40
codegen_flags: <defaults>
</compile_context>

<pallas_src>
import jax
import jax.numpy as jnp
from jax.experimental import pallas as pl
from jax.experimental.pallas import tpu as pltpu


def _round_up(x, m):
    return (x + m - 1) // m * m


def _device_info():
    """(device_kind, has_two_tensorcores, physical_vmem_bytes) with safe fallbacks."""
    kind = ""
    try:
        kind = jax.devices()[0].device_kind.lower()
    except Exception:
        pass
    two_tc = "v7" in kind
    vmem_cap = None
    try:
        vmem_cap = int(pltpu.get_tpu_info().vmem_capacity_bytes)
    except Exception:
        vmem_cap = None
    if not vmem_cap or vmem_cap <= 0:
        vmem_cap = (64 << 20) if two_tc else (128 << 20)
    return kind, two_tc, vmem_cap


def _col_chunk_bounds(image_size, col_chunk):
    """Static (start, end) column chunks; tiny tail merged into previous chunk."""
    col_chunk = image_size if not col_chunk else min(col_chunk, image_size)
    starts = list(range(0, image_size, col_chunk))
    bounds = []
    for i, c0 in enumerate(starts):
        c1 = image_size if i == len(starts) - 1 else starts[i + 1]
        bounds.append((c0, c1))
    if len(bounds) >= 2 and (bounds[-1][1] - bounds[-1][0]) < 128:
        c0, _ = bounds[-2]
        bounds = bounds[:-2] + [(c0, image_size)]
    return bounds


def _make_generator_kernel(image_size, col_chunk):
    chunk_bounds = _col_chunk_bounds(image_size, col_chunk)

    def kernel(x_ref, w1_ref, b1_ref, w2_ref, b2_ref, w3_ref, b3_ref, o_ref):
        # Layer 1: bf16 MXU matmul, f32 accumulate + bias + ReLU.
        h = jnp.dot(x_ref[...], w1_ref[...], preferred_element_type=jnp.float32)
        h = jnp.maximum(h + b1_ref[...], 0.0)
        # Layer 2.
        h = jnp.dot(h.astype(jnp.bfloat16), w2_ref[...],
                    preferred_element_type=jnp.float32)
        h = jnp.maximum(h + b2_ref[...], 0.0).astype(jnp.bfloat16)
        # Layer 3 + tanh, statically chunked over output columns so the EUP
        # tanh of chunk c overlaps the MXU matmul of chunk c+1.
        for c0, c1 in chunk_bounds:
            y = jnp.dot(h, w3_ref[:, c0:c1], preferred_element_type=jnp.float32)
            o_ref[:, c0:c1] = jnp.tanh(y + b3_ref[:, c0:c1]).astype(o_ref.dtype)

    return kernel


def prepare_generator_params(params, *, compute_dtype=jnp.bfloat16):
    """Pad feature dims to multiples of 128 and cast weights to the MXU dtype.

    Call ONCE (at init / checkpoint load) and reuse the result; doing it per
    forward call re-streams every weight through HBM before the kernel runs.
    Zero padding is mathematically exact (bias pad is 0, ReLU(0)=0).  The
    output width (image_size) is deliberately left unpadded so the kernel
    stores the exact final width (no post-kernel slice copy).
    """
    latent, hidden = params["w1"].shape
    image_size = params["w3"].shape[1]
    latent_p = _round_up(latent, 128)
    hidden_p = _round_up(hidden, 128)

    def pad_w(w, rows, cols):
        w = w.astype(compute_dtype)
        return jnp.pad(w, ((0, rows - w.shape[0]), (0, cols - w.shape[1])))

    def pad_b(b, cols):
        b = b.astype(jnp.float32)
        return jnp.pad(b, (0, cols - b.shape[0])).reshape(1, cols)

    return {
        "w1": pad_w(params["w1"], latent_p, hidden_p),
        "b1": pad_b(params["b1"], hidden_p),
        "w2": pad_w(params["w2"], hidden_p, hidden_p),
        "b2": pad_b(params["b2"], hidden_p),
        "w3": pad_w(params["w3"], hidden_p, image_size),   # columns NOT padded
        "b3": pad_b(params["b3"], image_size),
    }


def generator_forward(x, prepared, *, batch_tile=None, out_dtype=None,
                      col_chunk=256, vmem_budget_bytes=None):
    """x: (B, latent) float.  `prepared` = prepare_generator_params(raw_params)."""
    B, latent = x.shape
    w1, b1 = prepared["w1"], prepared["b1"]
    w2, b2 = prepared["w2"], prepared["b2"]
    w3, b3 = prepared["w3"], prepared["b3"]
    latent_p, hidden_p = w1.shape
    image_size = w3.shape[1]
    out_dtype = jnp.dtype(x.dtype if out_dtype is None else out_dtype)
    out_itemsize = out_dtype.itemsize

    _, two_tc, vmem_cap = _device_info()
    if vmem_budget_bytes is None:
        # ~half of physical VMEM: ~56 MiB on 128-MiB v5e/v6e, 32 MiB on 64-MiB v7x.
        vmem_budget_bytes = max(16 << 20, min(vmem_cap // 2, 56 << 20))
    max_tb = 2048 if vmem_cap >= (96 << 20) else 1024

    eff_chunk = image_size if not col_chunk else min(col_chunk, image_size)

    # ---- VMEM accounting: single-buffered weights + per-row activation cost.
    weight_bytes = (w1.size * w1.dtype.itemsize + w2.size * w2.dtype.itemsize
                    + w3.size * w3.dtype.itemsize
                    + (b1.size + b2.size + b3.size) * 4)
    per_row_bytes = (
        2 * latent_p * 2                  # double-buffered bf16 x tile
        + 2 * image_size * out_itemsize   # double-buffered output tile
        + 2 * hidden_p * 4                # live f32 hidden activations (L1/L2)
        + 2 * hidden_p * 2                # bf16 copies of activations (MXU in)
        + 2 * eff_chunk * 4               # f32 pre-tanh + tanh chunk
    )

    if weight_bytes + 128 * per_row_bytes + (2 << 20) > vmem_budget_bytes:
        # TODO(synk): add a column-tiled kernel (second grid axis over
        # hidden/image columns) for weights that exceed VMEM (large hidden /
        # image_size, especially on v7x's 64 MiB); falling back to plain XLA.
        h = jnp.maximum(x.astype(jnp.float32) @ w1.astype(jnp.float32)[:latent]
                        + b1[0], 0.0)
        h = jnp.maximum(h @ w2.astype(jnp.float32) + b2[0], 0.0)
        return jnp.tanh(h @ w3.astype(jnp.float32) + b3[0]).astype(out_dtype)

    B128 = _round_up(B, 128)
    if batch_tile is None:
        avail = max(vmem_budget_bytes - weight_bytes, 128 * per_row_bytes)
        tb = max(128, min(max_tb, (avail // per_row_bytes) // 128 * 128))
        tb = min(tb, B128)
        # Megacore split: only when the chip really has 2 TensorCores AND each
        # half-step still amortizes the ~0.35 us/step grid overhead.
        half = max(128, (B128 // 2) // 128 * 128)
        if two_tc and B128 >= 256 and half * image_size * out_itemsize >= (2 << 20):
            tb = min(tb, half)
    else:
        tb = batch_tile

    Bp = _round_up(B, tb)
    x_p = x.astype(jnp.bfloat16)
    if (Bp != B) or (latent_p != latent):
        x_p = jnp.pad(x_p, ((0, Bp - B), (0, latent_p - latent)))

    grid_steps = Bp // tb
    if two_tc and grid_steps >= 2:
        dim_sem = (pltpu.CORE_PARALLEL,)   # actually shard batch across the 2 TCs
    else:
        dim_sem = ("arbitrary",)

    def rep(shape):
        # Grid-invariant operand: constant index_map + single buffer (no 2x VMEM).
        return pl.BlockSpec(shape, lambda i: (0, 0), pipeline_mode=pl.Buffered(1))

    flops = 2 * Bp * (latent_p * hidden_p + hidden_p * hidden_p
                      + hidden_p * image_size)
    bytes_accessed = (x_p.size * 2 + weight_bytes
                      + Bp * image_size * out_itemsize)
    cost = pl.CostEstimate(flops=flops, transcendentals=Bp * image_size,
                           bytes_accessed=bytes_accessed)

    vmem_limit = int(min(vmem_cap - (4 << 20),
                         max(16 << 20,
                             weight_bytes + tb * per_row_bytes + (2 << 20))))

    out = pl.pallas_call(
        _make_generator_kernel(image_size, col_chunk),
        out_shape=jax.ShapeDtypeStruct((Bp, image_size), out_dtype),
        grid_spec=pltpu.PrefetchScalarGridSpec(
            num_scalar_prefetch=0,
            grid=(grid_steps,),
            in_specs=[
                pl.BlockSpec((tb, latent_p), lambda i: (i, 0)),   # x tile
                rep((latent_p, hidden_p)),                        # w1
                rep((1, hidden_p)),                               # b1
                rep((hidden_p, hidden_p)),                        # w2
                rep((1, hidden_p)),                               # b2
                rep((hidden_p, image_size)),                      # w3
                rep((1, image_size)),                             # b3
            ],
            out_specs=pl.BlockSpec((tb, image_size), lambda i: (i, 0)),
        ),
        compiler_params=pltpu.CompilerParams(
            dimension_semantics=dim_sem,
            vmem_limit_bytes=vmem_limit),
        cost_estimate=cost,
    )(x_p, w1, b1, w2, b2, w3, b3)

    return out if Bp == B else out[:B]


def init_generator_params(key, image_size, latent_size, hidden_size,
                          dtype=jnp.float32):
    """Deterministic init matching nn.Linear's default U(-1/sqrt(fan_in), +)."""
    def linear(k, fan_in, fan_out):
        kw, kb = jax.random.split(k)
        bound = 1.0 / jnp.sqrt(fan_in)
        # Stored as (in, out): equals PyTorch weight.T, so y = x @ W + b.
        w = jax.random.uniform(kw, (fan_in, fan_out), dtype, -bound, bound)
        b = jax.random.uniform(kb, (fan_out,), dtype, -bound, bound)
        return w, b

    k1, k2, k3 = jax.random.split(key, 3)
    w1, b1 = linear(k1, latent_size, hidden_size)
    w2, b2 = linear(k2, hidden_size, hidden_size)
    w3, b3 = linear(k3, hidden_size, image_size)
    return {"w1": w1, "b1": b1, "w2": w2, "b2": b2, "w3": w3, "b3": b3}


def generator_reference(x, params):
    """Pure-JAX f32 reference (same math as the PyTorch forward)."""
    h = jnp.maximum(x @ params["w1"] + params["b1"], 0.0)
    h = jnp.maximum(h @ params["w2"] + params["b2"], 0.0)
    return jnp.tanh(h @ params["w3"] + params["b3"])


if __name__ == "__main__":
    # Small MNIST-GAN-like shapes consistent with the module.
    batch = 256
    latent_size = 64
    hidden_size = 256
    image_size = 784   # 28*28; output width stays unpadded (lane-masked tail)

    key = jax.random.PRNGKey(0)
    kx, kp = jax.random.split(key)
    x = jax.random.normal(kx, (batch, latent_size), dtype=jnp.float32)
    params = init_generator_params(kp, image_size, latent_size, hidden_size)

    # Pad/cast weights ONCE (not per forward call).
    prepared = prepare_generator_params(params)

    out = generator_forward(x, prepared)
    out = jax.block_until_ready(out)

    ref = generator_reference(x, params)
    assert out.shape == (batch, image_size)
    # bf16 MXU inputs with f32 accumulation: loosened tolerance vs f32 reference.
    max_err = float(jnp.max(jnp.abs(out - ref)))
    assert max_err < 5e-2, f"mismatch vs reference, max_err={max_err}"

    print("KERNEL_OK")
</pallas_src>

<mosaic_0001>
module attributes {stable_mosaic.version = 11 : i64} {
  func.func @kernel(%arg0: i32, %arg1: memref<256x128xbf16, #tpu.memory_space<vmem>>, %arg2: memref<128x256xbf16, #tpu.memory_space<vmem>>, %arg3: memref<1x256xf32, #tpu.memory_space<vmem>>, %arg4: memref<256x256xbf16, #tpu.memory_space<vmem>>, %arg5: memref<1x256xf32, #tpu.memory_space<vmem>>, %arg6: memref<256x784xbf16, #tpu.memory_space<vmem>>, %arg7: memref<1x784xf32, #tpu.memory_space<vmem>>, %arg8: memref<256x784xf32, #tpu.memory_space<vmem>>) attributes {dimension_semantics = [#tpu.dimension_semantics<arbitrary>], iteration_bounds = array<i64: 1>, scalar_prefetch = 0 : i64, scratch_operands = 0 : i64, tpu.core_type = #tpu.core_type<tc>, window_params = [{transform_indices = @transform_0, window_bounds = array<i64: 256, 128>}, {pipeline_mode = #tpu.pipeline_mode<synchronous>, transform_indices = @transform_1, window_bounds = array<i64: 128, 256>}, {pipeline_mode = #tpu.pipeline_mode<synchronous>, transform_indices = @transform_2, window_bounds = array<i64: 1, 256>}, {pipeline_mode = #tpu.pipeline_mode<synchronous>, transform_indices = @transform_3, window_bounds = array<i64: 256, 256>}, {pipeline_mode = #tpu.pipeline_mode<synchronous>, transform_indices = @transform_4, window_bounds = array<i64: 1, 256>}, {pipeline_mode = #tpu.pipeline_mode<synchronous>, transform_indices = @transform_5, window_bounds = array<i64: 256, 784>}, {pipeline_mode = #tpu.pipeline_mode<synchronous>, transform_indices = @transform_6, window_bounds = array<i64: 1, 784>}, {transform_indices = @transform_7, window_bounds = array<i64: 256, 784>}]} {
    %c0 = arith.constant 0 : index
    %c0_0 = arith.constant 0 : index
    %0 = vector.load %arg1[%c0, %c0_0] : memref<256x128xbf16, #tpu.memory_space<vmem>>, vector<256x128xbf16>
    %c0_1 = arith.constant 0 : index
    %c0_2 = arith.constant 0 : index
    %1 = vector.load %arg2[%c0_1, %c0_2] : memref<128x256xbf16, #tpu.memory_space<vmem>>, vector<128x256xbf16>
    %cst = arith.constant dense<0.000000e+00> : vector<256x256xf32>
    %2 = tpu.matmul %0, %1, %cst {dimension_numbers = #tpu.dot_dimension_numbers<[1], [0], [0], [1], [0, 0, 1, 1], [], []>} : vector<256x128xbf16>, vector<128x256xbf16>, vector<256x256xf32> -> vector<256x256xf32>
    %c0_3 = arith.constant 0 : index
    %c0_4 = arith.constant 0 : index
    %3 = vector.load %arg3[%c0_3, %c0_4] : memref<1x256xf32, #tpu.memory_space<vmem>>, vector<1x256xf32>
    %4 = vector.broadcast %3 : vector<1x256xf32> to vector<256x256xf32>
    %5 = arith.addf %2, %4 : vector<256x256xf32>
    %cst_5 = arith.constant 0.000000e+00 : f32
    %6 = vector.broadcast %cst_5 : f32 to vector<256x256xf32>
    %7 = arith.maximumf %5, %6 : vector<256x256xf32>
    %8 = arith.truncf %7 : vector<256x256xf32> to vector<256x256xbf16>
    %c0_6 = arith.constant 0 : index
    %c0_7 = arith.constant 0 : index
    %9 = vector.load %arg4[%c0_6, %c0_7] : memref<256x256xbf16, #tpu.memory_space<vmem>>, vector<256x256xbf16>
    %cst_8 = arith.constant dense<0.000000e+00> : vector<256x256xf32>
    %10 = tpu.matmul %8, %9, %cst_8 {dimension_numbers = #tpu.dot_dimension_numbers<[1], [0], [0], [1], [0, 0, 1, 1], [], []>} : vector<256x256xbf16>, vector<256x256xbf16>, vector<256x256xf32> -> vector<256x256xf32>
    %c0_9 = arith.constant 0 : index
    %c0_10 = arith.constant 0 : index
    %11 = vector.load %arg5[%c0_9, %c0_10] : memref<1x256xf32, #tpu.memory_space<vmem>>, vector<1x256xf32>
    %12 = vector.broadcast %11 : vector<1x256xf32> to vector<256x256xf32>
    %13 = arith.addf %10, %12 : vector<256x256xf32>
    %cst_11 = arith.constant 0.000000e+00 : f32
    %14 = vector.broadcast %cst_11 : f32 to vector<256x256xf32>
    %15 = arith.maximumf %13, %14 : vector<256x256xf32>
    %16 = arith.truncf %15 : vector<256x256xf32> to vector<256x256xbf16>
    %c0_12 = arith.constant 0 : index
    %c0_13 = arith.constant 0 : index
    %17 = vector.load %arg6[%c0_12, %c0_13] : memref<256x784xbf16, #tpu.memory_space<vmem>>, vector<256x256xbf16>
    %cst_14 = arith.constant dense<0.000000e+00> : vector<256x256xf32>
    %18 = tpu.matmul %16, %17, %cst_14 {dimension_numbers = #tpu.dot_dimension_numbers<[1], [0], [0], [1], [0, 0, 1, 1], [], []>} : vector<256x256xbf16>, vector<256x256xbf16>, vector<256x256xf32> -> vector<256x256xf32>
    %c0_15 = arith.constant 0 : index
    %c0_16 = arith.constant 0 : index
    %19 = vector.load %arg7[%c0_15, %c0_16] : memref<1x784xf32, #tpu.memory_space<vmem>>, vector<1x256xf32>
    %20 = vector.broadcast %19 : vector<1x256xf32> to vector<256x256xf32>
    %21 = arith.addf %18, %20 : vector<256x256xf32>
    %22 = math.tanh %21 : vector<256x256xf32>
    %c0_17 = arith.constant 0 : index
    %c0_18 = arith.constant 0 : index
    %23 = vector.load %arg8[%c0_17, %c0_18] : memref<256x784xf32, #tpu.memory_space<vmem>>, vector<256x256xf32>
    tpu.vector_store %arg8[%c0_17, %c0_18], %22 {strides = array<i32>} : memref<256x784xf32, #tpu.memory_space<vmem>>, vector<256x256xf32>,
    %c0_19 = arith.constant 0 : index
    %c256 = arith.constant 256 : index
    %24 = vector.load %arg6[%c0_19, %c256] : memref<256x784xbf16, #tpu.memory_space<vmem>>, vector<256x256xbf16>
    %cst_20 = arith.constant dense<0.000000e+00> : vector<256x256xf32>
    %25 = tpu.matmul %16, %24, %cst_20 {dimension_numbers = #tpu.dot_dimension_numbers<[1], [0], [0], [1], [0, 0, 1, 1], [], []>} : vector<256x256xbf16>, vector<256x256xbf16>, vector<256x256xf32> -> vector<256x256xf32>
    %c0_21 = arith.constant 0 : index
    %c256_22 = arith.constant 256 : index
    %26 = vector.load %arg7[%c0_21, %c256_22] : memref<1x784xf32, #tpu.memory_space<vmem>>, vector<1x256xf32>
    %27 = vector.broadcast %26 : vector<1x256xf32> to vector<256x256xf32>
    %28 = arith.addf %25, %27 : vector<256x256xf32>
    %29 = math.tanh %28 : vector<256x256xf32>
    %c0_23 = arith.constant 0 : index
    %c256_24 = arith.constant 256 : index
    %30 = vector.load %arg8[%c0_23, %c256_24] : memref<256x784xf32, #tpu.memory_space<vmem>>, vector<256x256xf32>
    tpu.vector_store %arg8[%c0_23, %c256_24], %29 {strides = array<i32>} : memref<256x784xf32, #tpu.memory_space<vmem>>, vector<256x256xf32>,
    %c0_25 = arith.constant 0 : index
    %c512 = arith.constant 512 : index
    %31 = vector.load %arg6[%c0_25, %c512] : memref<256x784xbf16, #tpu.memory_space<vmem>>, vector<256x272xbf16>
    %cst_26 = arith.constant dense<0.000000e+00> : vector<256x272xf32>
    %32 = tpu.matmul %16, %31, %cst_26 {dimension_numbers = #tpu.dot_dimension_numbers<[1], [0], [0], [1], [0, 0, 1, 1], [], []>} : vector<256x256xbf16>, vector<256x272xbf16>, vector<256x272xf32> -> vector<256x272xf32>
    %c0_27 = arith.constant 0 : index
    %c512_28 = arith.constant 512 : index
    %33 = vector.load %arg7[%c0_27, %c512_28] : memref<1x784xf32, #tpu.memory_space<vmem>>, vector<1x272xf32>
    %34 = vector.broadcast %33 : vector<1x272xf32> to vector<256x272xf32>
    %35 = arith.addf %32, %34 : vector<256x272xf32>
    %36 = math.tanh %35 : vector<256x272xf32>
    %c0_29 = arith.constant 0 : index
    %c512_30 = arith.constant 512 : index
    %37 = vector.load %arg8[%c0_29, %c512_30] : memref<256x784xf32, #tpu.memory_space<vmem>>, vector<256x272xf32>
    tpu.vector_store %arg8[%c0_29, %c512_30], %36 {strides = array<i32>} : memref<256x784xf32, #tpu.memory_space<vmem>>, vector<256x272xf32>,
    return
  }
  func.func @transform_0(%arg0: i32) -> (i32, i32) {
    %c0_i32 = arith.constant 0 : i32
    %c0_i32_0 = arith.constant 0 : i32
    return %arg0, %c0_i32 : i32, i32
  }
  func.func @transform_1(%arg0: i32) -> (i32, i32) {
    %c0_i32 = arith.constant 0 : i32
    %c0_i32_0 = arith.constant 0 : i32
    %c0_i32_1 = arith.constant 0 : i32
    return %c0_i32, %c0_i32_0 : i32, i32
  }
  func.func @transform_2(%arg0: i32) -> (i32, i32) {
    %c0_i32 = arith.constant 0 : i32
    %c0_i32_0 = arith.constant 0 : i32
    %c0_i32_1 = arith.constant 0 : i32
    return %c0_i32, %c0_i32_0 : i32, i32
  }
  func.func @transform_3(%arg0: i32) -> (i32, i32) {
    %c0_i32 = arith.constant 0 : i32
    %c0_i32_0 = arith.constant 0 : i32
    %c0_i32_1 = arith.constant 0 : i32
    return %c0_i32, %c0_i32_0 : i32, i32
  }
  func.func @transform_4(%arg0: i32) -> (i32, i32) {
    %c0_i32 = arith.constant 0 : i32
    %c0_i32_0 = arith.constant 0 : i32
    %c0_i32_1 = arith.constant 0 : i32
    return %c0_i32, %c0_i32_0 : i32, i32
  }
  func.func @transform_5(%arg0: i32) -> (i32, i32) {
    %c0_i32 = arith.constant 0 : i32
    %c0_i32_0 = arith.constant 0 : i32
    %c0_i32_1 = arith.constant 0 : i32
    return %c0_i32, %c0_i32_0 : i32, i32
  }
  func.func @transform_6(%arg0: i32) -> (i32, i32) {
    %c0_i32 = arith.constant 0 : i32
    %c0_i32_0 = arith.constant 0 : i32
    %c0_i32_1 = arith.constant 0 : i32
    return %c0_i32, %c0_i32_0 : i32, i32
  }
  func.func @transform_7(%arg0: i32) -> (i32, i32) {
    %c0_i32 = arith.constant 0 : i32
    %c0_i32_0 = arith.constant 0 : i32
    return %arg0, %c0_i32 : i32, i32
  }
}

</mosaic_0001>

<bundles_post_ra>
// kernel: tpu_custom_call.1
= control target key start
LH: loop header
LB: loop body
LE: loop exit
PB: predicated region body
PF: predicated region fallthrough
CT: control target
= control target key end

     0   :  { %vm3504_vm0 = vcmask 130048   ;;  %s7508_s1 = inlined_call_operand.vmem [shape: bf16[128,256], index: 1, kind: input, shape index: {}]   ;;  %s7509_s3 = inlined_call_operand.vmem [shape: bf16[256,256], index: 3, kind: input, shape index: {}]   ;;  %s7510_s0 = inlined_call_operand.vmem [shape: bf16[256,128], index: 0, kind: input, shape index: {}]   ;;  %s7511_s5 = inlined_call_operand.vmem [shape: bf16[256,784], index: 5, kind: input, shape index: {}]   ;;  %s7512_s2 = inlined_call_operand.vmem [shape: f32[1,256], index: 2, kind: input, shape index: {}]   ;;  %s7513_s4 = inlined_call_operand.vmem [shape: f32[1,256], index: 4, kind: input, shape index: {}]   ;;  %s7514_s6 = inlined_call_operand.vmem [shape: f32[1,784], index: 6, kind: input, shape index: {}]   ;;  %s7515_s7 = inlined_call_operand.vmem [shape: f32[256,784], index: 7, kind: output, shape index: {}]  }
   0x1   :  { %v3725_v0 = vld [vmem:[%s7508_s1 + $0x70] sm:$0xf]  ;;  %v4338_v1 = vld [vmem:[%s7508_s1 + $0x74] sm:$0xf0]  ;;  %v4337_v2 = vld [vmem:[%s7508_s1 + $0x74] sm:$0xf] }
   0x2   :  { %v3726_v3 = vor.u32 %v4338_v1, %v3725_v0  ;;  %v3727_v4 = vld [vmem:[%s7508_s1 + $0x78] sm:$0xf0]  ;;  %v3717_v5 = vld [vmem:[%s7508_s1 + $0x60] sm:$0xf]  ;;  %v4336_v6 = vld [vmem:[%s7508_s1 + $0x64] sm:$0xf0] }
   0x3   :  { %v3730_v7 = vor.u32 %v4337_v2, %v3727_v4  ;;  %v4335_v8 = vld [vmem:[%s7508_s1 + $0x64] sm:$0xf]  ;;  %v3719_v9 = vld [vmem:[%s7508_s1 + $0x68] sm:$0xf0]  ;;  %v3718_v10 = vor.u32 %v4336_v6, %v3717_v5  ;;  %v3709_v12 = vld [vmem:[%s7508_s1 + $0x50] sm:$0xf] }
   0x4   :  { %256 = vmatpush.bf16.msra.mxu0 %v3726_v3  ;;  %v3722_v11 = vor.u32 %v4335_v8, %v3719_v9  ;;  %v4334_v13 = vld [vmem:[%s7508_s1 + $0x54] sm:$0xf0]  ;;  %v4333_v14 = vld [vmem:[%s7508_s1 + $0x54] sm:$0xf]  ;;  %v3711_v15 = vld [vmem:[%s7508_s1 + $0x58] sm:$0xf0] }
   0x5   :  { %345 = vmatpush.bf16.msra.mxu1 %v3730_v7  ;;  %v3710_v16 = vor.u32 %v4334_v13, %v3709_v12  ;;  %v3714_v17 = vor.u32 %v4333_v14, %v3711_v15  ;;  %v3701_v18 = vld [vmem:[%s7508_s1 + $0x40] sm:$0xf]  ;;  %v4332_v19 = vld [vmem:[%s7508_s1 + $0x44] sm:$0xf0]  ;;  %v4331_v20 = vld [vmem:[%s7508_s1 + $0x44] sm:$0xf] }
   0x6   :  { %v3703_v21 = vld [vmem:[%s7508_s1 + $0x48] sm:$0xf0]  ;;  %v3702_v22 = vor.u32 %v4332_v19, %v3701_v18  ;;  %v3693_v24 = vld [vmem:[%s7508_s1 + $0x30] sm:$0xf]  ;;  %v4330_v25 = vld [vmem:[%s7508_s1 + $0x34] sm:$0xf0] }
   0x7   :  { %v3706_v23 = vor.u32 %v4331_v20, %v3703_v21  ;;  %v4329_v26 = vld [vmem:[%s7508_s1 + $0x34] sm:$0xf]  ;;  %v3695_v27 = vld [vmem:[%s7508_s1 + $0x38] sm:$0xf0]  ;;  %v3694_v28 = vor.u32 %v4330_v25, %v3693_v24  ;;  %v3685_v30 = vld [vmem:[%s7508_s1 + $0x20] sm:$0xf] }
   0x8   :  { %257 = vmatpush.bf16.msra.mxu0 %v3718_v10  ;;  %v3698_v29 = vor.u32 %v4329_v26, %v3695_v27  ;;  %v4328_v31 = vld [vmem:[%s7508_s1 + $0x24] sm:$0xf0]  ;;  %v4327_v32 = vld [vmem:[%s7508_s1 + $0x24] sm:$0xf]  ;;  %v3687_v33 = vld [vmem:[%s7508_s1 + $0x28] sm:$0xf0] }
   0x9   :  { %346 = vmatpush.bf16.msra.mxu1 %v3722_v11  ;;  %v3686_v34 = vor.u32 %v4328_v31, %v3685_v30  ;;  %v3690_v35 = vor.u32 %v4327_v32, %v3687_v33  ;;  %v3677_v36 = vld [vmem:[%s7508_s1 + $0x10] sm:$0xf]  ;;  %v4326_v37 = vld [vmem:[%s7508_s1 + $0x14] sm:$0xf0]  ;;  %v4325_v38 = vld [vmem:[%s7508_s1 + $0x14] sm:$0xf] }
   0xa   :  { %v3679_v39 = vld [vmem:[%s7508_s1 + $0x18] sm:$0xf0]  ;;  %v3678_v40 = vor.u32 %v4326_v37, %v3677_v36  ;;  %v3669_v42 = vld [vmem:[%s7508_s1] sm:$0xf]  ;;  %v4324_v43 = vld [vmem:[%s7508_s1 + $0x4] sm:$0xf0] }
   0xb   :  { %v3682_v41 = vor.u32 %v4325_v38, %v3679_v39  ;;  %v4323_v44 = vld [vmem:[%s7508_s1 + $0x4] sm:$0xf]  ;;  %v3671_v45 = vld [vmem:[%s7508_s1 + $0x8] sm:$0xf0]  ;;  %v4353_v46 = vld [vmem:[%s7509_s3 + $0x74] sm:$0xf]  ;;  %v3670_v50 = vor.u32 %v4324_v43, %v3669_v42 }
   0xc   :  { %258 = vmatpush.bf16.msra.mxu0 %v3710_v16  ;;  %v3791_v47 = vld [vmem:[%s7509_s3 + $0x78] sm:$0xf0]  ;;  %v4369_v48 = vld [vmem:[%s7509_s3 + $0xf4] sm:$0xf]  ;;  %v3674_v51 = vor.u32 %v4323_v44, %v3671_v45  ;;  %v4307_v54 = vld [vmem:[%s7510_s0] sm:$0xff] }
   0xd   :  { %347 = vmatpush.bf16.msra.mxu1 %v3714_v17  ;;  %v3855_v49 = vld [vmem:[%s7509_s3 + $0xf8] sm:$0xf0]  ;;  %v3794_v52 = vor.u32 %v4353_v46, %v3791_v47  ;;  %v4351_v55 = vld [vmem:[%s7509_s3 + $0x64] sm:$0xf]  ;;  %v3783_v56 = vld [vmem:[%s7509_s3 + $0x68] sm:$0xf0] }
   0xe   :  { %v3858_v53 = vor.u32 %v4369_v48, %v3855_v49  ;;  %v4367_v57 = vld [vmem:[%s7509_s3 + $0xe4] sm:$0xf]  ;;  %v3786_v58 = vor.u32 %v4351_v55, %v3783_v56  ;;  %v3847_v59 = vld [vmem:[%s7509_s3 + $0xe8] sm:$0xf0]  ;;  %v4309_v62 = vld [vmem:[%s7510_s0 + $0x10] sm:$0xff] }
   0xf   :  { %v3850_v60 = vor.u32 %v4367_v57, %v3847_v59  ;;  %v4308_v61 = vld [vmem:[%s7510_s0 + $0x8] sm:$0xff]  ;;  %v4349_v63 = vld [vmem:[%s7509_s3 + $0x54] sm:$0xf]  ;;  %v3775_v0 = vld [vmem:[%s7509_s3 + $0x58] sm:$0xf0] }
  0x10   :  { %259 = vmatpush.bf16.msra.mxu0 %v3702_v22  ;;  %v4365_v1 = vld [vmem:[%s7509_s3 + $0xd4] sm:$0xf]  ;;  %v3778_v2 = vor.u32 %v4349_v63, %v3775_v0  ;;  %v3839_v3 = vld [vmem:[%s7509_s3 + $0xd8] sm:$0xf0]  ;;  %v4311_v6 = vld [vmem:[%s7510_s0 + $0x20] sm:$0xff] }
  0x11   :  { %348 = vmatpush.bf16.msra.mxu1 %v3706_v23  ;;  %v3842_v4 = vor.u32 %v4365_v1, %v3839_v3  ;;  %v4310_v5 = vld [vmem:[%s7510_s0 + $0x18] sm:$0xff]  ;;  %v4347_v7 = vld [vmem:[%s7509_s3 + $0x44] sm:$0xf]  ;;  %v3767_v8 = vld [vmem:[%s7509_s3 + $0x48] sm:$0xf0] }
  0x12   :  { %v4363_v9 = vld [vmem:[%s7509_s3 + $0xc4] sm:$0xf]  ;;  %v3770_v10 = vor.u32 %v4347_v7, %v3767_v8  ;;  %v3831_v11 = vld [vmem:[%s7509_s3 + $0xc8] sm:$0xf0]  ;;  %v3789_v12 = vld [vmem:[%s7509_s3 + $0x70] sm:$0xf] }
  0x13   :  { %v4354_v13 = vld [vmem:[%s7509_s3 + $0x74] sm:$0xf0]  ;;  %v3834_v14 = vor.u32 %v4363_v9, %v3831_v11  ;;  %v3853_v16 = vld [vmem:[%s7509_s3 + $0xf0] sm:$0xf]  ;;  %v4312_v19 = vld [vmem:[%s7510_s0 + $0x28] sm:$0xff] }
  0x14   :  { %260 = vmatpush.bf16.msra.mxu0 %v3694_v28  ;;  %v3790_v15 = vor.u32 %v4354_v13, %v3789_v12  ;;  %v4370_v17 = vld [vmem:[%s7509_s3 + $0xf4] sm:$0xf0]  ;;  %v3781_v20 = vld [vmem:[%s7509_s3 + $0x60] sm:$0xf]  ;;  %v4352_v21 = vld [vmem:[%s7509_s3 + $0x64] sm:$0xf0] }
  0x15   :  { %349 = vmatpush.bf16.msra.mxu1 %v3698_v29  ;;  %v3854_v18 = vor.u32 %v4370_v17, %v3853_v16  ;;  %v3845_v22 = vld [vmem:[%s7509_s3 + $0xe0] sm:$0xf]  ;;  %v3782_v23 = vor.u32 %v4352_v21, %v3781_v20  ;;  %v4368_v24 = vld [vmem:[%s7509_s3 + $0xe4] sm:$0xf0]  ;;  %v3773_v26 = vld [vmem:[%s7509_s3 + $0x50] sm:$0xf] }
  0x16   :  { %728 = vmatpush.bf16.msra.mxu2 %v3790_v15  ;;  %v3846_v25 = vor.u32 %v4368_v24, %v3845_v22  ;;  %v4350_v27 = vld [vmem:[%s7509_s3 + $0x54] sm:$0xf0]  ;;  %v3837_v28 = vld [vmem:[%s7509_s3 + $0xd0] sm:$0xf]  ;;  %v3765_v32 = vld [vmem:[%s7509_s3 + $0x40] sm:$0xf] }
  0x17   :  { %817 = vmatpush.bf16.msra.mxu3 %v3854_v18  ;;  %v3774_v29 = vor.u32 %v4350_v27, %v3773_v26  ;;  %v4366_v30 = vld [vmem:[%s7509_s3 + $0xd4] sm:$0xf0]  ;;  %v4348_v33 = vld [vmem:[%s7509_s3 + $0x44] sm:$0xf0]  ;;  %v3757_v38 = vld [vmem:[%s7509_s3 + $0x30] sm:$0xf] }
  0x18   :  { %261 = vmatpush.bf16.msra.mxu0 %v3686_v34  ;;  %v3838_v31 = vor.u32 %v4366_v30, %v3837_v28  ;;  %v3829_v34 = vld [vmem:[%s7509_s3 + $0xc0] sm:$0xf]  ;;  %v3766_v36 = vor.u32 %v4348_v33, %v3765_v32  ;;  %v4346_v39 = vld [vmem:[%s7509_s3 + $0x34] sm:$0xf0]  ;;  %v4344_v46 = vld [vmem:[%s7509_s3 + $0x24] sm:$0xf0] }
  0x19   :  { %350 = vmatpush.bf16.msra.mxu1 %v3690_v35  ;;  %v4364_v35 = vld [vmem:[%s7509_s3 + $0xc4] sm:$0xf0]  ;;  %v3758_v42 = vor.u32 %v4346_v39, %v3757_v38  ;;  %v4362_v43 = vld [vmem:[%s7509_s3 + $0xb4] sm:$0xf0]  ;;  %v3749_v45 = vld [vmem:[%s7509_s3 + $0x20] sm:$0xf] }
  0x1a   :  { %729 = vmatpush.bf16.msra.mxu2 %v3782_v23  ;;  %v3830_v37 = vor.u32 %v4364_v35, %v3829_v34  ;;  %v3750_v47 = vor.u32 %v4344_v46, %v3749_v45  ;;  %v3813_v48 = vld [vmem:[%s7509_s3 + $0xa0] sm:$0xf]  ;;  %v4360_v49 = vld [vmem:[%s7509_s3 + $0xa4] sm:$0xf0]  ;;  %v3823_v55 = vld [vmem:[%s7509_s3 + $0xb8] sm:$0xf0] }
  0x1b   :  { %818 = vmatpush.bf16.msra.mxu3 %v3846_v25  ;;  %v3741_v57 = vld [vmem:[%s7509_s3 + $0x10] sm:$0xf]  ;;  %v3733_v63 = vld [vmem:[%s7509_s3] sm:$0xf]  ;;  %v4340_v0 = vld [vmem:[%s7509_s3 + $0x4] sm:$0xf0] }
  0x1c   :  { %262 = vmatpush.bf16.msra.mxu0 %v3678_v40  ;;  %v3821_v40 = vld [vmem:[%s7509_s3 + $0xb0] sm:$0xf]  ;;  %v3797_v1 = vld [vmem:[%s7509_s3 + $0x80] sm:$0xf]  ;;  %v4356_v3 = vld [vmem:[%s7509_s3 + $0x84] sm:$0xf0] }
  0x1d   :  { %351 = vmatpush.bf16.msra.mxu1 %v3682_v41  ;;  %v4313_v41 = vld [vmem:[%s7510_s0 + $0x30] sm:$0xff]  ;;  %v3822_v44 = vor.u32 %v4362_v43, %v3821_v40  ;;  %v4386_v7 = vld [vmem:[%s7511_s5 + $0x1a0] sm:$0xf0]  ;;  %v3981_v9 = vld [vmem:[%s7511_s5 + $0x348] sm:$0xf] }
  0x1e   :  { %730 = vmatpush.bf16.msra.mxu2 %v3774_v29  ;;  %v3805_v59 = vld [vmem:[%s7509_s3 + $0x90] sm:$0xf]  ;;  %v4315_v12 = vld [vmem:[%s7510_s0 + $0x40] sm:$0xff]  ;;  %v3815_v22 = vld [vmem:[%s7509_s3 + $0xa8] sm:$0xf0] }
  0x1f   :  { %819 = vmatpush.bf16.msra.mxu3 %v3838_v31  ;;  %v74_v13 = vld [vmem:[%s7512_s2] sm:$0x3]  ;;  %v4343_v18 = vld [vmem:[%s7509_s3 + $0x24] sm:$0xf]  ;;  %v3909_v38 = vld [vmem:[%s7511_s5 + $0x150] sm:$0xf] }
  0x20   :  { %263 = vmatpush.bf16.msra.mxu0 %v3670_v50  ;;  %v4345_v50 = vld [vmem:[%s7509_s3 + $0x34] sm:$0xf]  ;;  %v5266_v16 = vperm.slane %v74_v13, 0  ;;  %v5268_v17 = vperm.slane %v74_v13, 1  ;;  %v4359_v21 = vld [vmem:[%s7509_s3 + $0xa4] sm:$0xf] }
  0x21   :  { %352 = vmatpush.bf16.msra.mxu1 %v3674_v51  ;;  %v3759_v51 = vld [vmem:[%s7509_s3 + $0x38] sm:$0xf0]  ;;  %v3818_v23 = vor.u32 %v4359_v21, %v3815_v22  ;;  %v4384_v39 = vld [vmem:[%s7511_s5 + $0x168] sm:$0xf0]  ;;  %v3965_v22 = vld [vmem:[%s7511_s5 + $0x2d8] sm:$0xf] }
  0x22   :  { %731 = vmatpush.bf16.msra.mxu2 %v3766_v36  ;;  %v4316_v36 = vld [vmem:[%s7510_s0 + $0x48] sm:$0xff] }
  0x23   :  { %264 = vmatmul.bf16.vlgmr.msra.gmra.mxu0 %v4307_v54  ;;  %820 = vmatpush.bf16.msra.mxu3 %v3830_v37  ;;  %v4400_v43 = vld [vmem:[%s7511_s5 + $0x328] sm:$0xf0] }
  0x24   :  { %906 = vmatpush.bf16.msrb.mxu0 %v3794_v52  ;;  %353 = vmatmul.bf16.vlgmr.msra.gmra.mxu1 %v4307_v54  ;;  %v3814_v52 = vor.u32 %v4360_v49, %v3813_v48  ;;  %v3762_v54 = vor.u32 %v4345_v50, %v3759_v51 }
  0x25   :  { %995 = vmatpush.bf16.msrb.mxu1 %v3858_v53  ;;  %v4361_v53 = vld [vmem:[%s7509_s3 + $0xb4] sm:$0xf] }
  0x26   :  { %732 = vmatpush.bf16.msra.mxu2 %v3758_v42  ;;  %v3826_v56 = vor.u32 %v4361_v53, %v3823_v55  ;;  %v3973_v42 = vld [vmem:[%s7511_s5 + $0x310] sm:$0xf] }
  0x27   :  { %821 = vmatpush.bf16.msra.mxu3 %v3822_v44  ;;  %v3974_v44 = vor.u32 %v4400_v43, %v3973_v42  ;;  %v4339_v42 = vld [vmem:[%s7509_s3 + $0x4] sm:$0xf]  ;;  %v3735_v43 = vld [vmem:[%s7509_s3 + $0x8] sm:$0xf0] }
  0x28   :  { %907 = vmatpush.bf16.msrb.mxu0 %v3786_v58  ;;  %v4342_v58 = vld [vmem:[%s7509_s3 + $0x14] sm:$0xf0] }
  0x29   :  { %996 = vmatpush.bf16.msrb.mxu1 %v3850_v60  ;;  %v3742_v60 = vor.u32 %v4342_v58, %v3741_v57  ;;  %v4317_v57 = vld [vmem:[%s7510_s0 + $0x50] sm:$0xff] }
  0x2a   :  { %733 = vmatpush.bf16.msra.mxu2 %v3750_v47 }
  0x2b   :  { %822 = vmatpush.bf16.msra.mxu3 %v3814_v52 }
  0x2c   :  { %908 = vmatpush.bf16.msrb.mxu0 %v3778_v2  ;;  %v3734_v2 = vor.u32 %v4340_v0, %v3733_v63  ;;  %v4357_v63 = vld [vmem:[%s7509_s3 + $0x94] sm:$0xf]  ;;  %v3807_v0 = vld [vmem:[%s7509_s3 + $0x98] sm:$0xf0] }
  0x2d   :  { %997 = vmatpush.bf16.msrb.mxu1 %v3842_v4  ;;  %v3798_v4 = vor.u32 %v4356_v3, %v3797_v1  ;;  %v3810_v1 = vor.u32 %v4357_v63, %v3807_v0  ;;  %v3893_v0 = vld [vmem:[%s7511_s5 + $0xe0] sm:$0xf] }
  0x2e   :  { %734 = vmatpush.bf16.msra.mxu2 %v3742_v60  ;;  %v4341_v60 = vld [vmem:[%s7509_s3 + $0x14] sm:$0xf] }
  0x30   :  { %909 = vmatpush.bf16.msrb.mxu0 %v3770_v10  ;;  %v4402_v10 = vld [vmem:[%s7511_s5 + $0x360] sm:$0xf0] }
  0x31   :  { %998 = vmatpush.bf16.msrb.mxu1 %v3834_v14  ;;  %v3982_v11 = vor.u32 %v4402_v10, %v3981_v9 }
  0x32   :  { %735 = vmatpush.bf16.msra.mxu2 %v3734_v2 }
  0x33   :  { %269 = vmatmul.bf16.gmra.mxu0 %v4308_v61 }
  0x34   :  { %358 = vmatmul.bf16.gmra.mxu1 %v4308_v61  ;;  %910 = vmatpush.bf16.msrb.mxu0 %v3762_v54  ;;  %v4358_v61 = vld [vmem:[%s7509_s3 + $0x94] sm:$0xf0] }
  0x35   :  { %999 = vmatpush.bf16.msrb.mxu1 %v3826_v56 }
  0x39   :  { %1000 = vmatpush.bf16.msrb.mxu1 %v3818_v23  ;;  %v4398_v23 = vld [vmem:[%s7511_s5 + $0x2f0] sm:$0xf0] }
  0x3d   :  { %1001 = vmatpush.bf16.msrb.mxu1 %v3810_v1  ;;  %v4380_v1 = vld [vmem:[%s7511_s5 + $0xf8] sm:$0xf0] }
  0x43   :  { %274 = vmatmul.bf16.gmra.mxu0 %v4309_v62 }
  0x44   :  { %363 = vmatmul.bf16.gmra.mxu1 %v4309_v62  ;;  %v3806_v62 = vor.u32 %v4358_v61, %v3805_v59  ;;  %v3743_v61 = vld [vmem:[%s7509_s3 + $0x18] sm:$0xf0] }
  0x46   :  { %823 = vmatpush.bf16.msra.mxu3 %v3806_v62  ;;  %v3746_v62 = vor.u32 %v4341_v60, %v3743_v61 }
  0x4a   :  { %824 = vmatpush.bf16.msra.mxu3 %v3798_v4 }
  0x4e   :  { %1467 = vmatpush.bf16.msrb.mxu3 %v3982_v11 }
  0x52   :  { %1468 = vmatpush.bf16.msrb.mxu3 %v3974_v44  ;;  %v3738_v44 = vor.u32 %v4339_v42, %v3735_v43  ;;  %v4322_v42 = vld [vmem:[%s7510_s0 + $0x78] sm:$0xff] }
  0x53   :  { %279 = vmatmul.bf16.gmra.mxu0 %v4310_v5 }
  0x54   :  { %368 = vmatmul.bf16.gmra.mxu1 %v4310_v5  ;;  %v4314_v5 = vld [vmem:[%s7510_s0 + $0x38] sm:$0xff] }
  0x63   :  { %284 = vmatmul.bf16.gmra.mxu0 %v4311_v6 }
  0x64   :  { %373 = vmatmul.bf16.gmra.mxu1 %v4311_v6  ;;  %v3917_v6 = vld [vmem:[%s7511_s5 + $0x188] sm:$0xf] }
  0x65   :  { %v3918_v8 = vor.u32 %v4386_v7, %v3917_v6 }
  0x67   :  { %1378 = vmatpush.bf16.msrb.mxu2 %v3918_v8 }
  0x73   :  { %289 = vmatmul.bf16.gmra.mxu0 %v4312_v19 }
  0x74   :  { %378 = vmatmul.bf16.gmra.mxu1 %v4312_v19  ;;  %v3751_v19 = vld [vmem:[%s7509_s3 + $0x28] sm:$0xf0] }
  0x75   :  { %v3754_v20 = vor.u32 %v4343_v18, %v3751_v19  ;;  %v3901_v18 = vld [vmem:[%s7511_s5 + $0x118] sm:$0xf]  ;;  %v4382_v19 = vld [vmem:[%s7511_s5 + $0x130] sm:$0xf0] }
  0x76   :  { %v3902_v21 = vor.u32 %v4382_v19, %v3901_v18 }
  0x77   :  { %911 = vmatpush.bf16.msrb.mxu0 %v3754_v20 }
  0x7b   :  { %912 = vmatpush.bf16.msrb.mxu0 %v3746_v62  ;;  %v4320_v62 = vld [vmem:[%s7510_s0 + $0x68] sm:$0xff] }
  0x7f   :  { %913 = vmatpush.bf16.msrb.mxu0 %v3738_v44  ;;  %v3885_v44 = vld [vmem:[%s7511_s5 + $0xa8] sm:$0xf] }
  0x83   :  { %294 = vmatmul.bf16.gmra.mxu0 %v4313_v41 }
  0x84   :  { %383 = vmatmul.bf16.gmra.mxu1 %v4313_v41  ;;  %v3910_v41 = vor.u32 %v4384_v39, %v3909_v38  ;;  %v4319_v39 = vld [vmem:[%s7510_s0 + $0x60] sm:$0xff] }
  0x86   :  { %1379 = vmatpush.bf16.msrb.mxu2 %v3910_v41 }
  0x8a   :  { %1380 = vmatpush.bf16.msrb.mxu2 %v3902_v21 }
  0x93   :  { %299 = vmatmul.bf16.gmra.mxu0 %v4314_v5 }
  0x94   :  { %388 = vmatmul.bf16.gmra.mxu1 %v4314_v5 }
  0xa0   :  { %v265_v14 = vpop.f32.mrf.mxu0 }
  0xa1   :  { %v354_v15 = vpop.f32.mrf.mxu1  ;;  %v266_v24 = vadd.f32 %v265_v14, %v5266_v16  ;;  %v4318_v14 = vld [vmem:[%s7510_s0 + $0x58] sm:$0xff] }
  0xa2   :  { %v355_v25 = vadd.f32 %v354_v15, %v5268_v17 }
  0xa3   :  { %304 = vmatmul.bf16.gmra.mxu0 %v4315_v12  ;;  %v434_v30 = vmax.f32 %v266_v24, 0.0  ;;  %v3966_v24 = vor.u32 %v4398_v23, %v3965_v22  ;;  %v4321_v23 = vld [vmem:[%s7510_s0 + $0x70] sm:$0xff] }
  0xa4   :  { %393 = vmatmul.bf16.gmra.mxu1 %v4315_v12  ;;  %v435_v32 = vmax.f32 %v355_v25, 0.0 }
  0xa5   :  { %1469 = vmatpush.bf16.msrb.mxu3 %v3966_v24 }
  0xa8   :  { %v267_v26 = vpop.f32.mrf.mxu0 }
  0xa9   :  { %v268_v27 = vadd.f32 %v267_v26, %v5266_v16  ;;  %v356_v28 = vpop.f32.mrf.mxu1 }
  0xaa   :  { %v357_v29 = vadd.f32 %v356_v28, %v5268_v17 }
  0xab   :  { %v436_v31 = vmax.f32 %v268_v27, 0.0 }
  0xac   :  { %v437_v33 = vmax.f32 %v357_v29, 0.0 }
  0xad   :  { %v5286_v34 = vpack.c.bf16 %v436_v31, %v434_v30 }
  0xae   :  { %v5288_v35 = vpack.c.bf16 %v437_v33, %v435_v32 }
  0xaf   :  { %736 = vmatmul.bf16.vlgmr.msra.gmra.mxu2 %v5286_v34 }
  0xb0   :  { %825 = vmatmul.bf16.vlgmr.msra.gmra.mxu3 %v5288_v35  ;;  %v270_v37 = vpop.f32.mrf.mxu0 }
  0xb1   :  { %v359_v40 = vpop.f32.mrf.mxu1  ;;  %v271_v45 = vadd.f32 %v270_v37, %v5266_v16 }
  0xb2   :  { %v360_v46 = vadd.f32 %v359_v40, %v5268_v17 }
  0xb3   :  { %309 = vmatmul.bf16.gmra.mxu0 %v4316_v36  ;;  %v438_v51 = vmax.f32 %v271_v45, 0.0  ;;  %v4355_v45 = vld [vmem:[%s7509_s3 + $0x84] sm:$0xf] }
  0xb4   :  { %398 = vmatmul.bf16.gmra.mxu1 %v4316_v36  ;;  %v439_v53 = vmax.f32 %v360_v46, 0.0  ;;  %v3799_v46 = vld [vmem:[%s7509_s3 + $0x88] sm:$0xf0] }
  0xb8   :  { %v272_v47 = vpop.f32.mrf.mxu0 }
  0xb9   :  { %v273_v48 = vadd.f32 %v272_v47, %v5266_v16  ;;  %v361_v49 = vpop.f32.mrf.mxu1  ;;  %v3802_v47 = vor.u32 %v4355_v45, %v3799_v46  ;;  %v4378_v45 = vld [vmem:[%s7511_s5 + $0xc0] sm:$0xf0] }
  0xba   :  { %v362_v50 = vadd.f32 %v361_v49, %v5268_v17 }
  0xbb   :  { %v440_v52 = vmax.f32 %v273_v48, 0.0  ;;  %1002 = vmatpush.bf16.msrb.mxu1 %v3802_v47  ;;  %v3886_v47 = vor.u32 %v4378_v45, %v3885_v44 }
  0xbc   :  { %v441_v54 = vmax.f32 %v362_v50, 0.0 }
  0xbd   :  { %v5311_v55 = vpack.c.bf16 %v440_v52, %v438_v51 }
  0xbe   :  { %v5313_v56 = vpack.c.bf16 %v441_v54, %v439_v53 }
  0xbf   :  { %741 = vmatmul.bf16.gmra.mxu2 %v5311_v55 }
  0xc0   :  { %830 = vmatmul.bf16.gmra.mxu3 %v5313_v56  ;;  %v275_v58 = vpop.f32.mrf.mxu0 }
  0xc1   :  { %v364_v59 = vpop.f32.mrf.mxu1  ;;  %v276_v2 = vadd.f32 %v275_v58, %v5266_v16 }
  0xc2   :  { %v365_v3 = vadd.f32 %v364_v59, %v5268_v17 }
  0xc3   :  { %314 = vmatmul.bf16.gmra.mxu0 %v4317_v57  ;;  %v442_v8 = vmax.f32 %v276_v2, 0.0 }
  0xc4   :  { %403 = vmatmul.bf16.gmra.mxu1 %v4317_v57  ;;  %v443_v10 = vmax.f32 %v365_v3, 0.0  ;;  %v3894_v3 = vor.u32 %v4380_v1, %v3893_v0 }
  0xc6   :  { %1381 = vmatpush.bf16.msrb.mxu2 %v3894_v3 }
  0xc8   :  { %v277_v4 = vpop.f32.mrf.mxu0 }
  0xc9   :  { %v278_v5 = vadd.f32 %v277_v4, %v5266_v16  ;;  %v366_v6 = vpop.f32.mrf.mxu1  ;;  %v3957_v4 = vld [vmem:[%s7511_s5 + $0x2a0] sm:$0xf] }
  0xca   :  { %v367_v7 = vadd.f32 %v366_v6, %v5268_v17  ;;  %1382 = vmatpush.bf16.msrb.mxu2 %v3886_v47 }
  0xcb   :  { %v444_v9 = vmax.f32 %v278_v5, 0.0  ;;  %v4396_v5 = vld [vmem:[%s7511_s5 + $0x2b8] sm:$0xf0] }
  0xcc   :  { %v445_v11 = vmax.f32 %v367_v7, 0.0  ;;  %v3958_v6 = vor.u32 %v4396_v5, %v3957_v4 }
  0xcd   :  { %v5336_v12 = vpack.c.bf16 %v444_v9, %v442_v8 }
  0xce   :  { %v5338_v13 = vpack.c.bf16 %v445_v11, %v443_v10  ;;  %1470 = vmatpush.bf16.msrb.mxu3 %v3958_v6 }
  0xcf   :  { %746 = vmatmul.bf16.gmra.mxu2 %v5336_v12 }
  0xd0   :  { %835 = vmatmul.bf16.gmra.mxu3 %v5338_v13  ;;  %v280_v15 = vpop.f32.mrf.mxu0 }
  0xd1   :  { %v369_v20 = vpop.f32.mrf.mxu1  ;;  %v281_v25 = vadd.f32 %v280_v15, %v5266_v16 }
  0xd2   :  { %v370_v26 = vadd.f32 %v369_v20, %v5268_v17 }
  0xd3   :  { %319 = vmatmul.bf16.gmra.mxu0 %v4318_v14  ;;  %v446_v31 = vmax.f32 %v281_v25, 0.0 }
  0xd4   :  { %408 = vmatmul.bf16.gmra.mxu1 %v4318_v14  ;;  %v447_v33 = vmax.f32 %v370_v26, 0.0 }
  0xd8   :  { %v282_v27 = vpop.f32.mrf.mxu0 }
  0xd9   :  { %v283_v28 = vadd.f32 %v282_v27, %v5266_v16  ;;  %v371_v29 = vpop.f32.mrf.mxu1 }
  0xda   :  { %v372_v30 = vadd.f32 %v371_v29, %v5268_v17 }
  0xdb   :  { %v448_v32 = vmax.f32 %v283_v28, 0.0 }
  0xdc   :  { %v449_v36 = vmax.f32 %v372_v30, 0.0 }
  0xdd   :  { %v5361_v37 = vpack.c.bf16 %v448_v32, %v446_v31 }
  0xde   :  { %v5363_v38 = vpack.c.bf16 %v449_v36, %v447_v33 }
  0xdf   :  { %751 = vmatmul.bf16.gmra.mxu2 %v5361_v37 }
  0xe0   :  { %840 = vmatmul.bf16.gmra.mxu3 %v5363_v38  ;;  %v285_v40 = vpop.f32.mrf.mxu0 }
  0xe1   :  { %v374_v41 = vpop.f32.mrf.mxu1  ;;  %v286_v48 = vadd.f32 %v285_v40, %v5266_v16 }
  0xe2   :  { %v375_v49 = vadd.f32 %v374_v41, %v5268_v17 }
  0xe3   :  { %324 = vmatmul.bf16.gmra.mxu0 %v4319_v39  ;;  %v450_v54 = vmax.f32 %v286_v48, 0.0  ;;  %v3949_v48 = vld [vmem:[%s7511_s5 + $0x268] sm:$0xf] }
  0xe4   :  { %413 = vmatmul.bf16.gmra.mxu1 %v4319_v39  ;;  %v451_v58 = vmax.f32 %v375_v49, 0.0  ;;  %v4394_v49 = vld [vmem:[%s7511_s5 + $0x280] sm:$0xf0] }
  0xe8   :  { %v287_v50 = vpop.f32.mrf.mxu0 }
  0xe9   :  { %v288_v51 = vadd.f32 %v287_v50, %v5266_v16  ;;  %v376_v52 = vpop.f32.mrf.mxu1  ;;  %v3950_v50 = vor.u32 %v4394_v49, %v3949_v48 }
  0xea   :  { %v377_v53 = vadd.f32 %v376_v52, %v5268_v17 }
  0xeb   :  { %v452_v57 = vmax.f32 %v288_v51, 0.0  ;;  %1471 = vmatpush.bf16.msrb.mxu3 %v3950_v50 }
  0xec   :  { %v453_v59 = vmax.f32 %v377_v53, 0.0 }
  0xed   :  { %v5386_v60 = vpack.c.bf16 %v452_v57, %v450_v54 }
  0xee   :  { %v5388_v61 = vpack.c.bf16 %v453_v59, %v451_v58 }
  0xef   :  { %756 = vmatmul.bf16.gmra.mxu2 %v5386_v60 }
  0xf0   :  { %845 = vmatmul.bf16.gmra.mxu3 %v5388_v61  ;;  %v290_v63 = vpop.f32.mrf.mxu0 }
  0xf1   :  { %v379_v2 = vpop.f32.mrf.mxu1  ;;  %v291_v7 = vadd.f32 %v290_v63, %v5266_v16 }
  0xf2   :  { %v380_v8 = vadd.f32 %v379_v2, %v5268_v17 }
  0xf3   :  { %329 = vmatmul.bf16.gmra.mxu0 %v4320_v62  ;;  %v454_v15 = vmax.f32 %v291_v7, 0.0 }
  0xf4   :  { %418 = vmatmul.bf16.gmra.mxu1 %v4320_v62  ;;  %v455_v19 = vmax.f32 %v380_v8, 0.0 }
  0xf8   :  { %v292_v9 = vpop.f32.mrf.mxu0 }
  0xf9   :  { %v293_v10 = vadd.f32 %v292_v9, %v5266_v16  ;;  %v381_v11 = vpop.f32.mrf.mxu1 }
  0xfa   :  { %v382_v14 = vadd.f32 %v381_v11, %v5268_v17 }
  0xfb   :  { %v456_v18 = vmax.f32 %v293_v10, 0.0 }
  0xfc   :  { %v457_v20 = vmax.f32 %v382_v14, 0.0 }
  0xfd   :  { %v5411_v21 = vpack.c.bf16 %v456_v18, %v454_v15 }
  0xfe   :  { %v5413_v22 = vpack.c.bf16 %v457_v20, %v455_v19 }
  0xff   :  { %761 = vmatmul.bf16.gmra.mxu2 %v5411_v21 }
 0x100   :  { %850 = vmatmul.bf16.gmra.mxu3 %v5413_v22  ;;  %v295_v24 = vpop.f32.mrf.mxu0 }
 0x101   :  { %v384_v25 = vpop.f32.mrf.mxu1  ;;  %v296_v26 = vadd.f32 %v295_v24, %v5266_v16 }
 0x102   :  { %v385_v27 = vadd.f32 %v384_v25, %v5268_v17  ;;  %v3877_v25 = vld [vmem:[%s7511_s5 + $0x70] sm:$0xf] }
 0x103   :  { %334 = vmatmul.bf16.gmra.mxu0 %v4321_v23  ;;  %v458_v32 = vmax.f32 %v296_v26, 0.0  ;;  %v4376_v26 = vld [vmem:[%s7511_s5 + $0x88] sm:$0xf0] }
 0x104   :  { %423 = vmatmul.bf16.gmra.mxu1 %v4321_v23  ;;  %v459_v36 = vmax.f32 %v385_v27, 0.0 }
 0x108   :  { %v297_v28 = vpop.f32.mrf.mxu0 }
 0x109   :  { %v298_v29 = vadd.f32 %v297_v28, %v5266_v16  ;;  %v386_v30 = vpop.f32.mrf.mxu1  ;;  %v3878_v28 = vor.u32 %v4376_v26, %v3877_v25 }
 0x10a   :  { %v387_v31 = vadd.f32 %v386_v30, %v5268_v17 }
 0x10b   :  { %v460_v33 = vmax.f32 %v298_v29, 0.0  ;;  %1383 = vmatpush.bf16.msrb.mxu2 %v3878_v28 }
 0x10c   :  { %v461_v39 = vmax.f32 %v387_v31, 0.0  ;;  %v3941_v31 = vld [vmem:[%s7511_s5 + $0x230] sm:$0xf] }
 0x10d   :  { %v5424_v40 = vpack.c.bf16 %v460_v33, %v458_v32  ;;  %v4392_v32 = vld [vmem:[%s7511_s5 + $0x248] sm:$0xf0] }
 0x10e   :  { %v5426_v41 = vpack.c.bf16 %v461_v39, %v459_v36  ;;  %v3942_v36 = vor.u32 %v4392_v32, %v3941_v31 }
 0x10f   :  { %766 = vmatmul.bf16.gmra.mxu2 %v5424_v40 }
 0x110   :  { %855 = vmatmul.bf16.gmra.mxu3 %v5426_v41  ;;  %v300_v43 = vpop.f32.mrf.mxu0 }
 0x111   :  { %v389_v46 = vpop.f32.mrf.mxu1  ;;  %v301_v51 = vadd.f32 %v300_v43, %v5266_v16  ;;  %1472 = vmatpush.bf16.msrb.mxu3 %v3942_v36  ;;  %v4374_v36 = vld [vmem:[%s7511_s5 + $0x50] sm:$0xf0] }
 0x112   :  { %v390_v52 = vadd.f32 %v389_v46, %v5268_v17 }
 0x113   :  { %339 = vmatmul.bf16.gmra.mxu0 %v4322_v42  ;;  %v462_v59 = vmax.f32 %v301_v51, 0.0 }
 0x114   :  { %428 = vmatmul.bf16.gmra.mxu1 %v4322_v42  ;;  %v463_v63 = vmax.f32 %v390_v52, 0.0 }
 0x118   :  { %v302_v53 = vpop.f32.mrf.mxu0 }
 0x119   :  { %v303_v54 = vadd.f32 %v302_v53, %v5266_v16  ;;  %v391_v57 = vpop.f32.mrf.mxu1 }
 0x11a   :  { %v392_v58 = vadd.f32 %v391_v57, %v5268_v17 }
 0x11b   :  { %v464_v62 = vmax.f32 %v303_v54, 0.0 }
 0x11c   :  { %v465_v0 = vmax.f32 %v392_v58, 0.0 }
 0x11d   :  { %v5449_v1 = vpack.c.bf16 %v464_v62, %v462_v59 }
 0x11e   :  { %v5451_v2 = vpack.c.bf16 %v465_v0, %v463_v63 }
 0x11f   :  { %771 = vmatmul.bf16.gmra.mxu2 %v5449_v1 }
 0x120   :  { %860 = vmatmul.bf16.gmra.mxu3 %v5451_v2  ;;  %v305_v3 = vpop.f32.mrf.mxu0 }
 0x121   :  { %v394_v4 = vpop.f32.mrf.mxu1  ;;  %v306_v5 = vadd.f32 %v305_v3, %v5266_v16 }
 0x122   :  { %v395_v6 = vadd.f32 %v394_v4, %v5268_v17 }
 0x123   :  { %914 = vmatmul.bf16.vlgmr.msrb.gmra.mxu0 %v5286_v34  ;;  %v466_v11 = vmax.f32 %v306_v5, 0.0  ;;  %v5464_v34 = vld [vmem:[%s7513_s4] sm:$0x3] }
 0x124   :  { %1003 = vmatmul.bf16.vlgmr.msrb.gmra.mxu1 %v5288_v35  ;;  %v467_v15 = vmax.f32 %v395_v6, 0.0  ;;  %v5472_v20 = vperm.slane %v5464_v34, 0 }
 0x128   :  { %v307_v7 = vpop.f32.mrf.mxu0 }
 0x129   :  { %v308_v8 = vadd.f32 %v307_v7, %v5266_v16  ;;  %v396_v9 = vpop.f32.mrf.mxu1 }
 0x12a   :  { %v397_v10 = vadd.f32 %v396_v9, %v5268_v17 }
 0x12b   :  { %v468_v14 = vmax.f32 %v308_v8, 0.0 }
 0x12c   :  { %v469_v18 = vmax.f32 %v397_v10, 0.0 }
 0x12d   :  { %v5466_v35 = vpack.c.bf16 %v468_v14, %v466_v11 }
 0x12e   :  { %v5468_v19 = vpack.c.bf16 %v469_v18, %v467_v15 }
 0x12f   :  { %776 = vmatmul.bf16.gmra.mxu2 %v5466_v35 }
 0x130   :  { %865 = vmatmul.bf16.gmra.mxu3 %v5468_v19  ;;  %v310_v23 = vpop.f32.mrf.mxu0 }
 0x131   :  { %v399_v24 = vpop.f32.mrf.mxu1  ;;  %v311_v39 = vadd.f32 %v310_v23, %v5266_v16 }
 0x132   :  { %v737_v27 = vpop.f32.mrf.mxu2  ;;  %v400_v42 = vadd.f32 %v399_v24, %v5268_v17 }
 0x133   :  { %v738_v29 = vadd.f32 %v737_v27, %v5472_v20  ;;  %v826_v30 = vpop.f32.mrf.mxu3  ;;  %919 = vmatmul.bf16.gmra.mxu0 %v5311_v55  ;;  %v470_v46 = vmax.f32 %v311_v39, 0.0 }
 0x134   :  { %1008 = vmatmul.bf16.gmra.mxu1 %v5313_v56  ;;  %v471_v50 = vmax.f32 %v400_v42, 0.0 }
 0x135   :  { %v827_v33 = vadd.f32 %v826_v30, %v738_v29 }
 0x137   :  { %v1084_v57 = vmax.f32 %v827_v33, 0.0  ;;  %v3869_v33 = vld [vmem:[%s7511_s5 + $0x38] sm:$0xf] }
 0x138   :  { %v312_v43 = vpop.f32.mrf.mxu0  ;;  %v3870_v42 = vor.u32 %v4374_v36, %v3869_v33 }
 0x139   :  { %v313_v55 = vadd.f32 %v312_v43, %v5266_v16  ;;  %v401_v56 = vpop.f32.mrf.mxu1 }
 0x13a   :  { %v402_v44 = vadd.f32 %v401_v56, %v5268_v17  ;;  %v739_v45 = vpop.f32.mrf.mxu2  ;;  %1384 = vmatpush.bf16.msrb.mxu2 %v3870_v42  ;;  %v3933_v56 = vld [vmem:[%s7511_s5 + $0x1f8] sm:$0xf] }
 0x13b   :  { %v472_v47 = vmax.f32 %v313_v55, 0.0  ;;  %v740_v48 = vadd.f32 %v739_v45, %v5472_v20  ;;  %v828_v49 = vpop.f32.mrf.mxu3 }
 0x13c   :  { %v473_v51 = vmax.f32 %v402_v44, 0.0  ;;  %v4390_v44 = vld [vmem:[%s7511_s5 + $0x210] sm:$0xf0] }
 0x13d   :  { %v829_v52 = vadd.f32 %v828_v49, %v740_v48  ;;  %v5495_v53 = vpack.c.bf16 %v472_v47, %v470_v46  ;;  %v3934_v46 = vor.u32 %v4390_v44, %v3933_v56 }
 0x13e   :  { %v5497_v54 = vpack.c.bf16 %v473_v51, %v471_v50 }
 0x13f   :  { %v1086_v58 = vmax.f32 %v829_v52, 0.0  ;;  %781 = vmatmul.bf16.gmra.mxu2 %v5495_v53  ;;  %1473 = vmatpush.bf16.msrb.mxu3 %v3934_v46 }
 0x140   :  { %870 = vmatmul.bf16.gmra.mxu3 %v5497_v54  ;;  %v315_v59 = vpop.f32.mrf.mxu0 }
 0x141   :  { %v5501_v62 = vpack.c.bf16 %v1086_v58, %v1084_v57  ;;  %v404_v63 = vpop.f32.mrf.mxu1  ;;  %v316_v6 = vadd.f32 %v315_v59, %v5266_v16 }
 0x142   :  { %v742_v0 = vpop.f32.mrf.mxu2  ;;  %v405_v7 = vadd.f32 %v404_v63, %v5268_v17 }
 0x143   :  { %v743_v3 = vadd.f32 %v742_v0, %v5472_v20  ;;  %v831_v4 = vpop.f32.mrf.mxu3  ;;  %924 = vmatmul.bf16.gmra.mxu0 %v5336_v12  ;;  %v474_v15 = vmax.f32 %v316_v6, 0.0 }
 0x144   :  { %1013 = vmatmul.bf16.gmra.mxu1 %v5338_v13  ;;  %v475_v12 = vmax.f32 %v405_v7, 0.0 }
 0x145   :  { %v832_v5 = vadd.f32 %v831_v4, %v743_v3 }
 0x147   :  { %v1088_v28 = vmax.f32 %v832_v5, 0.0 }
 0x148   :  { %v317_v8 = vpop.f32.mrf.mxu0 }
 0x149   :  { %v318_v9 = vadd.f32 %v317_v8, %v5266_v16  ;;  %v406_v10 = vpop.f32.mrf.mxu1 }
 0x14a   :  { %v407_v11 = vadd.f32 %v406_v10, %v5268_v17  ;;  %v744_v14 = vpop.f32.mrf.mxu2 }
 0x14b   :  { %v476_v18 = vmax.f32 %v318_v9, 0.0  ;;  %v745_v23 = vadd.f32 %v744_v14, %v5472_v20  ;;  %v833_v24 = vpop.f32.mrf.mxu3 }
 0x14c   :  { %v477_v25 = vmax.f32 %v407_v11, 0.0 }
 0x14d   :  { %v834_v13 = vadd.f32 %v833_v24, %v745_v23  ;;  %v5511_v26 = vpack.c.bf16 %v476_v18, %v474_v15 }
 0x14e   :  { %v5513_v27 = vpack.c.bf16 %v477_v25, %v475_v12 }
 0x14f   :  { %v1090_v29 = vmax.f32 %v834_v13, 0.0  ;;  %786 = vmatmul.bf16.gmra.mxu2 %v5511_v26 }
 0x150   :  { %875 = vmatmul.bf16.gmra.mxu3 %v5513_v27  ;;  %v320_v30 = vpop.f32.mrf.mxu0 }
 0x151   :  { %v5517_v31 = vpack.c.bf16 %v1090_v29, %v1088_v28  ;;  %v409_v32 = vpop.f32.mrf.mxu1  ;;  %v321_v47 = vadd.f32 %v320_v30, %v5266_v16 }
 0x152   :  { %v747_v39 = vpop.f32.mrf.mxu2  ;;  %v410_v48 = vadd.f32 %v409_v32, %v5268_v17 }
 0x153   :  { %v748_v43 = vadd.f32 %v747_v39, %v5472_v20  ;;  %v836_v55 = vpop.f32.mrf.mxu3  ;;  %929 = vmatmul.bf16.gmra.mxu0 %v5361_v37  ;;  %v478_v52 = vmax.f32 %v321_v47, 0.0  ;;  %v3861_v47 = vld [vmem:[%s7511_s5] sm:$0xf] }
 0x154   :  { %1018 = vmatmul.bf16.gmra.mxu1 %v5363_v38  ;;  %v479_v63 = vmax.f32 %v410_v48, 0.0  ;;  %v4372_v48 = vld [vmem:[%s7511_s5 + $0x18] sm:$0xf0] }
 0x155   :  { %v837_v45 = vadd.f32 %v836_v55, %v748_v43 }
 0x157   :  { %v1092_v6 = vmax.f32 %v837_v45, 0.0 }
 0x158   :  { %v322_v49 = vpop.f32.mrf.mxu0 }
 0x159   :  { %v323_v37 = vadd.f32 %v322_v49, %v5266_v16  ;;  %v411_v38 = vpop.f32.mrf.mxu1 }
 0x15a   :  { %v412_v50 = vadd.f32 %v411_v38, %v5268_v17  ;;  %v749_v51 = vpop.f32.mrf.mxu2 }
 0x15b   :  { %v480_v57 = vmax.f32 %v323_v37, 0.0  ;;  %v750_v58 = vadd.f32 %v749_v51, %v5472_v20  ;;  %v838_v59 = vpop.f32.mrf.mxu3  ;;  %v3862_v37 = vor.u32 %v4372_v48, %v3861_v47  ;;  %v3925_v51 = vld [vmem:[%s7511_s5 + $0x1c0] sm:$0xf] }
 0x15c   :  { %v481_v0 = vmax.f32 %v412_v50, 0.0 }
 0x15d   :  { %v839_v3 = vadd.f32 %v838_v59, %v750_v58  ;;  %v5539_v4 = vpack.c.bf16 %v480_v57, %v478_v52  ;;  %1385 = vmatpush.bf16.msrb.mxu2 %v3862_v37  ;;  %v4388_v52 = vld [vmem:[%s7511_s5 + $0x1d8] sm:$0xf0] }
 0x15e   :  { %v5541_v5 = vpack.c.bf16 %v481_v0, %v479_v63  ;;  %v3926_v58 = vor.u32 %v4388_v52, %v3925_v51 }
 0x15f   :  { %v1094_v7 = vmax.f32 %v839_v3, 0.0  ;;  %791 = vmatmul.bf16.gmra.mxu2 %v5539_v4 }
 0x160   :  { %880 = vmatmul.bf16.gmra.mxu3 %v5541_v5  ;;  %v325_v8 = vpop.f32.mrf.mxu0 }
 0x161   :  { %v5545_v9 = vpack.c.bf16 %v1094_v7, %v1092_v6  ;;  %v414_v10 = vpop.f32.mrf.mxu1  ;;  %v326_v23 = vadd.f32 %v325_v8, %v5266_v16  ;;  %1474 = vmatpush.bf16.msrb.mxu3 %v3926_v58 }
 0x162   :  { %v752_v11 = vpop.f32.mrf.mxu2  ;;  %v415_v24 = vadd.f32 %v414_v10, %v5268_v17 }
 0x163   :  { %v753_v14 = vadd.f32 %v752_v11, %v5472_v20  ;;  %v841_v15 = vpop.f32.mrf.mxu3  ;;  %934 = vmatmul.bf16.gmra.mxu0 %v5386_v60  ;;  %v482_v30 = vmax.f32 %v326_v23, 0.0 }
 0x164   :  { %1023 = vmatmul.bf16.gmra.mxu1 %v5388_v61  ;;  %v483_v60 = vmax.f32 %v415_v24, 0.0 }
 0x165   :  { %v842_v18 = vadd.f32 %v841_v15, %v753_v14 }
 0x167   :  { %v1096_v55 = vmax.f32 %v842_v18, 0.0 }
 0x168   :  { %v327_v12 = vpop.f32.mrf.mxu0 }
 0x169   :  { %v328_v25 = vadd.f32 %v327_v12, %v5266_v16  ;;  %v416_v13 = vpop.f32.mrf.mxu1 }
 0x16a   :  { %v417_v28 = vadd.f32 %v416_v13, %v5268_v17  ;;  %v754_v29 = vpop.f32.mrf.mxu2 }
 0x16b   :  { %v484_v32 = vmax.f32 %v328_v25, 0.0  ;;  %v755_v33 = vadd.f32 %v754_v29, %v5472_v20  ;;  %v843_v36 = vpop.f32.mrf.mxu3 }
 0x16c   :  { %v485_v39 = vmax.f32 %v417_v28, 0.0 }
 0x16d   :  { %v844_v61 = vadd.f32 %v843_v36, %v755_v33  ;;  %v5555_v42 = vpack.c.bf16 %v484_v32, %v482_v30 }
 0x16e   :  { %v5557_v43 = vpack.c.bf16 %v485_v39, %v483_v60 }
 0x16f   :  { %v1098_v56 = vmax.f32 %v844_v61, 0.0  ;;  %796 = vmatmul.bf16.gmra.mxu2 %v5555_v42 }
 0x170   :  { %885 = vmatmul.bf16.gmra.mxu3 %v5557_v43  ;;  %v330_v44 = vpop.f32.mrf.mxu0 }
 0x171   :  { %v5561_v45 = vpack.c.bf16 %v1098_v56, %v1096_v55  ;;  %v419_v46 = vpop.f32.mrf.mxu1  ;;  %v331_v59 = vadd.f32 %v330_v44, %v5266_v16 }
 0x172   :  { %v757_v49 = vpop.f32.mrf.mxu2  ;;  %v420_v63 = vadd.f32 %v419_v46, %v5268_v17 }
 0x173   :  { %v758_v38 = vadd.f32 %v757_v49, %v5472_v20  ;;  %v846_v50 = vpop.f32.mrf.mxu3  ;;  %939 = vmatmul.bf16.gmra.mxu0 %v5411_v21  ;;  %v486_v7 = vmax.f32 %v331_v59, 0.0 }
 0x174   :  { %1028 = vmatmul.bf16.gmra.mxu1 %v5413_v22  ;;  %v487_v14 = vmax.f32 %v420_v63, 0.0 }
 0x175   :  { %v847_v57 = vadd.f32 %v846_v50, %v758_v38 }
 0x177   :  { %v1100_v12 = vmax.f32 %v847_v57, 0.0 }
 0x178   :  { %v332_v0 = vpop.f32.mrf.mxu0 }
 0x179   :  { %v333_v21 = vadd.f32 %v332_v0, %v5266_v16  ;;  %v421_v22 = vpop.f32.mrf.mxu1  ;;  %v4045_v0 = vld [vmem:[%s7511_s5 + $0x190] sm:$0xf] }
 0x17a   :  { %v422_v3 = vadd.f32 %v421_v22, %v5268_v17  ;;  %v759_v6 = vpop.f32.mrf.mxu2 }
 0x17b   :  { %v488_v8 = vmax.f32 %v333_v21, 0.0  ;;  %v760_v10 = vadd.f32 %v759_v6, %v5472_v20  ;;  %v848_v11 = vpop.f32.mrf.mxu3  ;;  %v4418_v21 = vld [vmem:[%s7511_s5 + $0x1a8] sm:$0xf0] }
 0x17c   :  { %v489_v15 = vmax.f32 %v422_v3, 0.0  ;;  %v4046_v3 = vor.u32 %v4418_v21, %v4045_v0 }
 0x17d   :  { %v849_v18 = vadd.f32 %v848_v11, %v760_v10  ;;  %v5583_v23 = vpack.c.bf16 %v488_v8, %v486_v7  ;;  %v4109_v10 = vld [vmem:[%s7511_s5 + $0x350] sm:$0xf]  ;;  %v4434_v11 = vld [vmem:[%s7511_s5 + $0x368] sm:$0xf0] }
 0x17e   :  { %v5585_v24 = vpack.c.bf16 %v489_v15, %v487_v14  ;;  %2060 = vmatpush.bf16.msra.mxu2 %v4046_v3  ;;  %v4110_v14 = vor.u32 %v4434_v11, %v4109_v10 }
 0x17f   :  { %v1102_v25 = vmax.f32 %v849_v18, 0.0  ;;  %801 = vmatmul.bf16.gmra.mxu2 %v5583_v23  ;;  %v4385_v18 = vld [vmem:[%s7511_s5 + $0x18c] sm:$0xf] }
 0x180   :  { %890 = vmatmul.bf16.gmra.mxu3 %v5585_v24  ;;  %v335_v13 = vpop.f32.mrf.mxu0 }
 0x181   :  { %v5589_v28 = vpack.c.bf16 %v1102_v25, %v1100_v12  ;;  %v424_v29 = vpop.f32.mrf.mxu1  ;;  %v336_v60 = vadd.f32 %v335_v13, %v5266_v16  ;;  %2149 = vmatpush.bf16.msra.mxu3 %v4110_v14  ;;  %v4401_v13 = vld [vmem:[%s7511_s5 + $0x34c] sm:$0xf] }
 0x182   :  { %v762_v30 = vpop.f32.mrf.mxu2  ;;  %v425_v39 = vadd.f32 %v424_v29, %v5268_v17  ;;  %v3983_v29 = vld [vmem:[%s7511_s5 + $0x364] sm:$0xf0] }
 0x183   :  { %v763_v32 = vadd.f32 %v762_v30, %v5472_v20  ;;  %v851_v33 = vpop.f32.mrf.mxu3  ;;  %944 = vmatmul.bf16.gmra.mxu0 %v5424_v40  ;;  %v490_v47 = vmax.f32 %v336_v60, 0.0 }
 0x184   :  { %1033 = vmatmul.bf16.gmra.mxu1 %v5426_v41  ;;  %v491_v40 = vmax.f32 %v425_v39, 0.0 }
 0x185   :  { %v852_v36 = vadd.f32 %v851_v33, %v763_v32  ;;  %v3986_v33 = vor.u32 %v4401_v13, %v3983_v29  ;;  %v4416_v13 = vld [vmem:[%s7511_s5 + $0x170] sm:$0xf0] }
 0x187   :  { %v1104_v52 = vmax.f32 %v852_v36, 0.0  ;;  %1645 = vmatpush.bf16.msra.mxu1 %v3986_v33 }
 0x188   :  { %v337_v61 = vpop.f32.mrf.mxu0 }
 0x189   :  { %v338_v55 = vadd.f32 %v337_v61, %v5266_v16  ;;  %v426_v56 = vpop.f32.mrf.mxu1 }
 0x18a   :  { %v427_v44 = vadd.f32 %v426_v56, %v5268_v17  ;;  %v764_v46 = vpop.f32.mrf.mxu2 }
 0x18b   :  { %v492_v48 = vmax.f32 %v338_v55, 0.0  ;;  %v765_v49 = vadd.f32 %v764_v46, %v5472_v20  ;;  %v853_v37 = vpop.f32.mrf.mxu3 }
 0x18c   :  { %v493_v38 = vmax.f32 %v427_v44, 0.0 }
 0x18d   :  { %v854_v41 = vadd.f32 %v853_v37, %v765_v49  ;;  %v5599_v50 = vpack.c.bf16 %v492_v48, %v490_v47 }
 0x18e   :  { %v5601_v51 = vpack.c.bf16 %v493_v38, %v491_v40  ;;  %v5648_v38 = vperm.slane %v5464_v34, 1 }
 0x18f   :  { %v1106_v57 = vmax.f32 %v854_v41, 0.0  ;;  %806 = vmatmul.bf16.gmra.mxu2 %v5599_v50 }
 0x190   :  { %895 = vmatmul.bf16.gmra.mxu3 %v5601_v51  ;;  %v340_v58 = vpop.f32.mrf.mxu0 }
 0x191   :  { %v5605_v59 = vpack.c.bf16 %v1106_v57, %v1104_v52  ;;  %v429_v63 = vpop.f32.mrf.mxu1  ;;  %v341_v15 = vadd.f32 %v340_v58, %v5266_v16 }
 0x192   :  { %v767_v22 = vpop.f32.mrf.mxu2 }
 0x193   :  { %v768_v6 = vadd.f32 %v767_v22, %v5472_v20  ;;  %v856_v7 = vpop.f32.mrf.mxu3  ;;  %949 = vmatmul.bf16.gmra.mxu0 %v5449_v1  ;;  %v3919_v1 = vld [vmem:[%s7511_s5 + $0x1a4] sm:$0xf0]  ;;  %v494_v39 = vmax.f32 %v341_v15, 0.0 }
 0x194   :  { %1038 = vmatmul.bf16.gmra.mxu1 %v5451_v2  ;;  %v430_v2 = vadd.f32 %v429_v63, %v5268_v17  ;;  %v3922_v25 = vor.u32 %v4385_v18, %v3919_v1 }
 0x195   :  { %v857_v8 = vadd.f32 %v856_v7, %v768_v6 }
 0x196   :  { %1556 = vmatpush.bf16.msra.mxu0 %v3922_v25  ;;  %v495_v44 = vmax.f32 %v430_v2, 0.0  ;;  %v4037_v25 = vld [vmem:[%s7511_s5 + $0x158] sm:$0xf] }
 0x198   :  { %v342_v12 = vpop.f32.mrf.mxu0 }
 0x199   :  { %v343_v30 = vadd.f32 %v342_v12, %v5266_v16  ;;  %v431_v32 = vpop.f32.mrf.mxu1  ;;  %v1108_v16 = vmax.f32 %v857_v8, 0.0 }
 0x19a   :  { %v432_v36 = vadd.f32 %v431_v32, %v5268_v17  ;;  %v769_v60 = vpop.f32.mrf.mxu2 }
 0x19b   :  { %v496_v61 = vmax.f32 %v343_v30, 0.0  ;;  %v770_v55 = vadd.f32 %v769_v60, %v5472_v20  ;;  %v858_v56 = vpop.f32.mrf.mxu3  ;;  %v4038_v30 = vor.u32 %v4416_v13, %v4037_v25 }
 0x19c   :  { %v497_v46 = vmax.f32 %v432_v36, 0.0 }
 0x19d   :  { %v859_v47 = vadd.f32 %v858_v56, %v770_v55  ;;  %v5639_v48 = vpack.c.bf16 %v496_v61, %v494_v39  ;;  %2061 = vmatpush.bf16.msra.mxu2 %v4038_v30  ;;  %v4101_v39 = vld [vmem:[%s7511_s5 + $0x318] sm:$0xf]  ;;  %v4432_v61 = vld [vmem:[%s7511_s5 + $0x330] sm:$0xf0] }
 0x19e   :  { %v5641_v49 = vpack.c.bf16 %v497_v46, %v495_v44  ;;  %v4102_v55 = vor.u32 %v4432_v61, %v4101_v39  ;;  %v4383_v56 = vld [vmem:[%s7511_s5 + $0x154] sm:$0xf] }
 0x19f   :  { %v1110_v37 = vmax.f32 %v859_v47, 0.0  ;;  %811 = vmatmul.bf16.gmra.mxu2 %v5639_v48  ;;  %v4399_v46 = vld [vmem:[%s7511_s5 + $0x314] sm:$0xf]  ;;  %v3975_v47 = vld [vmem:[%s7511_s5 + $0x32c] sm:$0xf0] }
 0x1a0   :  { %900 = vmatmul.bf16.gmra.mxu3 %v5641_v49  ;;  %v915_v17 = vpop.f32.mrf.mxu0 }
 0x1a1   :  { %v5645_v40 = vpack.c.bf16 %v1110_v37, %v1108_v16  ;;  %v1004_v41 = vpop.f32.mrf.mxu1  ;;  %v916_v63 = vadd.f32 %v915_v17, %v5648_v38  ;;  %2150 = vmatpush.bf16.msra.mxu3 %v4102_v55 }
 0x1a2   :  { %v772_v52 = vpop.f32.mrf.mxu2 }
 0x1a3   :  { %v773_v57 = vadd.f32 %v772_v52, %v5472_v20  ;;  %v861_v58 = vpop.f32.mrf.mxu3  ;;  %954 = vmatmul.bf16.gmra.mxu0 %v5466_v35  ;;  %v1005_v22 = vadd.f32 %v1004_v41, %v916_v63  ;;  %v3978_v41 = vor.u32 %v4399_v46, %v3975_v47 }
 0x1a4   :  { %1043 = vmatmul.bf16.gmra.mxu1 %v5468_v19 }
 0x1a5   :  { %v862_v0 = vadd.f32 %v861_v58, %v773_v57  ;;  %v1085_v11 = vmax.f32 %v1005_v22, 0.0  ;;  %1646 = vmatpush.bf16.msra.mxu1 %v3978_v41 }
 0x1a7   :  { %v1112_v18 = vmax.f32 %v862_v0, 0.0 }
 0x1a8   :  { %v917_v21 = vpop.f32.mrf.mxu0 }
 0x1a9   :  { %v918_v3 = vadd.f32 %v917_v21, %v5648_v38  ;;  %v1006_v6 = vpop.f32.mrf.mxu1 }
 0x1aa   :  { %v774_v7 = vpop.f32.mrf.mxu2 }
 0x1ab   :  { %v1007_v34 = vadd.f32 %v1006_v6, %v918_v3  ;;  %v775_v8 = vadd.f32 %v774_v7, %v5472_v20  ;;  %v863_v10 = vpop.f32.mrf.mxu3 }
 0x1ad   :  { %v1087_v14 = vmax.f32 %v1007_v34, 0.0  ;;  %v864_v15 = vadd.f32 %v863_v10, %v775_v8 }
 0x1af   :  { %v5656_v35 = vpack.c.bf16 %v1087_v14, %v1085_v11  ;;  %v1114_v19 = vmax.f32 %v864_v15, 0.0  ;;  %1386 = vmatmul.bf16.vlgmr.msrb.gmra.mxu2 %v5501_v62 }
 0x1b0   :  { %v920_v1 = vpop.f32.mrf.mxu0 }
 0x1b1   :  { %v5659_v2 = vpack.c.bf16 %v1114_v19, %v1112_v18  ;;  %v1009_v12 = vpop.f32.mrf.mxu1  ;;  %1475 = vmatmul.bf16.vlgmr.msrb.gmra.mxu3 %v5656_v35  ;;  %v921_v36 = vadd.f32 %v920_v1, %v5648_v38 }
 0x1b2   :  { %v777_v29 = vpop.f32.mrf.mxu2 }
 0x1b3   :  { %v778_v32 = vadd.f32 %v777_v29, %v5472_v20  ;;  %v866_v33 = vpop.f32.mrf.mxu3  ;;  %959 = vmatmul.bf16.gmra.mxu0 %v5495_v53  ;;  %v3911_v53 = vld [vmem:[%s7511_s5 + $0x16c] sm:$0xf0]  ;;  %v1010_v16 = vadd.f32 %v1009_v12, %v921_v36 }
 0x1b4   :  { %1048 = vmatmul.bf16.gmra.mxu1 %v5497_v54  ;;  %v3914_v44 = vor.u32 %v4383_v56, %v3911_v53 }
 0x1b5   :  { %v867_v60 = vadd.f32 %v866_v33, %v778_v32  ;;  %v1089_v0 = vmax.f32 %v1010_v16, 0.0 }
 0x1b6   :  { %1557 = vmatpush.bf16.msra.mxu0 %v3914_v44  ;;  %v4414_v44 = vld [vmem:[%s7511_s5 + $0x138] sm:$0xf0] }
 0x1b7   :  { %v1116_v3 = vmax.f32 %v867_v60, 0.0 }
 0x1b8   :  { %v922_v54 = vpop.f32.mrf.mxu0 }
 0x1b9   :  { %v923_v37 = vadd.f32 %v922_v54, %v5648_v38  ;;  %v1011_v17 = vpop.f32.mrf.mxu1  ;;  %v4029_v54 = vld [vmem:[%s7511_s5 + $0x120] sm:$0xf] }
 0x1ba   :  { %v779_v52 = vpop.f32.mrf.mxu2  ;;  %v4030_v47 = vor.u32 %v4414_v44, %v4029_v54 }
 0x1bb   :  { %v1012_v57 = vadd.f32 %v1011_v17, %v923_v37  ;;  %v780_v58 = vadd.f32 %v779_v52, %v5472_v20  ;;  %v868_v63 = vpop.f32.mrf.mxu3  ;;  %v4093_v52 = vld [vmem:[%s7511_s5 + $0x2e0] sm:$0xf] }
 0x1bc   :  { %2062 = vmatpush.bf16.msra.mxu2 %v4030_v47 }
 0x1bd   :  { %v1091_v21 = vmax.f32 %v1012_v57, 0.0  ;;  %v869_v22 = vadd.f32 %v868_v63, %v780_v58  ;;  %v4430_v57 = vld [vmem:[%s7511_s5 + $0x2f8] sm:$0xf0] }
 0x1be   :  { %v4094_v58 = vor.u32 %v4430_v57, %v4093_v52  ;;  %v4381_v63 = vld [vmem:[%s7511_s5 + $0x11c] sm:$0xf]  ;;  %v4395_v57 = vld [vmem:[%s7511_s5 + $0x2a4] sm:$0xf] }
 0x1bf   :  { %v5692_v6 = vpack.c.bf16 %v1091_v21, %v1089_v0  ;;  %v1118_v7 = vmax.f32 %v869_v22, 0.0  ;;  %1391 = vmatmul.bf16.gmra.mxu2 %v5517_v31  ;;  %v4397_v21 = vld [vmem:[%s7511_s5 + $0x2dc] sm:$0xf]  ;;  %v3967_v22 = vld [vmem:[%s7511_s5 + $0x2f4] sm:$0xf0] }
 0x1c0   :  { %v925_v34 = vpop.f32.mrf.mxu0  ;;  %2151 = vmatpush.bf16.msra.mxu3 %v4094_v58 }
 0x1c1   :  { %v5695_v8 = vpack.c.bf16 %v1118_v7, %v1116_v3  ;;  %v1014_v10 = vpop.f32.mrf.mxu1  ;;  %1480 = vmatmul.bf16.gmra.mxu3 %v5692_v6  ;;  %v926_v18 = vadd.f32 %v925_v34, %v5648_v38 }
 0x1c2   :  { %v782_v11 = vpop.f32.mrf.mxu2 }
 0x1c3   :  { %v783_v14 = vadd.f32 %v782_v11, %v5472_v20  ;;  %v871_v15 = vpop.f32.mrf.mxu3  ;;  %964 = vmatmul.bf16.gmra.mxu0 %v5511_v26  ;;  %v1015_v12 = vadd.f32 %v1014_v10, %v926_v18  ;;  %v3970_v10 = vor.u32 %v4397_v21, %v3967_v22 }
 0x1c4   :  { %1053 = vmatmul.bf16.gmra.mxu1 %v5513_v27 }
 0x1c5   :  { %v872_v19 = vadd.f32 %v871_v15, %v783_v14  ;;  %v1093_v36 = vmax.f32 %v1015_v12, 0.0  ;;  %1647 = vmatpush.bf16.msra.mxu1 %v3970_v10  ;;  %v4412_v10 = vld [vmem:[%s7511_s5 + $0x100] sm:$0xf0] }
 0x1c7   :  { %v1120_v61 = vmax.f32 %v872_v19, 0.0 }
 0x1c8   :  { %v927_v1 = vpop.f32.mrf.mxu0 }
 0x1c9   :  { %v928_v25 = vadd.f32 %v927_v1, %v5648_v38  ;;  %v1016_v13 = vpop.f32.mrf.mxu1 }
 0x1ca   :  { %v784_v29 = vpop.f32.mrf.mxu2 }
 0x1cb   :  { %v1017_v30 = vadd.f32 %v1016_v13, %v928_v25  ;;  %v785_v32 = vadd.f32 %v784_v29, %v5472_v20  ;;  %v873_v33 = vpop.f32.mrf.mxu3 }
 0x1cd   :  { %v1095_v60 = vmax.f32 %v1017_v30, 0.0  ;;  %v874_v39 = vadd.f32 %v873_v33, %v785_v32 }
 0x1cf   :  { %v5704_v26 = vpack.c.bf16 %v1095_v60, %v1093_v36  ;;  %v1122_v27 = vmax.f32 %v874_v39, 0.0  ;;  %1396 = vmatmul.bf16.gmra.mxu2 %v5545_v9 }
 0x1d0   :  { %v930_v55 = vpop.f32.mrf.mxu0 }
 0x1d1   :  { %v5707_v56 = vpack.c.bf16 %v1122_v27, %v1120_v61  ;;  %v1019_v53 = vpop.f32.mrf.mxu1  ;;  %1485 = vmatmul.bf16.gmra.mxu3 %v5704_v26  ;;  %v931_v17 = vadd.f32 %v930_v55, %v5648_v38 }
 0x1d2   :  { %v787_v46 = vpop.f32.mrf.mxu2 }
 0x1d3   :  { %v788_v16 = vadd.f32 %v787_v46, %v5472_v20  ;;  %v876_v37 = vpop.f32.mrf.mxu3  ;;  %969 = vmatmul.bf16.gmra.mxu0 %v5539_v4  ;;  %v3903_v4 = vld [vmem:[%s7511_s5 + $0x134] sm:$0xf0]  ;;  %v1020_v3 = vadd.f32 %v1019_v53, %v931_v17 }
 0x1d4   :  { %1058 = vmatmul.bf16.gmra.mxu1 %v5541_v5  ;;  %v3906_v0 = vor.u32 %v4381_v63, %v3903_v4 }
 0x1d5   :  { %v877_v41 = vadd.f32 %v876_v37, %v788_v16  ;;  %v1097_v19 = vmax.f32 %v1020_v3, 0.0 }
 0x1d6   :  { %1558 = vmatpush.bf16.msra.mxu0 %v3906_v0  ;;  %v3959_v0 = vld [vmem:[%s7511_s5 + $0x2bc] sm:$0xf0] }
 0x1d7   :  { %v1124_v25 = vmax.f32 %v877_v41, 0.0  ;;  %v3962_v22 = vor.u32 %v4395_v57, %v3959_v0 }
 0x1d8   :  { %v932_v5 = vpop.f32.mrf.mxu0 }
 0x1d9   :  { %v933_v7 = vadd.f32 %v932_v5, %v5648_v38  ;;  %v1021_v34 = vpop.f32.mrf.mxu1  ;;  %1648 = vmatpush.bf16.msra.mxu1 %v3962_v22 }
 0x1da   :  { %v789_v11 = vpop.f32.mrf.mxu2 }
 0x1db   :  { %v1022_v14 = vadd.f32 %v1021_v34, %v933_v7  ;;  %v790_v15 = vadd.f32 %v789_v11, %v5472_v20  ;;  %v878_v18 = vpop.f32.mrf.mxu3  ;;  %v4021_v34 = vld [vmem:[%s7511_s5 + $0xe8] sm:$0xf] }
 0x1dd   :  { %v1099_v1 = vmax.f32 %v1022_v14, 0.0  ;;  %v879_v12 = vadd.f32 %v878_v18, %v790_v15  ;;  %v4022_v14 = vor.u32 %v4412_v10, %v4021_v34  ;;  %v4377_v15 = vld [vmem:[%s7511_s5 + $0xac] sm:$0xf]  ;;  %v3887_v18 = vld [vmem:[%s7511_s5 + $0xc4] sm:$0xf0] }
 0x1de   :  { %v3863_v34 = vld [vmem:[%s7511_s5 + $0x1c] sm:$0xf0]  ;;  %v4387_v10 = vld [vmem:[%s7511_s5 + $0x1c4] sm:$0xf] }
 0x1df   :  { %v5740_v13 = vpack.c.bf16 %v1099_v1, %v1097_v19  ;;  %v1126_v29 = vmax.f32 %v879_v12, 0.0  ;;  %1401 = vmatmul.bf16.gmra.mxu2 %v5561_v45  ;;  %v4393_v19 = vld [vmem:[%s7511_s5 + $0x26c] sm:$0xf] }
 0x1e0   :  { %v935_v30 = vpop.f32.mrf.mxu0  ;;  %2063 = vmatpush.bf16.msra.mxu2 %v4022_v14 }
 0x1e1   :  { %v5743_v32 = vpack.c.bf16 %v1126_v29, %v1124_v25  ;;  %v1024_v33 = vpop.f32.mrf.mxu1  ;;  %1490 = vmatmul.bf16.gmra.mxu3 %v5740_v13  ;;  %v936_v61 = vadd.f32 %v935_v30, %v5648_v38  ;;  %v3890_v25 = vor.u32 %v4377_v15, %v3887_v18  ;;  %v3951_v29 = vld [vmem:[%s7511_s5 + $0x284] sm:$0xf0] }
 0x1e2   :  { %v792_v36 = vpop.f32.mrf.mxu2  ;;  %v3954_v30 = vor.u32 %v4393_v19, %v3951_v29  ;;  %v3927_v19 = vld [vmem:[%s7511_s5 + $0x1dc] sm:$0xf0] }
 0x1e3   :  { %v793_v60 = vadd.f32 %v792_v36, %v5472_v20  ;;  %v881_v39 = vpop.f32.mrf.mxu3  ;;  %974 = vmatmul.bf16.gmra.mxu0 %v5555_v42  ;;  %v1025_v53 = vadd.f32 %v1024_v33, %v936_v61  ;;  %v4379_v42 = vld [vmem:[%s7511_s5 + $0xe4] sm:$0xf]  ;;  %v3879_v61 = vld [vmem:[%s7511_s5 + $0x8c] sm:$0xf0] }
 0x1e4   :  { %1063 = vmatmul.bf16.gmra.mxu1 %v5557_v43  ;;  %v3895_v43 = vld [vmem:[%s7511_s5 + $0xfc] sm:$0xf0] }
 0x1e5   :  { %v882_v27 = vadd.f32 %v881_v39, %v793_v60  ;;  %v1101_v17 = vmax.f32 %v1025_v53, 0.0  ;;  %v3898_v5 = vor.u32 %v4379_v42, %v3895_v43  ;;  %v4085_v60 = vld [vmem:[%s7511_s5 + $0x2a8] sm:$0xf]  ;;  %1649 = vmatpush.bf16.msra.mxu1 %v3954_v30  ;;  %v3943_v53 = vld [vmem:[%s7511_s5 + $0x24c] sm:$0xf0] }
 0x1e7   :  { %v1128_v58 = vmax.f32 %v882_v27, 0.0  ;;  %1559 = vmatpush.bf16.msra.mxu0 %v3898_v5  ;;  %v4391_v27 = vld [vmem:[%s7511_s5 + $0x234] sm:$0xf] }
 0x1e8   :  { %v937_v55 = vpop.f32.mrf.mxu0 }
 0x1e9   :  { %v938_v54 = vadd.f32 %v937_v55, %v5648_v38  ;;  %v1026_v44 = vpop.f32.mrf.mxu1 }
 0x1ea   :  { %v794_v46 = vpop.f32.mrf.mxu2 }
 0x1eb   :  { %v1027_v47 = vadd.f32 %v1026_v44, %v938_v54  ;;  %v795_v16 = vadd.f32 %v794_v46, %v5472_v20  ;;  %v883_v37 = vpop.f32.mrf.mxu3  ;;  %1560 = vmatpush.bf16.msra.mxu0 %v3890_v25  ;;  %v3946_v44 = vor.u32 %v4391_v27, %v3943_v53 }
 0x1ed   :  { %v1103_v41 = vmax.f32 %v1027_v47, 0.0  ;;  %v884_v52 = vadd.f32 %v883_v37, %v795_v16  ;;  %1650 = vmatpush.bf16.msra.mxu1 %v3946_v44 }
 0x1ef   :  { %v5761_v63 = vpack.c.bf16 %v1103_v41, %v1101_v17  ;;  %v1130_v4 = vmax.f32 %v884_v52, 0.0  ;;  %1406 = vmatmul.bf16.gmra.mxu2 %v5589_v28  ;;  %v4373_v17 = vld [vmem:[%s7511_s5 + $0x3c] sm:$0xf]  ;;  %v3871_v41 = vld [vmem:[%s7511_s5 + $0x54] sm:$0xf0] }
 0x1f0   :  { %v940_v21 = vpop.f32.mrf.mxu0  ;;  %v4389_v52 = vld [vmem:[%s7511_s5 + $0x1fc] sm:$0xf] }
 0x1f1   :  { %v5767_v3 = vpack.c.bf16 %v1130_v4, %v1128_v58  ;;  %v1029_v7 = vpop.f32.mrf.mxu1  ;;  %1495 = vmatmul.bf16.gmra.mxu3 %v5761_v63  ;;  %v941_v33 = vadd.f32 %v940_v21, %v5648_v38  ;;  %v3874_v58 = vor.u32 %v4373_v17, %v3871_v41  ;;  %v3935_v4 = vld [vmem:[%s7511_s5 + $0x214] sm:$0xf0] }
 0x1f2   :  { %v797_v11 = vpop.f32.mrf.mxu2  ;;  %v3938_v5 = vor.u32 %v4389_v52, %v3935_v4 }
 0x1f3   :  { %v798_v1 = vadd.f32 %v797_v11, %v5472_v20  ;;  %v886_v12 = vpop.f32.mrf.mxu3  ;;  %979 = vmatmul.bf16.gmra.mxu0 %v5583_v23  ;;  %v4428_v23 = vld [vmem:[%s7511_s5 + $0x2c0] sm:$0xf0]  ;;  %v1030_v46 = vadd.f32 %v1029_v7, %v941_v33 }
 0x1f4   :  { %1068 = vmatmul.bf16.gmra.mxu1 %v5585_v24  ;;  %v4086_v39 = vor.u32 %v4428_v23, %v4085_v60  ;;  %v4375_v24 = vld [vmem:[%s7511_s5 + $0x74] sm:$0xf]  ;;  %v4371_v7 = vld [vmem:[%s7511_s5 + $0x4] sm:$0xf] }
 0x1f5   :  { %v887_v36 = vadd.f32 %v886_v12, %v798_v1  ;;  %v3882_v55 = vor.u32 %v4375_v24, %v3879_v61  ;;  %v1105_v0 = vmax.f32 %v1030_v46, 0.0  ;;  %1651 = vmatpush.bf16.msra.mxu1 %v3938_v5  ;;  %v3866_v18 = vor.u32 %v4371_v7, %v3863_v34  ;;  %v4426_v7 = vld [vmem:[%s7511_s5 + $0x288] sm:$0xf0] }
 0x1f6   :  { %2152 = vmatpush.bf16.msra.mxu3 %v4086_v39  ;;  %v3930_v12 = vor.u32 %v4387_v10, %v3927_v19 }
 0x1f7   :  { %1561 = vmatpush.bf16.msra.mxu0 %v3882_v55  ;;  %v1132_v11 = vmax.f32 %v887_v36, 0.0 }
 0x1f8   :  { %v942_v54 = vpop.f32.mrf.mxu0 }
 0x1f9   :  { %v943_v47 = vadd.f32 %v942_v54, %v5648_v38  ;;  %v1031_v16 = vpop.f32.mrf.mxu1  ;;  %1652 = vmatpush.bf16.msra.mxu1 %v3930_v12 }
 0x1fa   :  { %v799_v37 = vpop.f32.mrf.mxu2 }
 0x1fb   :  { %v1032_v42 = vadd.f32 %v1031_v16, %v943_v47  ;;  %v800_v43 = vadd.f32 %v799_v37, %v5472_v20  ;;  %v888_v57 = vpop.f32.mrf.mxu3  ;;  %1562 = vmatpush.bf16.msra.mxu0 %v3874_v58 }
 0x1fd   :  { %v1107_v21 = vmax.f32 %v1032_v42, 0.0  ;;  %v889_v22 = vadd.f32 %v888_v57, %v800_v43  ;;  %v4013_v42 = vld [vmem:[%s7511_s5 + $0xb0] sm:$0xf]  ;;  %v4410_v43 = vld [vmem:[%s7511_s5 + $0xc8] sm:$0xf0] }
 0x1fe   :  { %v4014_v58 = vor.u32 %v4410_v43, %v4013_v42  ;;  %v5887_v42 = vld [vmem:[%s7514_s6] sm:$0x3] }
 0x1ff   :  { %v5833_v14 = vpack.c.bf16 %v1107_v21, %v1105_v0  ;;  %v1134_v15 = vmax.f32 %v889_v22, 0.0  ;;  %1411 = vmatmul.bf16.gmra.mxu2 %v5605_v59  ;;  %1563 = vmatpush.bf16.msra.mxu0 %v3866_v18  ;;  %v4077_v22 = vld [vmem:[%s7511_s5 + $0x270] sm:$0xf] }
 0x200   :  { %v945_v1 = vpop.f32.mrf.mxu0  ;;  %2064 = vmatpush.bf16.msra.mxu2 %v4014_v58  ;;  %v4078_v34 = vor.u32 %v4426_v7, %v4077_v22 }
 0x201   :  { %v5839_v25 = vpack.c.bf16 %v1134_v15, %v1132_v11  ;;  %v1034_v29 = vpop.f32.mrf.mxu1  ;;  %1500 = vmatmul.bf16.gmra.mxu3 %v5833_v14  ;;  %v946_v60 = vadd.f32 %v945_v1, %v5648_v38 }
 0x202   :  { %v802_v30 = vpop.f32.mrf.mxu2  ;;  %2153 = vmatpush.bf16.msra.mxu3 %v4078_v34 }
 0x203   :  { %v803_v33 = vadd.f32 %v802_v30, %v5472_v20  ;;  %v891_v36 = vpop.f32.mrf.mxu3  ;;  %984 = vmatmul.bf16.gmra.mxu0 %v5599_v50  ;;  %v1035_v24 = vadd.f32 %v1034_v29, %v946_v60 }
 0x204   :  { %1073 = vmatmul.bf16.gmra.mxu1 %v5601_v51 }
 0x205   :  { %v892_v23 = vadd.f32 %v891_v36, %v803_v33  ;;  %v1109_v46 = vmax.f32 %v1035_v24, 0.0 }
 0x207   :  { %v1136_v37 = vmax.f32 %v892_v23, 0.0 }
 0x208   :  { %v947_v39 = vpop.f32.mrf.mxu0 }
 0x209   :  { %v948_v61 = vadd.f32 %v947_v39, %v5648_v38  ;;  %v1036_v27 = vpop.f32.mrf.mxu1 }
 0x20a   :  { %v804_v55 = vpop.f32.mrf.mxu2 }
 0x20b   :  { %v1037_v53 = vadd.f32 %v1036_v27, %v948_v61  ;;  %v805_v54 = vadd.f32 %v804_v55, %v5472_v20  ;;  %v893_v44 = vpop.f32.mrf.mxu3 }
 0x20d   :  { %v1111_v47 = vmax.f32 %v1037_v53, 0.0  ;;  %v894_v16 = vadd.f32 %v893_v44, %v805_v54 }
 0x20f   :  { %v5848_v50 = vpack.c.bf16 %v1111_v47, %v1109_v46  ;;  %v1138_v51 = vmax.f32 %v894_v16, 0.0  ;;  %1416 = vmatmul.bf16.gmra.mxu2 %v5645_v40 }
 0x210   :  { %v950_v17 = vpop.f32.mrf.mxu0 }
 0x211   :  { %v5851_v41 = vpack.c.bf16 %v1138_v51, %v1136_v37  ;;  %v1039_v52 = vpop.f32.mrf.mxu1  ;;  %1505 = vmatmul.bf16.gmra.mxu3 %v5848_v50  ;;  %v951_v0 = vadd.f32 %v950_v17, %v5648_v38 }
 0x212   :  { %v807_v57 = vpop.f32.mrf.mxu2 }
 0x213   :  { %v808_v4 = vadd.f32 %v807_v57, %v5472_v20  ;;  %v896_v5 = vpop.f32.mrf.mxu3  ;;  %989 = vmatmul.bf16.gmra.mxu0 %v5639_v48  ;;  %v1040_v11 = vadd.f32 %v1039_v52, %v951_v0 }
 0x214   :  { %1078 = vmatmul.bf16.gmra.mxu1 %v5641_v49 }
 0x215   :  { %v897_v21 = vadd.f32 %v896_v5, %v808_v4  ;;  %v1113_v12 = vmax.f32 %v1040_v11, 0.0 }
 0x217   :  { %v1140_v33 = vmax.f32 %v897_v21, 0.0  ;;  %v5893_v21 = vperm.slane %v5887_v42, 0 }
 0x218   :  { %v952_v10 = vpop.f32.mrf.mxu0 }
 0x219   :  { %v953_v48 = vadd.f32 %v952_v10, %v5648_v38  ;;  %v1041_v15 = vpop.f32.mrf.mxu1 }
 0x21a   :  { %v809_v49 = vpop.f32.mrf.mxu2 }
 0x21b   :  { %v1042_v18 = vadd.f32 %v1041_v15, %v953_v48  ;;  %v810_v19 = vadd.f32 %v809_v49, %v5472_v20  ;;  %v898_v1 = vpop.f32.mrf.mxu3  ;;  %v4005_v49 = vld [vmem:[%s7511_s5 + $0x78] sm:$0xf] }
 0x21d   :  { %v1115_v29 = vmax.f32 %v1042_v18, 0.0  ;;  %v899_v30 = vadd.f32 %v898_v1, %v810_v19  ;;  %v4408_v18 = vld [vmem:[%s7511_s5 + $0x90] sm:$0xf0]  ;;  %v4069_v19 = vld [vmem:[%s7511_s5 + $0x238] sm:$0xf] }
 0x21e   :  { %v4006_v1 = vor.u32 %v4408_v18, %v4005_v49 }
 0x21f   :  { %v5872_v36 = vpack.c.bf16 %v1115_v29, %v1113_v12  ;;  %v1142_v60 = vmax.f32 %v899_v30, 0.0  ;;  %1421 = vmatmul.bf16.gmra.mxu2 %v5659_v2  ;;  %v4424_v12 = vld [vmem:[%s7511_s5 + $0x250] sm:$0xf0] }
 0x220   :  { %v955_v23 = vpop.f32.mrf.mxu0  ;;  %v4070_v30 = vor.u32 %v4424_v12, %v4069_v19  ;;  %2065 = vmatpush.bf16.msra.mxu2 %v4006_v1 }
 0x221   :  { %v5875_v39 = vpack.c.bf16 %v1142_v60, %v1140_v33  ;;  %v1044_v24 = vpop.f32.mrf.mxu1  ;;  %1510 = vmatmul.bf16.gmra.mxu3 %v5872_v36  ;;  %v956_v53 = vadd.f32 %v955_v23, %v5648_v38 }
 0x222   :  { %v812_v61 = vpop.f32.mrf.mxu2  ;;  %2154 = vmatpush.bf16.msra.mxu3 %v4070_v30 }
 0x223   :  { %v813_v27 = vadd.f32 %v812_v61, %v5472_v20  ;;  %v901_v55 = vpop.f32.mrf.mxu3  ;;  %1564 = vmatmul.bf16.vlgmr.msra.gmra.mxu0 %v5501_v62  ;;  %v1045_v46 = vadd.f32 %v1044_v24, %v956_v53 }
 0x224   :  { %1653 = vmatmul.bf16.vlgmr.msra.gmra.mxu1 %v5656_v35 }
 0x225   :  { %v902_v54 = vadd.f32 %v901_v55, %v813_v27  ;;  %v1117_v43 = vmax.f32 %v1045_v46, 0.0 }
 0x227   :  { %v1144_v4 = vmax.f32 %v902_v54, 0.0 }
 0x228   :  { %v957_v44 = vpop.f32.mrf.mxu0 }
 0x229   :  { %v958_v47 = vadd.f32 %v957_v44, %v5648_v38  ;;  %v1046_v16 = vpop.f32.mrf.mxu1 }
 0x22a   :  { %v814_v37 = vpop.f32.mrf.mxu2 }
 0x22b   :  { %v1047_v51 = vadd.f32 %v1046_v16, %v958_v47  ;;  %v815_v17 = vadd.f32 %v814_v37, %v5472_v20  ;;  %v903_v52 = vpop.f32.mrf.mxu3 }
 0x22d   :  { %v1119_v57 = vmax.f32 %v1047_v51, 0.0  ;;  %v904_v58 = vadd.f32 %v903_v52, %v815_v17 }
 0x22f   :  { %v5889_v5 = vpack.c.bf16 %v1119_v57, %v1117_v43  ;;  %v1146_v0 = vmax.f32 %v904_v58, 0.0  ;;  %1426 = vmatmul.bf16.gmra.mxu2 %v5695_v8 }
 0x230   :  { %v960_v22 = vpop.f32.mrf.mxu0 }
 0x231   :  { %v5895_v20 = vpack.c.bf16 %v1146_v0, %v1144_v4  ;;  %v1049_v7 = vpop.f32.mrf.mxu1  ;;  %1515 = vmatmul.bf16.gmra.mxu3 %v5889_v5  ;;  %v961_v48 = vadd.f32 %v960_v22, %v5648_v38 }
 0x232   :  { %v1387_v34 = vpop.f32.mrf.mxu2 }
 0x233   :  { %v1388_v10 = vadd.f32 %v1387_v34, %v5893_v21  ;;  %1569 = vmatmul.bf16.gmra.mxu0 %v5517_v31  ;;  %v1050_v33 = vadd.f32 %v1049_v7, %v961_v48 }
 0x234   :  { %1658 = vmatmul.bf16.gmra.mxu1 %v5692_v6  ;;  %v1476_v11 = vpop.f32.mrf.mxu3 }
 0x235   :  { %v1477_v15 = vadd.f32 %v1476_v11, %v1388_v10  ;;  %v1121_v54 = vmax.f32 %v1050_v33, 0.0 }
 0x237   :  { %4483 = vtanh.f32 %v1477_v15 }
 0x238   :  { %v962_v29 = vpop.f32.mrf.mxu0 }
 0x239   :  { %v963_v60 = vadd.f32 %v962_v29, %v5648_v38  ;;  %v1051_v23 = vpop.f32.mrf.mxu1 }
 0x23a   :  { %v1389_v24 = vpop.f32.mrf.mxu2 }
 0x23b   :  { %v1052_v61 = vadd.f32 %v1051_v23, %v963_v60  ;;  %v1390_v27 = vadd.f32 %v1389_v24, %v5893_v21 }
 0x23c   :  { %v1478_v55 = vpop.f32.mrf.mxu3 }
 0x23d   :  { %v4484_v53 = vpop.eup %4483  ;;  %v1123_v44 = vmax.f32 %v1052_v61, 0.0  ;;  %v1479_v46 = vadd.f32 %v1478_v55, %v1390_v27  ;;  %v3997_v27 = vld [vmem:[%s7511_s5 + $0x40] sm:$0xf]  ;;  %v4406_v55 = vld [vmem:[%s7511_s5 + $0x58] sm:$0xf0] }
 0x23e   :  { %1798 = vst [vmem:[%s7515_s7] sm:$0xff] %v4484_v53  ;;  %v3998_v53 = vor.u32 %v4406_v55, %v3997_v27 }
 0x23f   :  { %v5919_v47 = vpack.c.bf16 %v1123_v44, %v1121_v54  ;;  %4485 = vtanh.f32 %v1479_v46  ;;  %1431 = vmatmul.bf16.gmra.mxu2 %v5707_v56  ;;  %v4061_v54 = vld [vmem:[%s7511_s5 + $0x200] sm:$0xf]  ;;  %v4422_v44 = vld [vmem:[%s7511_s5 + $0x218] sm:$0xf0] }
 0x240   :  { %v965_v16 = vpop.f32.mrf.mxu0  ;;  %2066 = vmatpush.bf16.msra.mxu2 %v3998_v53 }
 0x241   :  { %v1054_v37 = vpop.f32.mrf.mxu1  ;;  %1520 = vmatmul.bf16.gmra.mxu3 %v5919_v47  ;;  %v966_v57 = vadd.f32 %v965_v16, %v5648_v38  ;;  %v4062_v16 = vor.u32 %v4422_v44, %v4061_v54 }
 0x242   :  { %v1392_v51 = vpop.f32.mrf.mxu2 }
 0x243   :  { %v1393_v17 = vadd.f32 %v1392_v51, %v5893_v21  ;;  %1574 = vmatmul.bf16.gmra.mxu0 %v5545_v9  ;;  %v1055_v0 = vadd.f32 %v1054_v37, %v966_v57  ;;  %2155 = vmatpush.bf16.msra.mxu3 %v4062_v16 }
 0x244   :  { %1663 = vmatmul.bf16.gmra.mxu1 %v5704_v26  ;;  %v1481_v52 = vpop.f32.mrf.mxu3 }
 0x245   :  { %v4486_v43 = vpop.eup %4485  ;;  %v1482_v58 = vadd.f32 %v1481_v52, %v1393_v17  ;;  %v1125_v49 = vmax.f32 %v1055_v0, 0.0 }
 0x246   :  { %1800 = vst [vmem:[%s7515_s7 + $0x38] sm:$0xff] %v4486_v43 }
 0x247   :  { %4487 = vtanh.f32 %v1482_v58 }
 0x248   :  { %v967_v4 = vpop.f32.mrf.mxu0 }
 0x249   :  { %v968_v22 = vadd.f32 %v967_v4, %v5648_v38  ;;  %v1056_v7 = vpop.f32.mrf.mxu1 }
 0x24a   :  { %v1394_v34 = vpop.f32.mrf.mxu2 }
 0x24b   :  { %v1057_v10 = vadd.f32 %v1056_v7, %v968_v22  ;;  %v1395_v11 = vadd.f32 %v1394_v34, %v5893_v21 }
 0x24c   :  { %v1483_v48 = vpop.f32.mrf.mxu3 }
 0x24d   :  { %v4488_v15 = vpop.eup %4487  ;;  %v1127_v18 = vmax.f32 %v1057_v10, 0.0  ;;  %v1484_v19 = vadd.f32 %v1483_v48, %v1395_v11 }
 0x24e   :  { %1802 = vst [vmem:[%s7515_s7 + $0x70] sm:$0xff] %v4488_v15 }
 0x24f   :  { %v5935_v1 = vpack.c.bf16 %v1127_v18, %v1125_v49  ;;  %4489 = vtanh.f32 %v1484_v19  ;;  %1436 = vmatmul.bf16.gmra.mxu2 %v5743_v32 }
 0x250   :  { %v970_v12 = vpop.f32.mrf.mxu0 }
 0x251   :  { %v1059_v29 = vpop.f32.mrf.mxu1  ;;  %1525 = vmatmul.bf16.gmra.mxu3 %v5935_v1  ;;  %v971_v24 = vadd.f32 %v970_v12, %v5648_v38 }
 0x252   :  { %v1397_v30 = vpop.f32.mrf.mxu2 }
 0x253   :  { %v1398_v33 = vadd.f32 %v1397_v30, %v5893_v21  ;;  %1579 = vmatmul.bf16.gmra.mxu0 %v5561_v45  ;;  %v1060_v37 = vadd.f32 %v1059_v29, %v971_v24 }
 0x254   :  { %1668 = vmatmul.bf16.gmra.mxu1 %v5740_v13  ;;  %v1486_v60 = vpop.f32.mrf.mxu3 }
 0x255   :  { %v4490_v23 = vpop.eup %4489  ;;  %v1487_v61 = vadd.f32 %v1486_v60, %v1398_v33  ;;  %v1129_v0 = vmax.f32 %v1060_v37, 0.0 }
 0x256   :  { %1804 = vst [vmem:[%s7515_s7 + $0xa8] sm:$0xff] %v4490_v23 }
 0x257   :  { %4491 = vtanh.f32 %v1487_v61 }
 0x258   :  { %v972_v46 = vpop.f32.mrf.mxu0 }
 0x259   :  { %v973_v51 = vadd.f32 %v972_v46, %v5648_v38  ;;  %v1061_v17 = vpop.f32.mrf.mxu1 }
 0x25a   :  { %v1399_v52 = vpop.f32.mrf.mxu2 }
 0x25b   :  { %v1062_v43 = vadd.f32 %v1061_v17, %v973_v51  ;;  %v1400_v57 = vadd.f32 %v1399_v52, %v5893_v21 }
 0x25c   :  { %v1488_v58 = vpop.f32.mrf.mxu3 }
 0x25d   :  { %v4492_v4 = vpop.eup %4491  ;;  %v1131_v22 = vmax.f32 %v1062_v43, 0.0  ;;  %v1489_v7 = vadd.f32 %v1488_v58, %v1400_v57 }
 0x25e   :  { %1806 = vst [vmem:[%s7515_s7 + $0xe0] sm:$0xff] %v4492_v4  ;;  %v3989_v4 = vld [vmem:[%s7511_s5 + $0x8] sm:$0xf] }
 0x25f   :  { %v5963_v34 = vpack.c.bf16 %v1131_v22, %v1129_v0  ;;  %4493 = vtanh.f32 %v1489_v7  ;;  %1441 = vmatmul.bf16.gmra.mxu2 %v5767_v3  ;;  %v4404_v0 = vld [vmem:[%s7511_s5 + $0x20] sm:$0xf0]  ;;  %v4053_v7 = vld [vmem:[%s7511_s5 + $0x1c8] sm:$0xf] }
 0x260   :  { %v975_v10 = vpop.f32.mrf.mxu0  ;;  %v3990_v22 = vor.u32 %v4404_v0, %v3989_v4 }
 0x261   :  { %v1064_v11 = vpop.f32.mrf.mxu1  ;;  %1530 = vmatmul.bf16.gmra.mxu3 %v5963_v34  ;;  %v976_v19 = vadd.f32 %v975_v10, %v5648_v38  ;;  %v4420_v10 = vld [vmem:[%s7511_s5 + $0x1e0] sm:$0xf0] }
 0x262   :  { %v1402_v48 = vpop.f32.mrf.mxu2  ;;  %2067 = vmatpush.bf16.msra.mxu2 %v3990_v22 }
 0x263   :  { %v1403_v15 = vadd.f32 %v1402_v48, %v5893_v21  ;;  %1584 = vmatmul.bf16.gmra.mxu0 %v5589_v28  ;;  %v1065_v30 = vadd.f32 %v1064_v11, %v976_v19  ;;  %v4054_v48 = vor.u32 %v4420_v10, %v4053_v7 }
 0x264   :  { %1673 = vmatmul.bf16.gmra.mxu1 %v5761_v63  ;;  %v1491_v49 = vpop.f32.mrf.mxu3 }
 0x265   :  { %v4494_v18 = vpop.eup %4493  ;;  %v1492_v12 = vadd.f32 %v1491_v49, %v1403_v15  ;;  %v1133_v53 = vmax.f32 %v1065_v30, 0.0  ;;  %2156 = vmatpush.bf16.msra.mxu3 %v4054_v48 }
 0x266   :  { %1808 = vst [vmem:[%s7515_s7 + $0x118] sm:$0xff] %v4494_v18 }
 0x267   :  { %4495 = vtanh.f32 %v1492_v12 }
 0x268   :  { %v977_v29 = vpop.f32.mrf.mxu0 }
 0x269   :  { %v978_v33 = vadd.f32 %v977_v29, %v5648_v38  ;;  %v1066_v60 = vpop.f32.mrf.mxu1 }
 0x26a   :  { %v1404_v23 = vpop.f32.mrf.mxu2 }
 0x26b   :  { %v1067_v24 = vadd.f32 %v1066_v60, %v978_v33  ;;  %v1405_v61 = vadd.f32 %v1404_v23, %v5893_v21 }
 0x26c   :  { %v1493_v27 = vpop.f32.mrf.mxu3 }
 0x26d   :  { %v4496_v55 = vpop.eup %4495  ;;  %v1135_v54 = vmax.f32 %v1067_v24, 0.0  ;;  %v1494_v44 = vadd.f32 %v1493_v27, %v1405_v61 }
 0x26e   :  { %1810 = vst [vmem:[%s7515_s7 + $0x150] sm:$0xff] %v4496_v55 }
 0x26f   :  { %v5979_v46 = vpack.c.bf16 %v1135_v54, %v1133_v53  ;;  %4497 = vtanh.f32 %v1494_v44  ;;  %1446 = vmatmul.bf16.gmra.mxu2 %v5839_v25 }
 0x270   :  { %v980_v16 = vpop.f32.mrf.mxu0 }
 0x271   :  { %v1069_v37 = vpop.f32.mrf.mxu1  ;;  %1535 = vmatmul.bf16.gmra.mxu3 %v5979_v46  ;;  %v981_v57 = vadd.f32 %v980_v16, %v5648_v38 }
 0x272   :  { %v1407_v51 = vpop.f32.mrf.mxu2 }
 0x273   :  { %v1408_v17 = vadd.f32 %v1407_v51, %v5893_v21  ;;  %1589 = vmatmul.bf16.gmra.mxu0 %v5605_v59  ;;  %v1070_v15 = vadd.f32 %v1069_v37, %v981_v57 }
 0x274   :  { %1678 = vmatmul.bf16.gmra.mxu1 %v5833_v14  ;;  %v1496_v52 = vpop.f32.mrf.mxu3 }
 0x275   :  { %v4498_v43 = vpop.eup %4497  ;;  %v1497_v58 = vadd.f32 %v1496_v52, %v1408_v17  ;;  %v1137_v60 = vmax.f32 %v1070_v15, 0.0 }
 0x276   :  { %1812 = vst [vmem:[%s7515_s7 + $0x188] sm:$0xff] %v4498_v43 }
 0x277   :  { %4499 = vtanh.f32 %v1497_v58 }
 0x278   :  { %v982_v11 = vpop.f32.mrf.mxu0 }
 0x279   :  { %v983_v49 = vadd.f32 %v982_v11, %v5648_v38  ;;  %v1071_v18 = vpop.f32.mrf.mxu1 }
 0x27a   :  { %v1409_v19 = vpop.f32.mrf.mxu2 }
 0x27b   :  { %v1072_v12 = vadd.f32 %v1071_v18, %v983_v49  ;;  %v1410_v29 = vadd.f32 %v1409_v19, %v5893_v21 }
 0x27c   :  { %v1498_v30 = vpop.f32.mrf.mxu3 }
 0x27d   :  { %v4500_v33 = vpop.eup %4499  ;;  %v1139_v23 = vmax.f32 %v1072_v12, 0.0  ;;  %v1499_v24 = vadd.f32 %v1498_v30, %v1410_v29 }
 0x27e   :  { %1814 = vst [vmem:[%s7515_s7 + $0x1c0] sm:$0xff] %v4500_v33 }
 0x27f   :  { %v6007_v61 = vpack.c.bf16 %v1139_v23, %v1137_v60  ;;  %4501 = vtanh.f32 %v1499_v24  ;;  %1451 = vmatmul.bf16.gmra.mxu2 %v5851_v41  ;;  %v4201_v23 = vld [vmem:[%s7511_s5 + $0x198] sm:$0xf]  ;;  %v4457_v24 = vld [vmem:[%s7511_s5 + $0x1b0] sm:$0xf0] }
 0x280   :  { %v985_v27 = vpop.f32.mrf.mxu0 }
 0x281   :  { %v1074_v55 = vpop.f32.mrf.mxu1  ;;  %1540 = vmatmul.bf16.gmra.mxu3 %v6007_v61  ;;  %v986_v37 = vadd.f32 %v985_v27, %v5648_v38  ;;  %v4202_v27 = vor.u32 %v4457_v24, %v4201_v23 }
 0x282   :  { %v1412_v53 = vpop.f32.mrf.mxu2 }
 0x283   :  { %v1413_v54 = vadd.f32 %v1412_v53, %v5893_v21  ;;  %1594 = vmatmul.bf16.gmra.mxu0 %v5645_v40  ;;  %v1075_v52 = vadd.f32 %v1074_v55, %v986_v37  ;;  %2872 = vmatpush.bf16.msrb.mxu2 %v4202_v27 }
 0x284   :  { %1683 = vmatmul.bf16.gmra.mxu1 %v5848_v50  ;;  %v1501_v44 = vpop.f32.mrf.mxu3 }
 0x285   :  { %v4502_v16 = vpop.eup %4501  ;;  %v1502_v51 = vadd.f32 %v1501_v44, %v1413_v54  ;;  %v1141_v10 = vmax.f32 %v1075_v52, 0.0  ;;  %v6043_v52 = vperm.slane %v5887_v42, 1  ;;  %v4417_v42 = vld [vmem:[%s7511_s5 + $0x194] sm:$0xf] }
 0x286   :  { %1816 = vst [vmem:[%s7515_s7 + $0x1f8] sm:$0xff] %v4502_v16 }
 0x287   :  { %4503 = vtanh.f32 %v1502_v51 }
 0x288   :  { %v987_v17 = vpop.f32.mrf.mxu0 }
 0x289   :  { %v988_v43 = vadd.f32 %v987_v17, %v5648_v38  ;;  %v1076_v57 = vpop.f32.mrf.mxu1 }
 0x28a   :  { %v1414_v58 = vpop.f32.mrf.mxu2 }
 0x28b   :  { %v1077_v4 = vadd.f32 %v1076_v57, %v988_v43  ;;  %v1415_v0 = vadd.f32 %v1414_v58, %v5893_v21  ;;  %v4297_v43 = vld [vmem:[%s7511_s5 + $0x358] sm:$0xf]  ;;  %v4481_v57 = vld [vmem:[%s7511_s5 + $0x370] sm:$0xf0] }
 0x28c   :  { %v1503_v22 = vpop.f32.mrf.mxu3 }
 0x28d   :  { %v4504_v7 = vpop.eup %4503  ;;  %v1143_v11 = vmax.f32 %v1077_v4, 0.0  ;;  %v1504_v48 = vadd.f32 %v1503_v22, %v1415_v0  ;;  %v4298_v22 = vor.u32 %v4481_v57, %v4297_v43 }
 0x28e   :  { %1818 = vst [vmem:[%s7515_s7 + $0x230] sm:$0xff] %v4504_v7  ;;  %v4047_v7 = vld [vmem:[%s7511_s5 + $0x1ac] sm:$0xf0] }
 0x28f   :  { %v6023_v15 = vpack.c.bf16 %v1143_v11, %v1141_v10  ;;  %4505 = vtanh.f32 %v1504_v48  ;;  %1456 = vmatmul.bf16.gmra.mxu2 %v5875_v39  ;;  %2961 = vmatpush.bf16.msrb.mxu3 %v4298_v22  ;;  %v4050_v11 = vor.u32 %v4417_v42, %v4047_v7  ;;  %v4433_v48 = vld [vmem:[%s7511_s5 + $0x354] sm:$0xf] }
 0x290   :  { %v990_v49 = vpop.f32.mrf.mxu0 }
 0x291   :  { %v1079_v18 = vpop.f32.mrf.mxu1  ;;  %1545 = vmatmul.bf16.gmra.mxu3 %v6023_v15  ;;  %v991_v33 = vadd.f32 %v990_v49, %v5648_v38  ;;  %v4111_v49 = vld [vmem:[%s7511_s5 + $0x36c] sm:$0xf0]  ;;  %2238 = vmatpush.bf16.msrb.mxu0 %v4050_v11 }
 0x292   :  { %v1417_v19 = vpop.f32.mrf.mxu2 }
 0x293   :  { %v1418_v12 = vadd.f32 %v1417_v19, %v5893_v21  ;;  %1599 = vmatmul.bf16.gmra.mxu0 %v5659_v2  ;;  %v1080_v53 = vadd.f32 %v1079_v18, %v991_v33  ;;  %v4114_v19 = vor.u32 %v4433_v48, %v4111_v49 }
 0x294   :  { %1688 = vmatmul.bf16.gmra.mxu1 %v5872_v36  ;;  %v1506_v29 = vpop.f32.mrf.mxu3 }
 0x295   :  { %v4506_v30 = vpop.eup %4505  ;;  %v1507_v60 = vadd.f32 %v1506_v29, %v1418_v12  ;;  %2327 = vmatpush.bf16.msrb.mxu1 %v4114_v19  ;;  %v4454_v19 = vld [vmem:[%s7511_s5 + $0x178] sm:$0xf0] }
 0x296   :  { %1820 = vst [vmem:[%s7515_s7 + $0x268] sm:$0xff] %v4506_v30 }
 0x297   :  { %4507 = vtanh.f32 %v1507_v60 }
 0x298   :  { %v992_v55 = vpop.f32.mrf.mxu0 }
 0x299   :  { %v993_v54 = vadd.f32 %v992_v55, %v5648_v38  ;;  %v1081_v44 = vpop.f32.mrf.mxu1  ;;  %v1145_v38 = vmax.f32 %v1080_v53, 0.0 }
 0x29a   :  { %v1419_v16 = vpop.f32.mrf.mxu2 }
 0x29b   :  { %v1082_v37 = vadd.f32 %v1081_v44, %v993_v54  ;;  %v1420_v51 = vadd.f32 %v1419_v16, %v5893_v21 }
 0x29c   :  { %v1508_v17 = vpop.f32.mrf.mxu3 }
 0x29d   :  { %v4508_v58 = vpop.eup %4507  ;;  %v1147_v4 = vmax.f32 %v1082_v37, 0.0  ;;  %v1509_v0 = vadd.f32 %v1508_v17, %v1420_v51 }
 0x29e   :  { %1822 = vst [vmem:[%s7515_s7 + $0x2a0] sm:$0xff] %v4508_v58 }
 0x29f   :  { %v6060_v10 = vpack.c.bf16 %v1147_v4, %v1145_v38  ;;  %4509 = vtanh.f32 %v1509_v0  ;;  %1461 = vmatmul.bf16.gmra.mxu2 %v5895_v20 }
 0x2a0   :  { %v1565_v18 = vpop.f32.mrf.mxu0 }
 0x2a1   :  { %v1566_v12 = vadd.f32 %v1565_v18, %v6043_v52  ;;  %v1654_v29 = vpop.f32.mrf.mxu1  ;;  %1550 = vmatmul.bf16.gmra.mxu3 %v6060_v10  ;;  %v4189_v18 = vld [vmem:[%s7511_s5 + $0x160] sm:$0xf] }
 0x2a2   :  { %v1422_v30 = vpop.f32.mrf.mxu2 }
 0x2a3   :  { %v1655_v33 = vadd.f32 %v1654_v29, %v1566_v12  ;;  %v1423_v60 = vadd.f32 %v1422_v30, %v5893_v21  ;;  %1604 = vmatmul.bf16.gmra.mxu0 %v5695_v8  ;;  %v4190_v12 = vor.u32 %v4454_v19, %v4189_v18 }
 0x2a4   :  { %1693 = vmatmul.bf16.gmra.mxu1 %v5889_v5  ;;  %v1511_v23 = vpop.f32.mrf.mxu3 }
 0x2a5   :  { %v4510_v24 = vpop.eup %4509  ;;  %4511 = vtanh.f32 %v1655_v33  ;;  %v1512_v27 = vadd.f32 %v1511_v23, %v1423_v60  ;;  %2873 = vmatpush.bf16.msrb.mxu2 %v4190_v12 }
 0x2a6   :  { %1824 = vst [vmem:[%s7515_s7 + $0x2d8] sm:$0xff] %v4510_v24 }
 0x2a7   :  { %4513 = vtanh.f32 %v1512_v27 }
 0x2a8   :  { %v1567_v55 = vpop.f32.mrf.mxu0 }
 0x2a9   :  { %v1568_v53 = vadd.f32 %v1567_v55, %v6043_v52  ;;  %v1656_v54 = vpop.f32.mrf.mxu1 }
 0x2aa   :  { %v1424_v44 = vpop.f32.mrf.mxu2 }
 0x2ab   :  { %v4512_v16 = vpop.eup %4511  ;;  %v1657_v37 = vadd.f32 %v1656_v54, %v1568_v53  ;;  %v1425_v51 = vadd.f32 %v1424_v44, %v5893_v21  ;;  %v4285_v53 = vld [vmem:[%s7511_s5 + $0x320] sm:$0xf]  ;;  %v4478_v54 = vld [vmem:[%s7511_s5 + $0x338] sm:$0xf0] }
 0x2ac   :  { %1799 = vst [vmem:[%s7515_s7 + $0x8] sm:$0xff] %v4512_v16  ;;  %v1513_v17 = vpop.f32.mrf.mxu3 }
 0x2ad   :  { %v4514_v43 = vpop.eup %4513  ;;  %4515 = vtanh.f32 %v1657_v37  ;;  %v1514_v57 = vadd.f32 %v1513_v17, %v1425_v51  ;;  %v4286_v37 = vor.u32 %v4478_v54, %v4285_v53  ;;  %v4415_v51 = vld [vmem:[%s7511_s5 + $0x15c] sm:$0xf]  ;;  %v4039_v17 = vld [vmem:[%s7511_s5 + $0x174] sm:$0xf0] }
 0x2ae   :  { %1826 = vst [vmem:[%s7515_s7 + $0x310] sm:$0xff] %v4514_v43  ;;  %v4042_v43 = vor.u32 %v4415_v51, %v4039_v17 }
 0x2af   :  { %4517 = vtanh.f32 %v1514_v57  ;;  %2068 = vmatmul.bf16.vlgmr.msra.gmra.mxu2 %v5501_v62  ;;  %2962 = vmatpush.bf16.msrb.mxu3 %v4286_v37  ;;  %v4431_v57 = vld [vmem:[%s7511_s5 + $0x31c] sm:$0xf] }
 0x2b0   :  { %v1570_v58 = vpop.f32.mrf.mxu0  ;;  %2239 = vmatpush.bf16.msrb.mxu0 %v4042_v43 }
 0x2b1   :  { %v1571_v38 = vadd.f32 %v1570_v58, %v6043_v52  ;;  %v1659_v4 = vpop.f32.mrf.mxu1  ;;  %2157 = vmatmul.bf16.vlgmr.msra.gmra.mxu3 %v5656_v35  ;;  %v4103_v58 = vld [vmem:[%s7511_s5 + $0x334] sm:$0xf0] }
 0x2b2   :  { %v1427_v0 = vpop.f32.mrf.mxu2 }
 0x2b3   :  { %v4516_v22 = vpop.eup %4515  ;;  %v1660_v42 = vadd.f32 %v1659_v4, %v1571_v38  ;;  %v1428_v7 = vadd.f32 %v1427_v0, %v5893_v21  ;;  %1609 = vmatmul.bf16.gmra.mxu0 %v5707_v56  ;;  %v4106_v4 = vor.u32 %v4431_v57, %v4103_v58 }
 0x2b4   :  { %1801 = vst [vmem:[%s7515_s7 + $0x40] sm:$0xff] %v4516_v22  ;;  %1698 = vmatmul.bf16.gmra.mxu1 %v5919_v47  ;;  %v1516_v11 = vpop.f32.mrf.mxu3 }
 0x2b5   :  { %v4518_v48 = vpop.eup %4517  ;;  %4519 = vtanh.f32 %v1660_v42  ;;  %v1517_v49 = vadd.f32 %v1516_v11, %v1428_v7  ;;  %2328 = vmatpush.bf16.msrb.mxu1 %v4106_v4  ;;  %v4177_v4 = vld [vmem:[%s7511_s5 + $0x128] sm:$0xf] }
 0x2b6   :  { %1828 = vst [vmem:[%s7515_s7 + $0x348] sm:$0xff] %v4518_v48 }
 0x2b7   :  { %4521 = vtanh.f32 %v1517_v49 }
 0x2b8   :  { %v1572_v29 = vpop.f32.mrf.mxu0 }
 0x2b9   :  { %v1573_v30 = vadd.f32 %v1572_v29, %v6043_v52  ;;  %v1661_v33 = vpop.f32.mrf.mxu1 }
 0x2ba   :  { %v1429_v60 = vpop.f32.mrf.mxu2 }
 0x2bb   :  { %v4520_v23 = vpop.eup %4519  ;;  %v1662_v24 = vadd.f32 %v1661_v33, %v1573_v30  ;;  %v1430_v27 = vadd.f32 %v1429_v60, %v5893_v21 }
 0x2bc   :  { %1803 = vst [vmem:[%s7515_s7 + $0x78] sm:$0xff] %v4520_v23  ;;  %v1518_v55 = vpop.f32.mrf.mxu3 }
 0x2bd   :  { %v4522_v44 = vpop.eup %4521  ;;  %4523 = vtanh.f32 %v1662_v24  ;;  %v1519_v16 = vadd.f32 %v1518_v55, %v1430_v27 }
 0x2be   :  { %1830 = vst [vmem:[%s7515_s7 + $0x380] sm:$0xff] %v4522_v44 }
 0x2bf   :  { %4525 = vtanh.f32 %v1519_v16  ;;  %2073 = vmatmul.bf16.gmra.mxu2 %v5517_v31 }
 0x2c0   :  { %v1575_v38 = vpop.f32.mrf.mxu0 }
 0x2c1   :  { %v1576_v0 = vadd.f32 %v1575_v38, %v6043_v52  ;;  %v1664_v22 = vpop.f32.mrf.mxu1  ;;  %2162 = vmatmul.bf16.gmra.mxu3 %v5692_v6 }
 0x2c2   :  { %v1432_v42 = vpop.f32.mrf.mxu2 }
 0x2c3   :  { %v4524_v7 = vpop.eup %4523  ;;  %v1665_v11 = vadd.f32 %v1664_v22, %v1576_v0  ;;  %v1433_v48 = vadd.f32 %v1432_v42, %v5893_v21  ;;  %1614 = vmatmul.bf16.gmra.mxu0 %v5743_v32  ;;  %v4451_v0 = vld [vmem:[%s7511_s5 + $0x140] sm:$0xf0] }
 0x2c4   :  { %1805 = vst [vmem:[%s7515_s7 + $0xb0] sm:$0xff] %v4524_v7  ;;  %1703 = vmatmul.bf16.gmra.mxu1 %v5935_v1  ;;  %v1521_v49 = vpop.f32.mrf.mxu3  ;;  %v4178_v22 = vor.u32 %v4451_v0, %v4177_v4 }
 0x2c5   :  { %v4526_v18 = vpop.eup %4525  ;;  %4527 = vtanh.f32 %v1665_v11  ;;  %v1522_v19 = vadd.f32 %v1521_v49, %v1433_v48 }
 0x2c6   :  { %1832 = vst [vmem:[%s7515_s7 + $0x3b8] sm:$0xff] %v4526_v18  ;;  %2874 = vmatpush.bf16.msrb.mxu2 %v4178_v22 }
 0x2c7   :  { %4529 = vtanh.f32 %v1522_v19 }
 0x2c8   :  { %v1577_v12 = vpop.f32.mrf.mxu0 }
 0x2c9   :  { %v1578_v29 = vadd.f32 %v1577_v12, %v6043_v52  ;;  %v1666_v30 = vpop.f32.mrf.mxu1 }
 0x2ca   :  { %v1434_v33 = vpop.f32.mrf.mxu2 }
 0x2cb   :  { %v4528_v60 = vpop.eup %4527  ;;  %v1667_v23 = vadd.f32 %v1666_v30, %v1578_v29  ;;  %v1435_v24 = vadd.f32 %v1434_v33, %v5893_v21  ;;  %v4273_v29 = vld [vmem:[%s7511_s5 + $0x2e8] sm:$0xf]  ;;  %v4475_v30 = vld [vmem:[%s7511_s5 + $0x300] sm:$0xf0] }
 0x2cc   :  { %1807 = vst [vmem:[%s7515_s7 + $0xe8] sm:$0xff] %v4528_v60  ;;  %v1523_v27 = vpop.f32.mrf.mxu3 }
 0x2cd   :  { %v4530_v55 = vpop.eup %4529  ;;  %4531 = vtanh.f32 %v1667_v23  ;;  %v1524_v53 = vadd.f32 %v1523_v27, %v1435_v24  ;;  %v4274_v23 = vor.u32 %v4475_v30, %v4273_v29  ;;  %v4413_v24 = vld [vmem:[%s7511_s5 + $0x124] sm:$0xf]  ;;  %v4031_v27 = vld [vmem:[%s7511_s5 + $0x13c] sm:$0xf0]  ;;  %v4411_v30 = vld [vmem:[%s7511_s5 + $0xec] sm:$0xf] }
 0x2ce   :  { %1834 = vst [vmem:[%s7515_s7 + $0x3f0] sm:$0xff] %v4530_v55  ;;  %v4034_v55 = vor.u32 %v4413_v24, %v4031_v27  ;;  %v4087_v24 = vld [vmem:[%s7511_s5 + $0x2c4] sm:$0xf0] }
 0x2cf   :  { %4533 = vtanh.f32 %v1524_v53  ;;  %2078 = vmatmul.bf16.gmra.mxu2 %v5545_v9  ;;  %2963 = vmatpush.bf16.msrb.mxu3 %v4274_v23  ;;  %v4429_v53 = vld [vmem:[%s7511_s5 + $0x2e4] sm:$0xf]  ;;  %v4427_v23 = vld [vmem:[%s7511_s5 + $0x2ac] sm:$0xf] }
 0x2d0   :  { %v1580_v54 = vpop.f32.mrf.mxu0  ;;  %2240 = vmatpush.bf16.msrb.mxu0 %v4034_v55  ;;  %v4090_v55 = vor.u32 %v4427_v23, %v4087_v24 }
 0x2d1   :  { %v1581_v44 = vadd.f32 %v1580_v54, %v6043_v52  ;;  %v1669_v16 = vpop.f32.mrf.mxu1  ;;  %2167 = vmatmul.bf16.gmra.mxu3 %v5704_v26  ;;  %v4095_v54 = vld [vmem:[%s7511_s5 + $0x2fc] sm:$0xf0] }
 0x2d2   :  { %v1437_v37 = vpop.f32.mrf.mxu2 }
 0x2d3   :  { %v4532_v51 = vpop.eup %4531  ;;  %v1670_v17 = vadd.f32 %v1669_v16, %v1581_v44  ;;  %v1438_v43 = vadd.f32 %v1437_v37, %v5893_v21  ;;  %1619 = vmatmul.bf16.gmra.mxu0 %v5767_v3  ;;  %v4098_v16 = vor.u32 %v4429_v53, %v4095_v54 }
 0x2d4   :  { %1809 = vst [vmem:[%s7515_s7 + $0x120] sm:$0xff] %v4532_v51  ;;  %1708 = vmatmul.bf16.gmra.mxu1 %v5963_v34  ;;  %v1526_v57 = vpop.f32.mrf.mxu3 }
 0x2d5   :  { %v4534_v58 = vpop.eup %4533  ;;  %4535 = vtanh.f32 %v1670_v17  ;;  %v1527_v38 = vadd.f32 %v1526_v57, %v1438_v43  ;;  %2329 = vmatpush.bf16.msrb.mxu1 %v4098_v16  ;;  %v4409_v16 = vld [vmem:[%s7511_s5 + $0xb4] sm:$0xf] }
 0x2d6   :  { %1836 = vst [vmem:[%s7515_s7 + $0x428] sm:$0xff] %v4534_v58 }
 0x2d7   :  { %4537 = vtanh.f32 %v1527_v38 }
 0x2d8   :  { %v1582_v42 = vpop.f32.mrf.mxu0 }
 0x2d9   :  { %v1583_v7 = vadd.f32 %v1582_v42, %v6043_v52  ;;  %v1671_v11 = vpop.f32.mrf.mxu1  ;;  %2330 = vmatpush.bf16.msrb.mxu1 %v4090_v55  ;;  %v3999_v55 = vld [vmem:[%s7511_s5 + $0x5c] sm:$0xf0] }
 0x2da   :  { %v1439_v48 = vpop.f32.mrf.mxu2 }
 0x2db   :  { %v4536_v49 = vpop.eup %4535  ;;  %v1672_v18 = vadd.f32 %v1671_v11, %v1583_v7  ;;  %v1440_v19 = vadd.f32 %v1439_v48, %v5893_v21 }
 0x2dc   :  { %1811 = vst [vmem:[%s7515_s7 + $0x158] sm:$0xff] %v4536_v49  ;;  %v1528_v12 = vpop.f32.mrf.mxu3 }
 0x2dd   :  { %v4538_v33 = vpop.eup %4537  ;;  %4539 = vtanh.f32 %v1672_v18  ;;  %v1529_v60 = vadd.f32 %v1528_v12, %v1440_v19 }
 0x2de   :  { %1838 = vst [vmem:[%s7515_s7 + $0x460] sm:$0xff] %v4538_v33  ;;  %v4023_v33 = vld [vmem:[%s7511_s5 + $0x104] sm:$0xf0] }
 0x2df   :  { %4541 = vtanh.f32 %v1529_v60  ;;  %2083 = vmatmul.bf16.gmra.mxu2 %v5561_v45  ;;  %v4026_v60 = vor.u32 %v4411_v30, %v4023_v33  ;;  %v4071_v30 = vld [vmem:[%s7511_s5 + $0x254] sm:$0xf0] }
 0x2e0   :  { %v1585_v44 = vpop.f32.mrf.mxu0 }
 0x2e1   :  { %v1586_v37 = vadd.f32 %v1585_v44, %v6043_v52  ;;  %v1674_v51 = vpop.f32.mrf.mxu1  ;;  %2172 = vmatmul.bf16.gmra.mxu3 %v5740_v13  ;;  %2241 = vmatpush.bf16.msrb.mxu0 %v4026_v60 }
 0x2e2   :  { %v1442_v17 = vpop.f32.mrf.mxu2 }
 0x2e3   :  { %v4540_v43 = vpop.eup %4539  ;;  %v1675_v57 = vadd.f32 %v1674_v51, %v1586_v37  ;;  %v1443_v58 = vadd.f32 %v1442_v17, %v5893_v21  ;;  %1624 = vmatmul.bf16.gmra.mxu0 %v5839_v25  ;;  %v4015_v37 = vld [vmem:[%s7511_s5 + $0xcc] sm:$0xf0]  ;;  %v4425_v51 = vld [vmem:[%s7511_s5 + $0x274] sm:$0xf] }
 0x2e4   :  { %1813 = vst [vmem:[%s7515_s7 + $0x190] sm:$0xff] %v4540_v43  ;;  %1713 = vmatmul.bf16.gmra.mxu1 %v5979_v46  ;;  %v1531_v38 = vpop.f32.mrf.mxu3 }
 0x2e5   :  { %v4542_v4 = vpop.eup %4541  ;;  %4543 = vtanh.f32 %v1675_v57  ;;  %v1532_v0 = vadd.f32 %v1531_v38, %v1443_v58  ;;  %v4018_v58 = vor.u32 %v4409_v16, %v4015_v37  ;;  %v4079_v38 = vld [vmem:[%s7511_s5 + $0x28c] sm:$0xf0] }
 0x2e6   :  { %1840 = vst [vmem:[%s7515_s7 + $0x498] sm:$0xff] %v4542_v4 }
 0x2e7   :  { %4545 = vtanh.f32 %v1532_v0  ;;  %v4082_v0 = vor.u32 %v4425_v51, %v4079_v38  ;;  %2242 = vmatpush.bf16.msrb.mxu0 %v4018_v58  ;;  %v4063_v51 = vld [vmem:[%s7511_s5 + $0x21c] sm:$0xf0] }
 0x2e8   :  { %v1587_v22 = vpop.f32.mrf.mxu0 }
 0x2e9   :  { %v1588_v42 = vadd.f32 %v1587_v22, %v6043_v52  ;;  %v1676_v7 = vpop.f32.mrf.mxu1  ;;  %2331 = vmatpush.bf16.msrb.mxu1 %v4082_v0 }
 0x2ea   :  { %v1444_v11 = vpop.f32.mrf.mxu2 }
 0x2eb   :  { %v4544_v48 = vpop.eup %4543  ;;  %v1677_v49 = vadd.f32 %v1676_v7, %v1588_v42  ;;  %v1445_v18 = vadd.f32 %v1444_v11, %v5893_v21  ;;  %v4165_v7 = vld [vmem:[%s7511_s5 + $0xf0] sm:$0xf]  ;;  %v4448_v11 = vld [vmem:[%s7511_s5 + $0x108] sm:$0xf0] }
 0x2ec   :  { %1815 = vst [vmem:[%s7515_s7 + $0x1c8] sm:$0xff] %v4544_v48  ;;  %v1533_v19 = vpop.f32.mrf.mxu3  ;;  %v4166_v48 = vor.u32 %v4448_v11, %v4165_v7  ;;  %v4419_v11 = vld [vmem:[%s7511_s5 + $0x1cc] sm:$0xf] }
 0x2ed   :  { %v4546_v12 = vpop.eup %4545  ;;  %4547 = vtanh.f32 %v1677_v49  ;;  %v1534_v29 = vadd.f32 %v1533_v19, %v1445_v18  ;;  %v4407_v49 = vld [vmem:[%s7511_s5 + $0x7c] sm:$0xf]  ;;  %v4007_v18 = vld [vmem:[%s7511_s5 + $0x94] sm:$0xf0] }
 0x2ee   :  { %1842 = vst [vmem:[%s7515_s7 + $0x4d0] sm:$0xff] %v4546_v12  ;;  %v4423_v19 = vld [vmem:[%s7511_s5 + $0x23c] sm:$0xf]  ;;  %2875 = vmatpush.bf16.msrb.mxu2 %v4166_v48  ;;  %v4055_v48 = vld [vmem:[%s7511_s5 + $0x1e4] sm:$0xf0] }
 0x2ef   :  { %4549 = vtanh.f32 %v1534_v29  ;;  %2088 = vmatmul.bf16.gmra.mxu2 %v5589_v28  ;;  %v4010_v29 = vor.u32 %v4407_v49, %v4007_v18  ;;  %v4074_v23 = vor.u32 %v4423_v19, %v4071_v30 }
 0x2f0   :  { %v1590_v27 = vpop.f32.mrf.mxu0 }
 0x2f1   :  { %v1591_v53 = vadd.f32 %v1590_v27, %v6043_v52  ;;  %v1679_v54 = vpop.f32.mrf.mxu1  ;;  %2177 = vmatmul.bf16.gmra.mxu3 %v5761_v63  ;;  %2243 = vmatpush.bf16.msrb.mxu0 %v4010_v29  ;;  %v4405_v27 = vld [vmem:[%s7511_s5 + $0x44] sm:$0xf] }
 0x2f2   :  { %v1447_v44 = vpop.f32.mrf.mxu2  ;;  %2332 = vmatpush.bf16.msrb.mxu1 %v4074_v23  ;;  %v4002_v37 = vor.u32 %v4405_v27, %v3999_v55 }
 0x2f3   :  { %v4548_v17 = vpop.eup %4547  ;;  %v1680_v43 = vadd.f32 %v1679_v54, %v1591_v53  ;;  %v1448_v57 = vadd.f32 %v1447_v44, %v5893_v21  ;;  %1629 = vmatmul.bf16.gmra.mxu0 %v5851_v41  ;;  %v4421_v53 = vld [vmem:[%s7511_s5 + $0x204] sm:$0xf] }
 0x2f4   :  { %1817 = vst [vmem:[%s7515_s7 + $0x200] sm:$0xff] %v4548_v17  ;;  %1718 = vmatmul.bf16.gmra.mxu1 %v6007_v61  ;;  %v1536_v4 = vpop.f32.mrf.mxu3  ;;  %v4066_v58 = vor.u32 %v4421_v53, %v4063_v51 }
 0x2f5   :  { %v4550_v22 = vpop.eup %4549  ;;  %4551 = vtanh.f32 %v1680_v43  ;;  %v1537_v42 = vadd.f32 %v1536_v4, %v1448_v57  ;;  %v4261_v43 = vld [vmem:[%s7511_s5 + $0x2b0] sm:$0xf]  ;;  %v4472_v57 = vld [vmem:[%s7511_s5 + $0x2c8] sm:$0xf0]  ;;  %2244 = vmatpush.bf16.msrb.mxu0 %v4002_v37 }
 0x2f6   :  { %1844 = vst [vmem:[%s7515_s7 + $0x508] sm:$0xff] %v4550_v22  ;;  %v4262_v0 = vor.u32 %v4472_v57, %v4261_v43  ;;  %v4403_v22 = vld [vmem:[%s7511_s5 + $0xc] sm:$0xf]  ;;  %2333 = vmatpush.bf16.msrb.mxu1 %v4066_v58 }
 0x2f7   :  { %4553 = vtanh.f32 %v1537_v42  ;;  %v3991_v42 = vld [vmem:[%s7511_s5 + $0x24] sm:$0xf0] }
 0x2f8   :  { %v1592_v12 = vpop.f32.mrf.mxu0  ;;  %2964 = vmatpush.bf16.msrb.mxu3 %v4262_v0  ;;  %v3994_v7 = vor.u32 %v4403_v22, %v3991_v42 }
 0x2f9   :  { %v1593_v33 = vadd.f32 %v1592_v12, %v6043_v52  ;;  %v1681_v60 = vpop.f32.mrf.mxu1  ;;  %v4058_v12 = vor.u32 %v4419_v11, %v4055_v48 }
 0x2fa   :  { %v1449_v24 = vpop.f32.mrf.mxu2  ;;  %2245 = vmatpush.bf16.msrb.mxu0 %v3994_v7 }
 0x2fb   :  { %v4552_v54 = vpop.eup %4551  ;;  %v1682_v44 = vadd.f32 %v1681_v60, %v1593_v33  ;;  %v1450_v16 = vadd.f32 %v1449_v24, %v5893_v21  ;;  %2334 = vmatpush.bf16.msrb.mxu1 %v4058_v12 }
 0x2fc   :  { %1819 = vst [vmem:[%s7515_s7 + $0x238] sm:$0xff] %v4552_v54  ;;  %v1538_v17 = vpop.f32.mrf.mxu3 }
 0x2fd   :  { %v4554_v38 = vpop.eup %4553  ;;  %4555 = vtanh.f32 %v1682_v44  ;;  %v1539_v4 = vadd.f32 %v1538_v17, %v1450_v16 }
 0x2fe   :  { %1846 = vst [vmem:[%s7515_s7 + $0x540] sm:$0xff] %v4554_v38 }
 0x2ff   :  { %4557 = vtanh.f32 %v1539_v4  ;;  %2093 = vmatmul.bf16.gmra.mxu2 %v5605_v59 }
 0x300   :  { %v1595_v49 = vpop.f32.mrf.mxu0 }
 0x301   :  { %v1596_v18 = vadd.f32 %v1595_v49, %v6043_v52  ;;  %v1684_v19 = vpop.f32.mrf.mxu1  ;;  %2182 = vmatmul.bf16.gmra.mxu3 %v5833_v14 }
 0x302   :  { %v1452_v29 = vpop.f32.mrf.mxu2 }
 0x303   :  { %v4556_v30 = vpop.eup %4555  ;;  %v1685_v33 = vadd.f32 %v1684_v19, %v1596_v18  ;;  %v1453_v60 = vadd.f32 %v1452_v29, %v5893_v21  ;;  %1634 = vmatmul.bf16.gmra.mxu0 %v5875_v39  ;;  %v4153_v18 = vld [vmem:[%s7511_s5 + $0xb8] sm:$0xf]  ;;  %v4445_v19 = vld [vmem:[%s7511_s5 + $0xd0] sm:$0xf0] }
 0x304   :  { %1821 = vst [vmem:[%s7515_s7 + $0x270] sm:$0xff] %v4556_v30  ;;  %1723 = vmatmul.bf16.gmra.mxu1 %v6023_v15  ;;  %v1541_v23 = vpop.f32.mrf.mxu3  ;;  %v4154_v12 = vor.u32 %v4445_v19, %v4153_v18 }
 0x305   :  { %v4558_v24 = vpop.eup %4557  ;;  %4559 = vtanh.f32 %v1685_v33  ;;  %v1542_v27 = vadd.f32 %v1541_v23, %v1453_v60 }
 0x306   :  { %1848 = vst [vmem:[%s7515_s7 + $0x578] sm:$0xff] %v4558_v24  ;;  %2876 = vmatpush.bf16.msrb.mxu2 %v4154_v12 }
 0x307   :  { %4561 = vtanh.f32 %v1542_v27 }
 0x308   :  { %v1597_v55 = vpop.f32.mrf.mxu0 }
 0x309   :  { %v1598_v53 = vadd.f32 %v1597_v55, %v6043_v52  ;;  %v1686_v54 = vpop.f32.mrf.mxu1 }
 0x30a   :  { %v1454_v44 = vpop.f32.mrf.mxu2 }
 0x30b   :  { %v4560_v16 = vpop.eup %4559  ;;  %v1687_v37 = vadd.f32 %v1686_v54, %v1598_v53  ;;  %v1455_v51 = vadd.f32 %v1454_v44, %v5893_v21  ;;  %v4249_v53 = vld [vmem:[%s7511_s5 + $0x278] sm:$0xf]  ;;  %v4469_v54 = vld [vmem:[%s7511_s5 + $0x290] sm:$0xf0] }
 0x30c   :  { %1823 = vst [vmem:[%s7515_s7 + $0x2a8] sm:$0xff] %v4560_v16  ;;  %v1543_v17 = vpop.f32.mrf.mxu3 }
 0x30d   :  { %v4562_v43 = vpop.eup %4561  ;;  %4563 = vtanh.f32 %v1687_v37  ;;  %v1544_v57 = vadd.f32 %v1543_v17, %v1455_v51  ;;  %v4250_v37 = vor.u32 %v4469_v54, %v4249_v53 }
 0x30e   :  { %1850 = vst [vmem:[%s7515_s7 + $0x5b0] sm:$0xff] %v4562_v43 }
 0x30f   :  { %4565 = vtanh.f32 %v1544_v57  ;;  %2098 = vmatmul.bf16.gmra.mxu2 %v5645_v40  ;;  %2965 = vmatpush.bf16.msrb.mxu3 %v4250_v37 }
 0x310   :  { %v1600_v58 = vpop.f32.mrf.mxu0 }
 0x311   :  { %v1601_v38 = vadd.f32 %v1600_v58, %v6043_v52  ;;  %v1689_v4 = vpop.f32.mrf.mxu1  ;;  %2187 = vmatmul.bf16.gmra.mxu3 %v5848_v50 }
 0x312   :  { %v1457_v0 = vpop.f32.mrf.mxu2 }
 0x313   :  { %v4564_v22 = vpop.eup %4563  ;;  %v1690_v42 = vadd.f32 %v1689_v4, %v1601_v38  ;;  %v1458_v7 = vadd.f32 %v1457_v0, %v5893_v21  ;;  %1639 = vmatmul.bf16.gmra.mxu0 %v5895_v20 }
 0x314   :  { %1825 = vst [vmem:[%s7515_s7 + $0x2e0] sm:$0xff] %v4564_v22  ;;  %1728 = vmatmul.bf16.gmra.mxu1 %v6060_v10  ;;  %v1546_v11 = vpop.f32.mrf.mxu3 }
 0x315   :  { %v4566_v48 = vpop.eup %4565  ;;  %4567 = vtanh.f32 %v1690_v42  ;;  %v1547_v49 = vadd.f32 %v1546_v11, %v1458_v7 }
 0x316   :  { %1852 = vst [vmem:[%s7515_s7 + $0x5e8] sm:$0xff] %v4566_v48 }
 0x317   :  { %4569 = vtanh.f32 %v1547_v49 }
 0x318   :  { %v1602_v29 = vpop.f32.mrf.mxu0 }
 0x319   :  { %v1603_v30 = vadd.f32 %v1602_v29, %v6043_v52  ;;  %v1691_v33 = vpop.f32.mrf.mxu1 }
 0x31a   :  { %v1459_v60 = vpop.f32.mrf.mxu2 }
 0x31b   :  { %v4568_v23 = vpop.eup %4567  ;;  %v1692_v24 = vadd.f32 %v1691_v33, %v1603_v30  ;;  %v1460_v27 = vadd.f32 %v1459_v60, %v5893_v21  ;;  %v6377_v30 = vld [vmem:[%s7514_s6 + $0x2] sm:$0x3] }
 0x31c   :  { %1827 = vst [vmem:[%s7515_s7 + $0x318] sm:$0xff] %v4568_v23  ;;  %v1548_v55 = vpop.f32.mrf.mxu3 }
 0x31d   :  { %v4570_v44 = vpop.eup %4569  ;;  %4571 = vtanh.f32 %v1692_v24  ;;  %v1549_v16 = vadd.f32 %v1548_v55, %v1460_v27 }
 0x31e   :  { %1854 = vst [vmem:[%s7515_s7 + $0x620] sm:$0xff] %v4570_v44 }
 0x31f   :  { %4573 = vtanh.f32 %v1549_v16  ;;  %2103 = vmatmul.bf16.gmra.mxu2 %v5659_v2 }
 0x320   :  { %v1605_v51 = vpop.f32.mrf.mxu0 }
 0x321   :  { %v1606_v17 = vadd.f32 %v1605_v51, %v6043_v52  ;;  %v1694_v43 = vpop.f32.mrf.mxu1  ;;  %2192 = vmatmul.bf16.gmra.mxu3 %v5872_v36 }
 0x322   :  { %v1462_v57 = vpop.f32.mrf.mxu2 }
 0x323   :  { %v4572_v58 = vpop.eup %4571  ;;  %v1695_v38 = vadd.f32 %v1694_v43, %v1606_v17  ;;  %v1463_v4 = vadd.f32 %v1462_v57, %v5893_v21  ;;  %2246 = vmatmul.bf16.vlgmr.msrb.gmra.mxu0 %v5501_v62  ;;  %v4141_v17 = vld [vmem:[%s7511_s5 + $0x80] sm:$0xf]  ;;  %v4442_v43 = vld [vmem:[%s7511_s5 + $0x98] sm:$0xf0] }
 0x324   :  { %1829 = vst [vmem:[%s7515_s7 + $0x350] sm:$0xff] %v4572_v58  ;;  %2335 = vmatmul.bf16.vlgmr.msrb.gmra.mxu1 %v5656_v35  ;;  %v1551_v0 = vpop.f32.mrf.mxu3  ;;  %v4142_v57 = vor.u32 %v4442_v43, %v4141_v17 }
 0x325   :  { %v4574_v22 = vpop.eup %4573  ;;  %4575 = vtanh.f32 %v1695_v38  ;;  %v1552_v42 = vadd.f32 %v1551_v0, %v1463_v4 }
 0x326   :  { %1856 = vst [vmem:[%s7515_s7 + $0x658] sm:$0xff] %v4574_v22  ;;  %2877 = vmatpush.bf16.msrb.mxu2 %v4142_v57 }
 0x327   :  { %4577 = vtanh.f32 %v1552_v42 }
 0x328   :  { %v1607_v7 = vpop.f32.mrf.mxu0 }
 0x329   :  { %v1608_v11 = vadd.f32 %v1607_v7, %v6043_v52  ;;  %v1696_v48 = vpop.f32.mrf.mxu1 }
 0x32a   :  { %v1464_v49 = vpop.f32.mrf.mxu2 }
 0x32b   :  { %v4576_v18 = vpop.eup %4575  ;;  %v1697_v19 = vadd.f32 %v1696_v48, %v1608_v11  ;;  %v1465_v12 = vadd.f32 %v1464_v49, %v5893_v21  ;;  %v6384_v21 = vperm.slane %v6377_v30, 0  ;;  %v4237_v48 = vld [vmem:[%s7511_s5 + $0x240] sm:$0xf]  ;;  %v4466_v49 = vld [vmem:[%s7511_s5 + $0x258] sm:$0xf0] }
 0x32c   :  { %1831 = vst [vmem:[%s7515_s7 + $0x388] sm:$0xff] %v4576_v18  ;;  %v1553_v29 = vpop.f32.mrf.mxu3 }
 0x32d   :  { %v4578_v33 = vpop.eup %4577  ;;  %4579 = vtanh.f32 %v1697_v19  ;;  %v1554_v60 = vadd.f32 %v1553_v29, %v1465_v12  ;;  %v4238_v12 = vor.u32 %v4466_v49, %v4237_v48 }
 0x32e   :  { %1858 = vst [vmem:[%s7515_s7 + $0x690] sm:$0xff] %v4578_v33 }
 0x32f   :  { %4581 = vtanh.f32 %v1554_v60  ;;  %2108 = vmatmul.bf16.gmra.mxu2 %v5695_v8  ;;  %2966 = vmatpush.bf16.msrb.mxu3 %v4238_v12 }
 0x330   :  { %v1610_v23 = vpop.f32.mrf.mxu0 }
 0x331   :  { %v1611_v24 = vadd.f32 %v1610_v23, %v6043_v52  ;;  %v1699_v27 = vpop.f32.mrf.mxu1  ;;  %2197 = vmatmul.bf16.gmra.mxu3 %v5889_v5 }
 0x332   :  { %v2069_v55 = vpop.f32.mrf.mxu2 }
 0x333   :  { %v4580_v53 = vpop.eup %4579  ;;  %v1700_v54 = vadd.f32 %v1699_v27, %v1611_v24  ;;  %v2070_v44 = vadd.f32 %v2069_v55, %v6384_v21  ;;  %2251 = vmatmul.bf16.gmra.mxu0 %v5517_v31 }
 0x334   :  { %1833 = vst [vmem:[%s7515_s7 + $0x3c0] sm:$0xff] %v4580_v53  ;;  %2340 = vmatmul.bf16.gmra.mxu1 %v5692_v6  ;;  %v2158_v16 = vpop.f32.mrf.mxu3 }
 0x335   :  { %v4582_v37 = vpop.eup %4581  ;;  %4583 = vtanh.f32 %v1700_v54  ;;  %v2159_v51 = vadd.f32 %v2158_v16, %v2070_v44 }
 0x336   :  { %1860 = vst [vmem:[%s7515_s7 + $0x6c8] sm:$0xff] %v4582_v37 }
 0x337   :  { %4585 = vtanh.f32 %v2159_v51 }
 0x338   :  { %v1612_v58 = vpop.f32.mrf.mxu0 }
 0x339   :  { %v1613_v38 = vadd.f32 %v1612_v58, %v6043_v52  ;;  %v1701_v4 = vpop.f32.mrf.mxu1 }
 0x33a   :  { %v2071_v0 = vpop.f32.mrf.mxu2 }
 0x33b   :  { %v4584_v22 = vpop.eup %4583  ;;  %v1702_v42 = vadd.f32 %v1701_v4, %v1613_v38  ;;  %v2072_v7 = vadd.f32 %v2071_v0, %v6384_v21 }
 0x33c   :  { %1835 = vst [vmem:[%s7515_s7 + $0x3f8] sm:$0xff] %v4584_v22  ;;  %v2160_v11 = vpop.f32.mrf.mxu3 }
 0x33d   :  { %v4586_v18 = vpop.eup %4585  ;;  %4587 = vtanh.f32 %v1702_v42  ;;  %v2161_v19 = vadd.f32 %v2160_v11, %v2072_v7 }
 0x33e   :  { %2480 = vst [vmem:[%s7515_s7 + $0x10] sm:$0xff] %v4586_v18 }
 0x33f   :  { %4589 = vtanh.f32 %v2161_v19  ;;  %2113 = vmatmul.bf16.gmra.mxu2 %v5707_v56 }
 0x340   :  { %v1615_v29 = vpop.f32.mrf.mxu0 }
 0x341   :  { %v1616_v33 = vadd.f32 %v1615_v29, %v6043_v52  ;;  %v1704_v60 = vpop.f32.mrf.mxu1  ;;  %2202 = vmatmul.bf16.gmra.mxu3 %v5919_v47 }
 0x342   :  { %v2074_v23 = vpop.f32.mrf.mxu2 }
 0x343   :  { %v4588_v24 = vpop.eup %4587  ;;  %v1705_v27 = vadd.f32 %v1704_v60, %v1616_v33  ;;  %v2075_v55 = vadd.f32 %v2074_v23, %v6384_v21  ;;  %2256 = vmatmul.bf16.gmra.mxu0 %v5545_v9  ;;  %v4129_v33 = vld [vmem:[%s7511_s5 + $0x48] sm:$0xf]  ;;  %v4439_v60 = vld [vmem:[%s7511_s5 + $0x60] sm:$0xf0] }
 0x344   :  { %1837 = vst [vmem:[%s7515_s7 + $0x430] sm:$0xff] %v4588_v24  ;;  %2345 = vmatmul.bf16.gmra.mxu1 %v5704_v26  ;;  %v2163_v53 = vpop.f32.mrf.mxu3  ;;  %v4130_v23 = vor.u32 %v4439_v60, %v4129_v33 }
 0x345   :  { %v4590_v54 = vpop.eup %4589  ;;  %4591 = vtanh.f32 %v1705_v27  ;;  %v2164_v44 = vadd.f32 %v2163_v53, %v2075_v55 }
 0x346   :  { %2482 = vst [vmem:[%s7515_s7 + $0x48] sm:$0xff] %v4590_v54  ;;  %2878 = vmatpush.bf16.msrb.mxu2 %v4130_v23 }
 0x347   :  { %4593 = vtanh.f32 %v2164_v44 }
 0x348   :  { %v1617_v16 = vpop.f32.mrf.mxu0 }
 0x349   :  { %v1618_v37 = vadd.f32 %v1617_v16, %v6043_v52  ;;  %v1706_v51 = vpop.f32.mrf.mxu1 }
 0x34a   :  { %v2076_v17 = vpop.f32.mrf.mxu2 }
 0x34b   :  { %v4592_v43 = vpop.eup %4591  ;;  %v1707_v57 = vadd.f32 %v1706_v51, %v1618_v37  ;;  %v2077_v58 = vadd.f32 %v2076_v17, %v6384_v21  ;;  %v4225_v51 = vld [vmem:[%s7511_s5 + $0x208] sm:$0xf]  ;;  %v4463_v17 = vld [vmem:[%s7511_s5 + $0x220] sm:$0xf0] }
 0x34c   :  { %1839 = vst [vmem:[%s7515_s7 + $0x468] sm:$0xff] %v4592_v43  ;;  %v2165_v38 = vpop.f32.mrf.mxu3 }
 0x34d   :  { %v4594_v4 = vpop.eup %4593  ;;  %4595 = vtanh.f32 %v1707_v57  ;;  %v2166_v0 = vadd.f32 %v2165_v38, %v2077_v58  ;;  %v4226_v58 = vor.u32 %v4463_v17, %v4225_v51 }
 0x34e   :  { %2484 = vst [vmem:[%s7515_s7 + $0x80] sm:$0xff] %v4594_v4 }
 0x34f   :  { %4597 = vtanh.f32 %v2166_v0  ;;  %2118 = vmatmul.bf16.gmra.mxu2 %v5743_v32  ;;  %2967 = vmatpush.bf16.msrb.mxu3 %v4226_v58 }
 0x350   :  { %v1620_v22 = vpop.f32.mrf.mxu0 }
 0x351   :  { %v1621_v42 = vadd.f32 %v1620_v22, %v6043_v52  ;;  %v1709_v7 = vpop.f32.mrf.mxu1  ;;  %2207 = vmatmul.bf16.gmra.mxu3 %v5935_v1 }
 0x352   :  { %v2079_v11 = vpop.f32.mrf.mxu2 }
 0x353   :  { %v4596_v48 = vpop.eup %4595  ;;  %v1710_v49 = vadd.f32 %v1709_v7, %v1621_v42  ;;  %v2080_v18 = vadd.f32 %v2079_v11, %v6384_v21  ;;  %2261 = vmatmul.bf16.gmra.mxu0 %v5561_v45 }
 0x354   :  { %1841 = vst [vmem:[%s7515_s7 + $0x4a0] sm:$0xff] %v4596_v48  ;;  %2350 = vmatmul.bf16.gmra.mxu1 %v5740_v13  ;;  %v2168_v19 = vpop.f32.mrf.mxu3 }
 0x355   :  { %v4598_v12 = vpop.eup %4597  ;;  %4599 = vtanh.f32 %v1710_v49  ;;  %v2169_v29 = vadd.f32 %v2168_v19, %v2080_v18 }
 0x356   :  { %2486 = vst [vmem:[%s7515_s7 + $0xb8] sm:$0xff] %v4598_v12 }
 0x357   :  { %4601 = vtanh.f32 %v2169_v29 }
 0x358   :  { %v1622_v24 = vpop.f32.mrf.mxu0 }
 0x359   :  { %v1623_v27 = vadd.f32 %v1622_v24, %v6043_v52  ;;  %v1711_v55 = vpop.f32.mrf.mxu1 }
 0x35a   :  { %v2081_v53 = vpop.f32.mrf.mxu2 }
 0x35b   :  { %v4600_v54 = vpop.eup %4599  ;;  %v1712_v44 = vadd.f32 %v1711_v55, %v1623_v27  ;;  %v2082_v16 = vadd.f32 %v2081_v53, %v6384_v21 }
 0x35c   :  { %1843 = vst [vmem:[%s7515_s7 + $0x4d8] sm:$0xff] %v4600_v54  ;;  %v2170_v37 = vpop.f32.mrf.mxu3 }
 0x35d   :  { %v4602_v43 = vpop.eup %4601  ;;  %4603 = vtanh.f32 %v1712_v44  ;;  %v2171_v57 = vadd.f32 %v2170_v37, %v2082_v16 }
 0x35e   :  { %2488 = vst [vmem:[%s7515_s7 + $0xf0] sm:$0xff] %v4602_v43 }
 0x35f   :  { %4605 = vtanh.f32 %v2171_v57  ;;  %2123 = vmatmul.bf16.gmra.mxu2 %v5767_v3 }
 0x360   :  { %v1625_v38 = vpop.f32.mrf.mxu0 }
 0x361   :  { %v1626_v4 = vadd.f32 %v1625_v38, %v6043_v52  ;;  %v1714_v0 = vpop.f32.mrf.mxu1  ;;  %2212 = vmatmul.bf16.gmra.mxu3 %v5963_v34 }
 0x362   :  { %v2084_v22 = vpop.f32.mrf.mxu2 }
 0x363   :  { %v4604_v42 = vpop.eup %4603  ;;  %v1715_v7 = vadd.f32 %v1714_v0, %v1626_v4  ;;  %v2085_v11 = vadd.f32 %v2084_v22, %v6384_v21  ;;  %2266 = vmatmul.bf16.gmra.mxu0 %v5589_v28  ;;  %v4117_v4 = vld [vmem:[%s7511_s5 + $0x10] sm:$0xf]  ;;  %v4436_v0 = vld [vmem:[%s7511_s5 + $0x28] sm:$0xf0] }
 0x364   :  { %1845 = vst [vmem:[%s7515_s7 + $0x510] sm:$0xff] %v4604_v42  ;;  %2355 = vmatmul.bf16.gmra.mxu1 %v5761_v63  ;;  %v2173_v48 = vpop.f32.mrf.mxu3  ;;  %v4118_v22 = vor.u32 %v4436_v0, %v4117_v4 }
 0x365   :  { %v4606_v49 = vpop.eup %4605  ;;  %4607 = vtanh.f32 %v1715_v7  ;;  %v2174_v18 = vadd.f32 %v2173_v48, %v2085_v11 }
 0x366   :  { %2490 = vst [vmem:[%s7515_s7 + $0x128] sm:$0xff] %v4606_v49  ;;  %2879 = vmatpush.bf16.msrb.mxu2 %v4118_v22 }
 0x367   :  { %4609 = vtanh.f32 %v2174_v18 }
 0x368   :  { %v1627_v19 = vpop.f32.mrf.mxu0 }
 0x369   :  { %v1628_v12 = vadd.f32 %v1627_v19, %v6043_v52  ;;  %v1716_v29 = vpop.f32.mrf.mxu1 }
 0x36a   :  { %v2086_v33 = vpop.f32.mrf.mxu2 }
 0x36b   :  { %v4608_v60 = vpop.eup %4607  ;;  %v1717_v23 = vadd.f32 %v1716_v29, %v1628_v12  ;;  %v2087_v24 = vadd.f32 %v2086_v33, %v6384_v21  ;;  %v4213_v29 = vld [vmem:[%s7511_s5 + $0x1d0] sm:$0xf]  ;;  %v4460_v33 = vld [vmem:[%s7511_s5 + $0x1e8] sm:$0xf0] }
 0x36c   :  { %1847 = vst [vmem:[%s7515_s7 + $0x548] sm:$0xff] %v4608_v60  ;;  %v2175_v27 = vpop.f32.mrf.mxu3 }
 0x36d   :  { %v4610_v55 = vpop.eup %4609  ;;  %4611 = vtanh.f32 %v1717_v23  ;;  %v2176_v53 = vadd.f32 %v2175_v27, %v2087_v24  ;;  %v4214_v24 = vor.u32 %v4460_v33, %v4213_v29 }
 0x36e   :  { %2492 = vst [vmem:[%s7515_s7 + $0x160] sm:$0xff] %v4610_v55 }
 0x36f   :  { %4613 = vtanh.f32 %v2176_v53  ;;  %2128 = vmatmul.bf16.gmra.mxu2 %v5839_v25  ;;  %2968 = vmatpush.bf16.msrb.mxu3 %v4214_v24 }
 0x370   :  { %v1630_v54 = vpop.f32.mrf.mxu0 }
 0x371   :  { %v1631_v44 = vadd.f32 %v1630_v54, %v6043_v52  ;;  %v1719_v16 = vpop.f32.mrf.mxu1  ;;  %2217 = vmatmul.bf16.gmra.mxu3 %v5979_v46 }
 0x372   :  { %v2089_v37 = vpop.f32.mrf.mxu2 }
 0x373   :  { %v4612_v51 = vpop.eup %4611  ;;  %v1720_v17 = vadd.f32 %v1719_v16, %v1631_v44  ;;  %v2090_v43 = vadd.f32 %v2089_v37, %v6384_v21  ;;  %2271 = vmatmul.bf16.gmra.mxu0 %v5605_v59 }
 0x374   :  { %1849 = vst [vmem:[%s7515_s7 + $0x580] sm:$0xff] %v4612_v51  ;;  %2360 = vmatmul.bf16.gmra.mxu1 %v5833_v14  ;;  %v2178_v57 = vpop.f32.mrf.mxu3 }
 0x375   :  { %v4614_v58 = vpop.eup %4613  ;;  %4615 = vtanh.f32 %v1720_v17  ;;  %v2179_v38 = vadd.f32 %v2178_v57, %v2090_v43 }
 0x376   :  { %2494 = vst [vmem:[%s7515_s7 + $0x198] sm:$0xff] %v4614_v58 }
 0x377   :  { %4617 = vtanh.f32 %v2179_v38 }
 0x378   :  { %v1632_v42 = vpop.f32.mrf.mxu0 }
 0x379   :  { %v1633_v7 = vadd.f32 %v1632_v42, %v6043_v52  ;;  %v1721_v11 = vpop.f32.mrf.mxu1 }
 0x37a   :  { %v2091_v48 = vpop.f32.mrf.mxu2 }
 0x37b   :  { %v4616_v49 = vpop.eup %4615  ;;  %v1722_v18 = vadd.f32 %v1721_v11, %v1633_v7  ;;  %v2092_v19 = vadd.f32 %v2091_v48, %v6384_v21 }
 0x37c   :  { %1851 = vst [vmem:[%s7515_s7 + $0x5b8] sm:$0xff] %v4616_v49  ;;  %v2180_v12 = vpop.f32.mrf.mxu3 }
 0x37d   :  { %v4618_v60 = vpop.eup %4617  ;;  %4619 = vtanh.f32 %v1722_v18  ;;  %v2181_v23 = vadd.f32 %v2180_v12, %v2092_v19 }
 0x37e   :  { %2496 = vst [vmem:[%s7515_s7 + $0x1d0] sm:$0xff] %v4618_v60 }
 0x37f   :  { %4621 = vtanh.f32 %v2181_v23  ;;  %2133 = vmatmul.bf16.gmra.mxu2 %v5851_v41 }
 0x380   :  { %v1635_v27 = vpop.f32.mrf.mxu0 }
 0x381   :  { %v1636_v55 = vadd.f32 %v1635_v27, %v6043_v52  ;;  %v1724_v53 = vpop.f32.mrf.mxu1  ;;  %2222 = vmatmul.bf16.gmra.mxu3 %v6007_v61 }
 0x382   :  { %v2094_v54 = vpop.f32.mrf.mxu2 }
 0x383   :  { %v4620_v44 = vpop.eup %4619  ;;  %v1725_v16 = vadd.f32 %v1724_v53, %v1636_v55  ;;  %v2095_v37 = vadd.f32 %v2094_v54, %v6384_v21  ;;  %2276 = vmatmul.bf16.gmra.mxu0 %v5645_v40  ;;  %v4209_v55 = vld [vmem:[%s7511_s5 + $0x1a0] sm:$0xf]  ;;  %v4458_v53 = vld [vmem:[%s7511_s5 + $0x1b8] sm:$0xf0] }
 0x384   :  { %1853 = vst [vmem:[%s7515_s7 + $0x5f0] sm:$0xff] %v4620_v44  ;;  %2365 = vmatmul.bf16.gmra.mxu1 %v5848_v50  ;;  %v2183_v51 = vpop.f32.mrf.mxu3  ;;  %v4210_v54 = vor.u32 %v4458_v53, %v4209_v55 }
 0x385   :  { %v4622_v17 = vpop.eup %4621  ;;  %4623 = vtanh.f32 %v1725_v16  ;;  %v2184_v43 = vadd.f32 %v2183_v51, %v2095_v37 }
 0x386   :  { %2498 = vst [vmem:[%s7515_s7 + $0x208] sm:$0xff] %v4622_v17  ;;  %3228 = vmatpush.bf16.msra.mxu2 %v4210_v54 }
 0x387   :  { %4625 = vtanh.f32 %v2184_v43 }
 0x388   :  { %v1637_v57 = vpop.f32.mrf.mxu0 }
 0x389   :  { %v1638_v58 = vadd.f32 %v1637_v57, %v6043_v52  ;;  %v1726_v38 = vpop.f32.mrf.mxu1 }
 0x38a   :  { %v2096_v4 = vpop.f32.mrf.mxu2 }
 0x38b   :  { %v4624_v0 = vpop.eup %4623  ;;  %v1727_v22 = vadd.f32 %v1726_v38, %v1638_v58  ;;  %v2097_v42 = vadd.f32 %v2096_v4, %v6384_v21  ;;  %v4305_v38 = vld [vmem:[%s7511_s5 + $0x360] sm:$0xf] }
 0x38c   :  { %1855 = vst [vmem:[%s7515_s7 + $0x628] sm:$0xff] %v4624_v0  ;;  %v2185_v7 = vpop.f32.mrf.mxu3 }
 0x38d   :  { %v4626_v11 = vpop.eup %4625  ;;  %4627 = vtanh.f32 %v1727_v22  ;;  %v2186_v48 = vadd.f32 %v2185_v7, %v2097_v42  ;;  %v6571_v22 = vperm.slane %v6377_v30, 1  ;;  %v4456_v7 = vld [vmem:[%s7511_s5 + $0x19c] sm:$0xf] }
 0x38e   :  { %2500 = vst [vmem:[%s7515_s7 + $0x240] sm:$0xff] %v4626_v11  ;;  %v4203_v11 = vld [vmem:[%s7511_s5 + $0x1b4] sm:$0xf0]  ;;  %v4480_v30 = vld [vmem:[%s7511_s5 + $0x35c] sm:$0xf] }
 0x38f   :  { %4629 = vtanh.f32 %v2186_v48  ;;  %2138 = vmatmul.bf16.gmra.mxu2 %v5875_v39  ;;  %v4206_v48 = vor.u32 %v4456_v7, %v4203_v11 }
 0x390   :  { %v1640_v49 = vpop.f32.mrf.mxu0 }
 0x391   :  { %v1641_v18 = vadd.f32 %v1640_v49, %v6043_v52  ;;  %v1729_v19 = vpop.f32.mrf.mxu1  ;;  %2227 = vmatmul.bf16.gmra.mxu3 %v6023_v15  ;;  %v4299_v49 = vld [vmem:[%s7511_s5 + $0x374] sm:$0xf0]  ;;  %3050 = vmatpush.bf16.msra.mxu0 %v4206_v48 }
 0x392   :  { %v2099_v12 = vpop.f32.mrf.mxu2 }
 0x393   :  { %v4628_v29 = vpop.eup %4627  ;;  %v1730_v33 = vadd.f32 %v1729_v19, %v1641_v18  ;;  %v2100_v60 = vadd.f32 %v2099_v12, %v6384_v21  ;;  %2281 = vmatmul.bf16.gmra.mxu0 %v5659_v2  ;;  %v4302_v19 = vor.u32 %v4480_v30, %v4299_v49 }
 0x394   :  { %1857 = vst [vmem:[%s7515_s7 + $0x660] sm:$0xff] %v4628_v29  ;;  %2370 = vmatmul.bf16.gmra.mxu1 %v5872_v36  ;;  %v2188_v23 = vpop.f32.mrf.mxu3 }
 0x395   :  { %v4630_v24 = vpop.eup %4629  ;;  %4631 = vtanh.f32 %v1730_v33  ;;  %v2189_v27 = vadd.f32 %v2188_v23, %v2100_v60  ;;  %3139 = vmatpush.bf16.msra.mxu1 %v4302_v19  ;;  %v4197_v19 = vld [vmem:[%s7511_s5 + $0x168] sm:$0xf] }
 0x396   :  { %2502 = vst [vmem:[%s7515_s7 + $0x278] sm:$0xff] %v4630_v24 }
 0x397   :  { %4633 = vtanh.f32 %v2189_v27 }
 0x398   :  { %v1642_v44 = vpop.f32.mrf.mxu0 }
 0x399   :  { %v1643_v16 = vadd.f32 %v1642_v44, %v6043_v52  ;;  %v1731_v37 = vpop.f32.mrf.mxu1  ;;  %v4482_v52 = vld [vmem:[%s7511_s5 + $0x378] sm:$0xf0] }
 0x39a   :  { %v2101_v51 = vpop.f32.mrf.mxu2  ;;  %v4306_v42 = vor.u32 %v4482_v52, %v4305_v38 }
 0x39b   :  { %v4632_v17 = vpop.eup %4631  ;;  %v1732_v43 = vadd.f32 %v1731_v37, %v1643_v16  ;;  %v2102_v57 = vadd.f32 %v2101_v51, %v6384_v21 }
 0x39c   :  { %1859 = vst [vmem:[%s7515_s7 + $0x698] sm:$0xff] %v4632_v17  ;;  %v2190_v58 = vpop.f32.mrf.mxu3  ;;  %3317 = vmatpush.bf16.msra.mxu3 %v4306_v42 }
 0x39d   :  { %v4634_v4 = vpop.eup %4633  ;;  %4635 = vtanh.f32 %v1732_v43  ;;  %v2191_v0 = vadd.f32 %v2190_v58, %v2102_v57 }
 0x39e   :  { %2504 = vst [vmem:[%s7515_s7 + $0x2b0] sm:$0xff] %v4634_v4 }
 0x39f   :  { %4637 = vtanh.f32 %v2191_v0  ;;  %2143 = vmatmul.bf16.gmra.mxu2 %v5895_v20 }
 0x3a0   :  { %v2247_v18 = vpop.f32.mrf.mxu0 }
 0x3a1   :  { %v2248_v12 = vadd.f32 %v2247_v18, %v6571_v22  ;;  %v2336_v29 = vpop.f32.mrf.mxu1  ;;  %2232 = vmatmul.bf16.gmra.mxu3 %v6060_v10 }
 0x3a2   :  { %v2104_v33 = vpop.f32.mrf.mxu2 }
 0x3a3   :  { %v4636_v60 = vpop.eup %4635  ;;  %v2337_v23 = vadd.f32 %v2336_v29, %v2248_v12  ;;  %v2105_v24 = vadd.f32 %v2104_v33, %v6384_v21  ;;  %2286 = vmatmul.bf16.gmra.mxu0 %v5695_v8  ;;  %v4455_v12 = vld [vmem:[%s7511_s5 + $0x180] sm:$0xf0] }
 0x3a4   :  { %1861 = vst [vmem:[%s7515_s7 + $0x6d0] sm:$0xff] %v4636_v60  ;;  %2375 = vmatmul.bf16.gmra.mxu1 %v5889_v5  ;;  %v2193_v27 = vpop.f32.mrf.mxu3  ;;  %v4198_v29 = vor.u32 %v4455_v12, %v4197_v19 }
 0x3a5   :  { %v4638_v55 = vpop.eup %4637  ;;  %4639 = vtanh.f32 %v2337_v23  ;;  %v2194_v53 = vadd.f32 %v2193_v27, %v2105_v24 }
 0x3a6   :  { %2506 = vst [vmem:[%s7515_s7 + $0x2e8] sm:$0xff] %v4638_v55  ;;  %3229 = vmatpush.bf16.msra.mxu2 %v4198_v29 }
 0x3a7   :  { %4641 = vtanh.f32 %v2194_v53 }
 0x3a8   :  { %v2249_v54 = vpop.f32.mrf.mxu0 }
 0x3a9   :  { %v2250_v44 = vadd.f32 %v2249_v54, %v6571_v22  ;;  %v2338_v16 = vpop.f32.mrf.mxu1 }
 0x3aa   :  { %v2106_v37 = vpop.f32.mrf.mxu2 }
 0x3ab   :  { %v4640_v51 = vpop.eup %4639  ;;  %v2339_v17 = vadd.f32 %v2338_v16, %v2250_v44  ;;  %v2107_v43 = vadd.f32 %v2106_v37, %v6384_v21  ;;  %v4293_v44 = vld [vmem:[%s7511_s5 + $0x328] sm:$0xf]  ;;  %v4479_v16 = vld [vmem:[%s7511_s5 + $0x340] sm:$0xf0] }
 0x3ac   :  { %2481 = vst [vmem:[%s7515_s7 + $0x18] sm:$0xff] %v4640_v51  ;;  %v2195_v57 = vpop.f32.mrf.mxu3 }
 0x3ad   :  { %v4642_v58 = vpop.eup %4641  ;;  %4643 = vtanh.f32 %v2339_v17  ;;  %v2196_v38 = vadd.f32 %v2195_v57, %v2107_v43  ;;  %v4294_v17 = vor.u32 %v4479_v16, %v4293_v44  ;;  %v4453_v43 = vld [vmem:[%s7511_s5 + $0x164] sm:$0xf]  ;;  %v4191_v57 = vld [vmem:[%s7511_s5 + $0x17c] sm:$0xf0] }
 0x3ae   :  { %2508 = vst [vmem:[%s7515_s7 + $0x320] sm:$0xff] %v4642_v58  ;;  %v4194_v58 = vor.u32 %v4453_v43, %v4191_v57 }
 0x3af   :  { %4645 = vtanh.f32 %v2196_v38  ;;  %2880 = vmatmul.bf16.vlgmr.msrb.gmra.mxu2 %v5501_v62  ;;  %3318 = vmatpush.bf16.msra.mxu3 %v4294_v17  ;;  %v4477_v38 = vld [vmem:[%s7511_s5 + $0x324] sm:$0xf] }
 0x3b0   :  { %v2252_v52 = vpop.f32.mrf.mxu0  ;;  %3051 = vmatpush.bf16.msra.mxu0 %v4194_v58 }
 0x3b1   :  { %v2253_v4 = vadd.f32 %v2252_v52, %v6571_v22  ;;  %v2341_v0 = vpop.f32.mrf.mxu1  ;;  %2969 = vmatmul.bf16.vlgmr.msrb.gmra.mxu3 %v5656_v35  ;;  %v4287_v52 = vld [vmem:[%s7511_s5 + $0x33c] sm:$0xf0] }
 0x3b2   :  { %v2109_v42 = vpop.f32.mrf.mxu2 }
 0x3b3   :  { %v4644_v7 = vpop.eup %4643  ;;  %v2342_v11 = vadd.f32 %v2341_v0, %v2253_v4  ;;  %v2110_v48 = vadd.f32 %v2109_v42, %v6384_v21  ;;  %2291 = vmatmul.bf16.gmra.mxu0 %v5707_v56  ;;  %v4290_v0 = vor.u32 %v4477_v38, %v4287_v52 }
 0x3b4   :  { %2483 = vst [vmem:[%s7515_s7 + $0x50] sm:$0xff] %v4644_v7  ;;  %2380 = vmatmul.bf16.gmra.mxu1 %v5919_v47  ;;  %v2198_v30 = vpop.f32.mrf.mxu3 }
 0x3b5   :  { %v4646_v49 = vpop.eup %4645  ;;  %4647 = vtanh.f32 %v2342_v11  ;;  %v2199_v18 = vadd.f32 %v2198_v30, %v2110_v48  ;;  %3140 = vmatpush.bf16.msra.mxu1 %v4290_v0  ;;  %v4185_v0 = vld [vmem:[%s7511_s5 + $0x130] sm:$0xf] }
 0x3b6   :  { %2510 = vst [vmem:[%s7515_s7 + $0x358] sm:$0xff] %v4646_v49 }
 0x3b7   :  { %4649 = vtanh.f32 %v2199_v18 }
 0x3b8   :  { %v2254_v33 = vpop.f32.mrf.mxu0 }
 0x3b9   :  { %v2255_v60 = vadd.f32 %v2254_v33, %v6571_v22  ;;  %v2343_v23 = vpop.f32.mrf.mxu1 }
 0x3ba   :  { %v2111_v24 = vpop.f32.mrf.mxu2 }
 0x3bb   :  { %v4648_v27 = vpop.eup %4647  ;;  %v2344_v55 = vadd.f32 %v2343_v23, %v2255_v60  ;;  %v2112_v53 = vadd.f32 %v2111_v24, %v6384_v21 }
 0x3bc   :  { %2485 = vst [vmem:[%s7515_s7 + $0x88] sm:$0xff] %v4648_v27  ;;  %v2200_v54 = vpop.f32.mrf.mxu3 }
 0x3bd   :  { %v4650_v37 = vpop.eup %4649  ;;  %4651 = vtanh.f32 %v2344_v55  ;;  %v2201_v51 = vadd.f32 %v2200_v54, %v2112_v53 }
 0x3be   :  { %2512 = vst [vmem:[%s7515_s7 + $0x390] sm:$0xff] %v4650_v37 }
 0x3bf   :  { %4653 = vtanh.f32 %v2201_v51  ;;  %2885 = vmatmul.bf16.gmra.mxu2 %v5517_v31 }
 0x3c0   :  { %v2257_v4 = vpop.f32.mrf.mxu0 }
 0x3c1   :  { %v2258_v42 = vadd.f32 %v2257_v4, %v6571_v22  ;;  %v2346_v7 = vpop.f32.mrf.mxu1  ;;  %2974 = vmatmul.bf16.gmra.mxu3 %v5692_v6 }
 0x3c2   :  { %v2114_v11 = vpop.f32.mrf.mxu2 }
 0x3c3   :  { %v4652_v48 = vpop.eup %4651  ;;  %v2347_v30 = vadd.f32 %v2346_v7, %v2258_v42  ;;  %v2115_v49 = vadd.f32 %v2114_v11, %v6384_v21  ;;  %2296 = vmatmul.bf16.gmra.mxu0 %v5743_v32  ;;  %v4452_v42 = vld [vmem:[%s7511_s5 + $0x148] sm:$0xf0] }
 0x3c4   :  { %2487 = vst [vmem:[%s7515_s7 + $0xc0] sm:$0xff] %v4652_v48  ;;  %2385 = vmatmul.bf16.gmra.mxu1 %v5935_v1  ;;  %v2203_v18 = vpop.f32.mrf.mxu3  ;;  %v4186_v7 = vor.u32 %v4452_v42, %v4185_v0 }
 0x3c5   :  { %v4654_v19 = vpop.eup %4653  ;;  %4655 = vtanh.f32 %v2347_v30  ;;  %v2204_v12 = vadd.f32 %v2203_v18, %v2115_v49 }
 0x3c6   :  { %2514 = vst [vmem:[%s7515_s7 + $0x3c8] sm:$0xff] %v4654_v19  ;;  %3230 = vmatpush.bf16.msra.mxu2 %v4186_v7 }
 0x3c7   :  { %4657 = vtanh.f32 %v2204_v12 }
 0x3c8   :  { %v2259_v29 = vpop.f32.mrf.mxu0 }
 0x3c9   :  { %v2260_v33 = vadd.f32 %v2259_v29, %v6571_v22  ;;  %v2348_v60 = vpop.f32.mrf.mxu1 }
 0x3ca   :  { %v2116_v23 = vpop.f32.mrf.mxu2 }
 0x3cb   :  { %v4656_v24 = vpop.eup %4655  ;;  %v2349_v27 = vadd.f32 %v2348_v60, %v2260_v33  ;;  %v2117_v55 = vadd.f32 %v2116_v23, %v6384_v21  ;;  %v4281_v33 = vld [vmem:[%s7511_s5 + $0x2f0] sm:$0xf]  ;;  %v4476_v60 = vld [vmem:[%s7511_s5 + $0x308] sm:$0xf0] }
 0x3cc   :  { %2489 = vst [vmem:[%s7515_s7 + $0xf8] sm:$0xff] %v4656_v24  ;;  %v2205_v53 = vpop.f32.mrf.mxu3 }
 0x3cd   :  { %v4658_v54 = vpop.eup %4657  ;;  %4659 = vtanh.f32 %v2349_v27  ;;  %v2206_v44 = vadd.f32 %v2205_v53, %v2117_v55  ;;  %v4282_v27 = vor.u32 %v4476_v60, %v4281_v33  ;;  %v4450_v55 = vld [vmem:[%s7511_s5 + $0x12c] sm:$0xf]  ;;  %v4179_v53 = vld [vmem:[%s7511_s5 + $0x144] sm:$0xf0]  ;;  %v4447_v60 = vld [vmem:[%s7511_s5 + $0xf4] sm:$0xf] }
 0x3ce   :  { %2516 = vst [vmem:[%s7515_s7 + $0x400] sm:$0xff] %v4658_v54  ;;  %v4182_v54 = vor.u32 %v4450_v55, %v4179_v53  ;;  %v4263_v55 = vld [vmem:[%s7511_s5 + $0x2cc] sm:$0xf0] }
 0x3cf   :  { %4661 = vtanh.f32 %v2206_v44  ;;  %2890 = vmatmul.bf16.gmra.mxu2 %v5545_v9  ;;  %3319 = vmatpush.bf16.msra.mxu3 %v4282_v27  ;;  %v4474_v44 = vld [vmem:[%s7511_s5 + $0x2ec] sm:$0xf]  ;;  %v4471_v27 = vld [vmem:[%s7511_s5 + $0x2b4] sm:$0xf] }
 0x3d0   :  { %v2262_v16 = vpop.f32.mrf.mxu0  ;;  %3052 = vmatpush.bf16.msra.mxu0 %v4182_v54  ;;  %v4266_v54 = vor.u32 %v4471_v27, %v4263_v55 }
 0x3d1   :  { %v2263_v37 = vadd.f32 %v2262_v16, %v6571_v22  ;;  %v2351_v51 = vpop.f32.mrf.mxu1  ;;  %2979 = vmatmul.bf16.gmra.mxu3 %v5704_v26  ;;  %v4275_v16 = vld [vmem:[%s7511_s5 + $0x304] sm:$0xf0] }
 0x3d2   :  { %v2119_v17 = vpop.f32.mrf.mxu2 }
 0x3d3   :  { %v4660_v43 = vpop.eup %4659  ;;  %v2352_v57 = vadd.f32 %v2351_v51, %v2263_v37  ;;  %v2120_v58 = vadd.f32 %v2119_v17, %v6384_v21  ;;  %2301 = vmatmul.bf16.gmra.mxu0 %v5767_v3  ;;  %v4278_v51 = vor.u32 %v4474_v44, %v4275_v16 }
 0x3d4   :  { %2491 = vst [vmem:[%s7515_s7 + $0x130] sm:$0xff] %v4660_v43  ;;  %2390 = vmatmul.bf16.gmra.mxu1 %v5963_v34  ;;  %v2208_v38 = vpop.f32.mrf.mxu3 }
 0x3d5   :  { %v4662_v52 = vpop.eup %4661  ;;  %4663 = vtanh.f32 %v2352_v57  ;;  %v2209_v4 = vadd.f32 %v2208_v38, %v2120_v58  ;;  %3141 = vmatpush.bf16.msra.mxu1 %v4278_v51  ;;  %v4444_v51 = vld [vmem:[%s7511_s5 + $0xbc] sm:$0xf] }
 0x3d6   :  { %2518 = vst [vmem:[%s7515_s7 + $0x438] sm:$0xff] %v4662_v52 }
 0x3d7   :  { %4665 = vtanh.f32 %v2209_v4 }
 0x3d8   :  { %v2264_v11 = vpop.f32.mrf.mxu0 }
 0x3d9   :  { %v2265_v48 = vadd.f32 %v2264_v11, %v6571_v22  ;;  %v2353_v30 = vpop.f32.mrf.mxu1  ;;  %3142 = vmatpush.bf16.msra.mxu1 %v4266_v54  ;;  %v4131_v54 = vld [vmem:[%s7511_s5 + $0x64] sm:$0xf0] }
 0x3da   :  { %v2121_v49 = vpop.f32.mrf.mxu2 }
 0x3db   :  { %v4664_v18 = vpop.eup %4663  ;;  %v2354_v19 = vadd.f32 %v2353_v30, %v2265_v48  ;;  %v2122_v12 = vadd.f32 %v2121_v49, %v6384_v21 }
 0x3dc   :  { %2493 = vst [vmem:[%s7515_s7 + $0x168] sm:$0xff] %v4664_v18  ;;  %v2210_v29 = vpop.f32.mrf.mxu3 }
 0x3dd   :  { %v4666_v23 = vpop.eup %4665  ;;  %4667 = vtanh.f32 %v2354_v19  ;;  %v2211_v24 = vadd.f32 %v2210_v29, %v2122_v12 }
 0x3de   :  { %2520 = vst [vmem:[%s7515_s7 + $0x470] sm:$0xff] %v4666_v23  ;;  %v4167_v23 = vld [vmem:[%s7511_s5 + $0x10c] sm:$0xf0] }
 0x3df   :  { %4669 = vtanh.f32 %v2211_v24  ;;  %2895 = vmatmul.bf16.gmra.mxu2 %v5561_v45  ;;  %v4170_v24 = vor.u32 %v4447_v60, %v4167_v23  ;;  %v4239_v60 = vld [vmem:[%s7511_s5 + $0x25c] sm:$0xf0] }
 0x3e0   :  { %v2267_v37 = vpop.f32.mrf.mxu0 }
 0x3e1   :  { %v2268_v17 = vadd.f32 %v2267_v37, %v6571_v22  ;;  %v2356_v43 = vpop.f32.mrf.mxu1  ;;  %2984 = vmatmul.bf16.gmra.mxu3 %v5740_v13  ;;  %3053 = vmatpush.bf16.msra.mxu0 %v4170_v24 }
 0x3e2   :  { %v2124_v57 = vpop.f32.mrf.mxu2 }
 0x3e3   :  { %v4668_v58 = vpop.eup %4667  ;;  %v2357_v38 = vadd.f32 %v2356_v43, %v2268_v17  ;;  %v2125_v52 = vadd.f32 %v2124_v57, %v6384_v21  ;;  %2306 = vmatmul.bf16.gmra.mxu0 %v5839_v25  ;;  %v4155_v17 = vld [vmem:[%s7511_s5 + $0xd4] sm:$0xf0]  ;;  %v4468_v43 = vld [vmem:[%s7511_s5 + $0x27c] sm:$0xf] }
 0x3e4   :  { %2495 = vst [vmem:[%s7515_s7 + $0x1a0] sm:$0xff] %v4668_v58  ;;  %2395 = vmatmul.bf16.gmra.mxu1 %v5979_v46  ;;  %v2213_v4 = vpop.f32.mrf.mxu3 }
 0x3e5   :  { %v4670_v0 = vpop.eup %4669  ;;  %4671 = vtanh.f32 %v2357_v38  ;;  %v2214_v42 = vadd.f32 %v2213_v4, %v2125_v52  ;;  %v4158_v52 = vor.u32 %v4444_v51, %v4155_v17  ;;  %v4251_v4 = vld [vmem:[%s7511_s5 + $0x294] sm:$0xf0] }
 0x3e6   :  { %2522 = vst [vmem:[%s7515_s7 + $0x4a8] sm:$0xff] %v4670_v0 }
 0x3e7   :  { %4673 = vtanh.f32 %v2214_v42  ;;  %v4254_v42 = vor.u32 %v4468_v43, %v4251_v4  ;;  %3054 = vmatpush.bf16.msra.mxu0 %v4158_v52  ;;  %v4227_v43 = vld [vmem:[%s7511_s5 + $0x224] sm:$0xf0] }
 0x3e8   :  { %v2269_v7 = vpop.f32.mrf.mxu0 }
 0x3e9   :  { %v2270_v11 = vadd.f32 %v2269_v7, %v6571_v22  ;;  %v2358_v48 = vpop.f32.mrf.mxu1  ;;  %3143 = vmatpush.bf16.msra.mxu1 %v4254_v42 }
 0x3ea   :  { %v2126_v30 = vpop.f32.mrf.mxu2 }
 0x3eb   :  { %v4672_v49 = vpop.eup %4671  ;;  %v2359_v18 = vadd.f32 %v2358_v48, %v2270_v11  ;;  %v2127_v19 = vadd.f32 %v2126_v30, %v6384_v21  ;;  %v4173_v48 = vld [vmem:[%s7511_s5 + $0xf8] sm:$0xf]  ;;  %v4449_v30 = vld [vmem:[%s7511_s5 + $0x110] sm:$0xf0] }
 0x3ec   :  { %2497 = vst [vmem:[%s7515_s7 + $0x1d8] sm:$0xff] %v4672_v49  ;;  %v2215_v12 = vpop.f32.mrf.mxu3  ;;  %v4174_v49 = vor.u32 %v4449_v30, %v4173_v48  ;;  %v4459_v30 = vld [vmem:[%s7511_s5 + $0x1d4] sm:$0xf] }
 0x3ed   :  { %v4674_v29 = vpop.eup %4673  ;;  %4675 = vtanh.f32 %v2359_v18  ;;  %v2216_v33 = vadd.f32 %v2215_v12, %v2127_v19  ;;  %v4441_v18 = vld [vmem:[%s7511_s5 + $0x84] sm:$0xf]  ;;  %v4143_v19 = vld [vmem:[%s7511_s5 + $0x9c] sm:$0xf0] }
 0x3ee   :  { %2524 = vst [vmem:[%s7515_s7 + $0x4e0] sm:$0xff] %v4674_v29  ;;  %v4465_v12 = vld [vmem:[%s7511_s5 + $0x244] sm:$0xf]  ;;  %3231 = vmatpush.bf16.msra.mxu2 %v4174_v49  ;;  %v4215_v49 = vld [vmem:[%s7511_s5 + $0x1ec] sm:$0xf0] }
 0x3ef   :  { %4677 = vtanh.f32 %v2216_v33  ;;  %2900 = vmatmul.bf16.gmra.mxu2 %v5589_v28  ;;  %v4146_v33 = vor.u32 %v4441_v18, %v4143_v19  ;;  %v4242_v27 = vor.u32 %v4465_v12, %v4239_v60 }
 0x3f0   :  { %v2272_v53 = vpop.f32.mrf.mxu0 }
 0x3f1   :  { %v2273_v44 = vadd.f32 %v2272_v53, %v6571_v22  ;;  %v2361_v16 = vpop.f32.mrf.mxu1  ;;  %2989 = vmatmul.bf16.gmra.mxu3 %v5761_v63  ;;  %3055 = vmatpush.bf16.msra.mxu0 %v4146_v33  ;;  %v4438_v53 = vld [vmem:[%s7511_s5 + $0x4c] sm:$0xf] }
 0x3f2   :  { %v2129_v37 = vpop.f32.mrf.mxu2  ;;  %3144 = vmatpush.bf16.msra.mxu1 %v4242_v27  ;;  %v4134_v17 = vor.u32 %v4438_v53, %v4131_v54 }
 0x3f3   :  { %v4676_v57 = vpop.eup %4675  ;;  %v2362_v58 = vadd.f32 %v2361_v16, %v2273_v44  ;;  %v2130_v38 = vadd.f32 %v2129_v37, %v6384_v21  ;;  %2311 = vmatmul.bf16.gmra.mxu0 %v5851_v41  ;;  %v4462_v44 = vld [vmem:[%s7511_s5 + $0x20c] sm:$0xf] }
 0x3f4   :  { %2499 = vst [vmem:[%s7515_s7 + $0x210] sm:$0xff] %v4676_v57  ;;  %2400 = vmatmul.bf16.gmra.mxu1 %v6007_v61  ;;  %v2218_v0 = vpop.f32.mrf.mxu3  ;;  %v4230_v52 = vor.u32 %v4462_v44, %v4227_v43 }
 0x3f5   :  { %v4678_v7 = vpop.eup %4677  ;;  %4679 = vtanh.f32 %v2362_v58  ;;  %v2219_v11 = vadd.f32 %v2218_v0, %v2130_v38  ;;  %v4269_v58 = vld [vmem:[%s7511_s5 + $0x2b8] sm:$0xf]  ;;  %v4473_v38 = vld [vmem:[%s7511_s5 + $0x2d0] sm:$0xf0]  ;;  %3056 = vmatpush.bf16.msra.mxu0 %v4134_v17 }
 0x3f6   :  { %2526 = vst [vmem:[%s7515_s7 + $0x518] sm:$0xff] %v4678_v7  ;;  %v4270_v42 = vor.u32 %v4473_v38, %v4269_v58  ;;  %v4435_v7 = vld [vmem:[%s7511_s5 + $0x14] sm:$0xf]  ;;  %3145 = vmatpush.bf16.msra.mxu1 %v4230_v52 }
 0x3f7   :  { %4681 = vtanh.f32 %v2219_v11  ;;  %v4119_v11 = vld [vmem:[%s7511_s5 + $0x2c] sm:$0xf0] }
 0x3f8   :  { %v2274_v29 = vpop.f32.mrf.mxu0  ;;  %3320 = vmatpush.bf16.msra.mxu3 %v4270_v42  ;;  %v4122_v48 = vor.u32 %v4435_v7, %v4119_v11 }
 0x3f9   :  { %v2275_v23 = vadd.f32 %v2274_v29, %v6571_v22  ;;  %v2363_v24 = vpop.f32.mrf.mxu1  ;;  %v4218_v29 = vor.u32 %v4459_v30, %v4215_v49 }
 0x3fa   :  { %v2131_v55 = vpop.f32.mrf.mxu2  ;;  %3057 = vmatpush.bf16.msra.mxu0 %v4122_v48 }
 0x3fb   :  { %v4680_v16 = vpop.eup %4679  ;;  %v2364_v37 = vadd.f32 %v2363_v24, %v2275_v23  ;;  %v2132_v51 = vadd.f32 %v2131_v55, %v6384_v21  ;;  %3146 = vmatpush.bf16.msra.mxu1 %v4218_v29 }
 0x3fc   :  { %2501 = vst [vmem:[%s7515_s7 + $0x248] sm:$0xff] %v4680_v16  ;;  %v2220_v57 = vpop.f32.mrf.mxu3 }
 0x3fd   :  { %v4682_v4 = vpop.eup %4681  ;;  %4683 = vtanh.f32 %v2364_v37  ;;  %v2221_v0 = vadd.f32 %v2220_v57, %v2132_v51 }
 0x3fe   :  { %2528 = vst [vmem:[%s7515_s7 + $0x550] sm:$0xff] %v4682_v4 }
 0x3ff   :  { %4685 = vtanh.f32 %v2221_v0  ;;  %2905 = vmatmul.bf16.gmra.mxu2 %v5605_v59 }
 0x400   :  { %v2277_v18 = vpop.f32.mrf.mxu0 }
 0x401   :  { %v2278_v19 = vadd.f32 %v2277_v18, %v6571_v22  ;;  %v2366_v12 = vpop.f32.mrf.mxu1  ;;  %2994 = vmatmul.bf16.gmra.mxu3 %v5833_v14 }
 0x402   :  { %v2134_v33 = vpop.f32.mrf.mxu2 }
 0x403   :  { %v4684_v60 = vpop.eup %4683  ;;  %v2367_v23 = vadd.f32 %v2366_v12, %v2278_v19  ;;  %v2135_v24 = vadd.f32 %v2134_v33, %v6384_v21  ;;  %2316 = vmatmul.bf16.gmra.mxu0 %v5875_v39  ;;  %v4161_v19 = vld [vmem:[%s7511_s5 + $0xc0] sm:$0xf]  ;;  %v4446_v12 = vld [vmem:[%s7511_s5 + $0xd8] sm:$0xf0] }
 0x404   :  { %2503 = vst [vmem:[%s7515_s7 + $0x280] sm:$0xff] %v4684_v60  ;;  %2405 = vmatmul.bf16.gmra.mxu1 %v6023_v15  ;;  %v2223_v27 = vpop.f32.mrf.mxu3  ;;  %v4162_v29 = vor.u32 %v4446_v12, %v4161_v19 }
 0x405   :  { %v4686_v55 = vpop.eup %4685  ;;  %4687 = vtanh.f32 %v2367_v23  ;;  %v2224_v53 = vadd.f32 %v2223_v27, %v2135_v24 }
 0x406   :  { %2530 = vst [vmem:[%s7515_s7 + $0x588] sm:$0xff] %v4686_v55  ;;  %3232 = vmatpush.bf16.msra.mxu2 %v4162_v29 }
 0x407   :  { %4689 = vtanh.f32 %v2224_v53 }
 0x408   :  { %v2279_v54 = vpop.f32.mrf.mxu0 }
 0x409   :  { %v2280_v44 = vadd.f32 %v2279_v54, %v6571_v22  ;;  %v2368_v16 = vpop.f32.mrf.mxu1 }
 0x40a   :  { %v2136_v37 = vpop.f32.mrf.mxu2 }
 0x40b   :  { %v4688_v51 = vpop.eup %4687  ;;  %v2369_v17 = vadd.f32 %v2368_v16, %v2280_v44  ;;  %v2137_v43 = vadd.f32 %v2136_v37, %v6384_v21  ;;  %v4257_v44 = vld [vmem:[%s7511_s5 + $0x280] sm:$0xf]  ;;  %v4470_v16 = vld [vmem:[%s7511_s5 + $0x298] sm:$0xf0] }
 0x40c   :  { %2505 = vst [vmem:[%s7515_s7 + $0x2b8] sm:$0xff] %v4688_v51  ;;  %v2225_v57 = vpop.f32.mrf.mxu3 }
 0x40d   :  { %v4690_v58 = vpop.eup %4689  ;;  %4691 = vtanh.f32 %v2369_v17  ;;  %v2226_v38 = vadd.f32 %v2225_v57, %v2137_v43  ;;  %v4258_v17 = vor.u32 %v4470_v16, %v4257_v44 }
 0x40e   :  { %2532 = vst [vmem:[%s7515_s7 + $0x5c0] sm:$0xff] %v4690_v58 }
 0x40f   :  { %4693 = vtanh.f32 %v2226_v38  ;;  %2910 = vmatmul.bf16.gmra.mxu2 %v5645_v40  ;;  %3321 = vmatpush.bf16.msra.mxu3 %v4258_v17 }
 0x410   :  { %v2282_v52 = vpop.f32.mrf.mxu0 }
 0x411   :  { %v2283_v4 = vadd.f32 %v2282_v52, %v6571_v22  ;;  %v2371_v0 = vpop.f32.mrf.mxu1  ;;  %2999 = vmatmul.bf16.gmra.mxu3 %v5848_v50 }
 0x412   :  { %v2139_v42 = vpop.f32.mrf.mxu2 }
 0x413   :  { %v4692_v7 = vpop.eup %4691  ;;  %v2372_v11 = vadd.f32 %v2371_v0, %v2283_v4  ;;  %v2140_v48 = vadd.f32 %v2139_v42, %v6384_v21  ;;  %2321 = vmatmul.bf16.gmra.mxu0 %v5895_v20 }
 0x414   :  { %2507 = vst [vmem:[%s7515_s7 + $0x2f0] sm:$0xff] %v4692_v7  ;;  %2410 = vmatmul.bf16.gmra.mxu1 %v6060_v10  ;;  %v2228_v30 = vpop.f32.mrf.mxu3 }
 0x415   :  { %v4694_v49 = vpop.eup %4693  ;;  %4695 = vtanh.f32 %v2372_v11  ;;  %v2229_v18 = vadd.f32 %v2228_v30, %v2140_v48 }
 0x416   :  { %2534 = vst [vmem:[%s7515_s7 + $0x5f8] sm:$0xff] %v4694_v49 }
 0x417   :  { %4697 = vtanh.f32 %v2229_v18 }
 0x418   :  { %v2284_v33 = vpop.f32.mrf.mxu0 }
 0x419   :  { %v2285_v60 = vadd.f32 %v2284_v33, %v6571_v22  ;;  %v2373_v23 = vpop.f32.mrf.mxu1 }
 0x41a   :  { %v2141_v24 = vpop.f32.mrf.mxu2 }
 0x41b   :  { %v4696_v27 = vpop.eup %4695  ;;  %v2374_v55 = vadd.f32 %v2373_v23, %v2285_v60  ;;  %v2142_v53 = vadd.f32 %v2141_v24, %v6384_v21  ;;  %v6900_v60 = vld [vmem:[%s7514_s6 + $0x4] sm:$0x7] }
 0x41c   :  { %2509 = vst [vmem:[%s7515_s7 + $0x328] sm:$0xff] %v4696_v27  ;;  %v2230_v54 = vpop.f32.mrf.mxu3 }
 0x41d   :  { %v4698_v37 = vpop.eup %4697  ;;  %4699 = vtanh.f32 %v2374_v55  ;;  %v2231_v51 = vadd.f32 %v2230_v54, %v2142_v53 }
 0x41e   :  { %2536 = vst [vmem:[%s7515_s7 + $0x630] sm:$0xff] %v4698_v37 }
 0x41f   :  { %4701 = vtanh.f32 %v2231_v51  ;;  %2915 = vmatmul.bf16.gmra.mxu2 %v5659_v2 }
 0x420   :  { %v2287_v43 = vpop.f32.mrf.mxu0 }
 0x421   :  { %v2288_v57 = vadd.f32 %v2287_v43, %v6571_v22  ;;  %v2376_v58 = vpop.f32.mrf.mxu1  ;;  %3004 = vmatmul.bf16.gmra.mxu3 %v5872_v36 }
 0x422   :  { %v2144_v38 = vpop.f32.mrf.mxu2 }
 0x423   :  { %v4700_v52 = vpop.eup %4699  ;;  %v2377_v4 = vadd.f32 %v2376_v58, %v2288_v57  ;;  %v2145_v0 = vadd.f32 %v2144_v38, %v6384_v21  ;;  %3058 = vmatmul.bf16.vlgmr.msra.gmra.mxu0 %v5501_v62  ;;  %v4149_v57 = vld [vmem:[%s7511_s5 + $0x88] sm:$0xf]  ;;  %v4443_v58 = vld [vmem:[%s7511_s5 + $0xa0] sm:$0xf0] }
 0x424   :  { %2511 = vst [vmem:[%s7515_s7 + $0x360] sm:$0xff] %v4700_v52  ;;  %3147 = vmatmul.bf16.vlgmr.msra.gmra.mxu1 %v5656_v35  ;;  %v2233_v42 = vpop.f32.mrf.mxu3  ;;  %v4150_v38 = vor.u32 %v4443_v58, %v4149_v57 }
 0x425   :  { %v4702_v7 = vpop.eup %4701  ;;  %4703 = vtanh.f32 %v2377_v4  ;;  %v2234_v11 = vadd.f32 %v2233_v42, %v2145_v0 }
 0x426   :  { %2538 = vst [vmem:[%s7515_s7 + $0x668] sm:$0xff] %v4702_v7  ;;  %3233 = vmatpush.bf16.msra.mxu2 %v4150_v38 }
 0x427   :  { %4705 = vtanh.f32 %v2234_v11 }
 0x428   :  { %v2289_v48 = vpop.f32.mrf.mxu0 }
 0x429   :  { %v2290_v30 = vadd.f32 %v2289_v48, %v6571_v22  ;;  %v2378_v49 = vpop.f32.mrf.mxu1 }
 0x42a   :  { %v2146_v18 = vpop.f32.mrf.mxu2 }
 0x42b   :  { %v4704_v19 = vpop.eup %4703  ;;  %v2379_v12 = vadd.f32 %v2378_v49, %v2290_v30  ;;  %v2147_v29 = vadd.f32 %v2146_v18, %v6384_v21  ;;  %v6907_v21 = vperm.slane %v6900_v60, 0  ;;  %v4245_v49 = vld [vmem:[%s7511_s5 + $0x248] sm:$0xf]  ;;  %v4467_v18 = vld [vmem:[%s7511_s5 + $0x260] sm:$0xf0] }
 0x42c   :  { %2513 = vst [vmem:[%s7515_s7 + $0x398] sm:$0xff] %v4704_v19  ;;  %v2235_v33 = vpop.f32.mrf.mxu3 }
 0x42d   :  { %v4706_v23 = vpop.eup %4705  ;;  %4707 = vtanh.f32 %v2379_v12  ;;  %v2236_v24 = vadd.f32 %v2235_v33, %v2147_v29  ;;  %v4246_v29 = vor.u32 %v4467_v18, %v4245_v49 }
 0x42e   :  { %2540 = vst [vmem:[%s7515_s7 + $0x6a0] sm:$0xff] %v4706_v23 }
 0x42f   :  { %4709 = vtanh.f32 %v2236_v24  ;;  %2920 = vmatmul.bf16.gmra.mxu2 %v5695_v8  ;;  %3322 = vmatpush.bf16.msra.mxu3 %v4246_v29 }
 0x430   :  { %v2292_v27 = vpop.f32.mrf.mxu0 }
 0x431   :  { %v2293_v55 = vadd.f32 %v2292_v27, %v6571_v22  ;;  %v2381_v53 = vpop.f32.mrf.mxu1  ;;  %3009 = vmatmul.bf16.gmra.mxu3 %v5889_v5 }
 0x432   :  { %v2881_v54 = vpop.f32.mrf.mxu2 }
 0x433   :  { %v4708_v44 = vpop.eup %4707  ;;  %v2382_v16 = vadd.f32 %v2381_v53, %v2293_v55  ;;  %v2882_v37 = vadd.f32 %v2881_v54, %v6907_v21  ;;  %3063 = vmatmul.bf16.gmra.mxu0 %v5517_v31 }
 0x434   :  { %2515 = vst [vmem:[%s7515_s7 + $0x3d0] sm:$0xff] %v4708_v44  ;;  %3152 = vmatmul.bf16.gmra.mxu1 %v5692_v6  ;;  %v2970_v51 = vpop.f32.mrf.mxu3 }
 0x435   :  { %v4710_v17 = vpop.eup %4709  ;;  %4711 = vtanh.f32 %v2382_v16  ;;  %v2971_v43 = vadd.f32 %v2970_v51, %v2882_v37 }
 0x436   :  { %2542 = vst [vmem:[%s7515_s7 + $0x6d8] sm:$0xff] %v4710_v17 }
 0x437   :  { %4713 = vtanh.f32 %v2971_v43 }
 0x438   :  { %v2294_v52 = vpop.f32.mrf.mxu0 }
 0x439   :  { %v2295_v4 = vadd.f32 %v2294_v52, %v6571_v22  ;;  %v2383_v0 = vpop.f32.mrf.mxu1 }
 0x43a   :  { %v2883_v42 = vpop.f32.mrf.mxu2 }
 0x43b   :  { %v4712_v7 = vpop.eup %4711  ;;  %v2384_v11 = vadd.f32 %v2383_v0, %v2295_v4  ;;  %v2884_v48 = vadd.f32 %v2883_v42, %v6907_v21 }
 0x43c   :  { %2517 = vst [vmem:[%s7515_s7 + $0x408] sm:$0xff] %v4712_v7  ;;  %v2972_v30 = vpop.f32.mrf.mxu3 }
 0x43d   :  { %v4714_v19 = vpop.eup %4713  ;;  %4715 = vtanh.f32 %v2384_v11  ;;  %v2973_v12 = vadd.f32 %v2972_v30, %v2884_v48 }
 0x43e   :  { %3502 = vst [vmem:[%s7515_s7 + $0x20] sm:$0xff] %v4714_v19 }
 0x43f   :  { %4717 = vtanh.f32 %v2973_v12  ;;  %2925 = vmatmul.bf16.gmra.mxu2 %v5707_v56 }
 0x440   :  { %v2297_v33 = vpop.f32.mrf.mxu0 }
 0x441   :  { %v2298_v23 = vadd.f32 %v2297_v33, %v6571_v22  ;;  %v2386_v24 = vpop.f32.mrf.mxu1  ;;  %3014 = vmatmul.bf16.gmra.mxu3 %v5919_v47 }
 0x442   :  { %v2886_v27 = vpop.f32.mrf.mxu2 }
 0x443   :  { %v4716_v55 = vpop.eup %4715  ;;  %v2387_v53 = vadd.f32 %v2386_v24, %v2298_v23  ;;  %v2887_v54 = vadd.f32 %v2886_v27, %v6907_v21  ;;  %3068 = vmatmul.bf16.gmra.mxu0 %v5545_v9  ;;  %v4137_v23 = vld [vmem:[%s7511_s5 + $0x50] sm:$0xf]  ;;  %v4440_v24 = vld [vmem:[%s7511_s5 + $0x68] sm:$0xf0] }
 0x444   :  { %2519 = vst [vmem:[%s7515_s7 + $0x440] sm:$0xff] %v4716_v55  ;;  %3157 = vmatmul.bf16.gmra.mxu1 %v5704_v26  ;;  %v2975_v44 = vpop.f32.mrf.mxu3  ;;  %v4138_v27 = vor.u32 %v4440_v24, %v4137_v23 }
 0x445   :  { %v4718_v16 = vpop.eup %4717  ;;  %4719 = vtanh.f32 %v2387_v53  ;;  %v2976_v37 = vadd.f32 %v2975_v44, %v2887_v54 }
 0x446   :  { %3506 = vst [vmem:[%s7515_s7 + $0x58] sm:$0xff] %v4718_v16  ;;  %3234 = vmatpush.bf16.msra.mxu2 %v4138_v27 }
 0x447   :  { %4721 = vtanh.f32 %v2976_v37 }
 0x448   :  { %v2299_v51 = vpop.f32.mrf.mxu0 }
 0x449   :  { %v2300_v17 = vadd.f32 %v2299_v51, %v6571_v22  ;;  %v2388_v43 = vpop.f32.mrf.mxu1 }
 0x44a   :  { %v2888_v57 = vpop.f32.mrf.mxu2 }
 0x44b   :  { %v4720_v58 = vpop.eup %4719  ;;  %v2389_v38 = vadd.f32 %v2388_v43, %v2300_v17  ;;  %v2889_v52 = vadd.f32 %v2888_v57, %v6907_v21  ;;  %v4233_v43 = vld [vmem:[%s7511_s5 + $0x210] sm:$0xf]  ;;  %v4464_v57 = vld [vmem:[%s7511_s5 + $0x228] sm:$0xf0] }
 0x44c   :  { %2521 = vst [vmem:[%s7515_s7 + $0x478] sm:$0xff] %v4720_v58  ;;  %v2977_v4 = vpop.f32.mrf.mxu3 }
 0x44d   :  { %v4722_v0 = vpop.eup %4721  ;;  %4723 = vtanh.f32 %v2389_v38  ;;  %v2978_v42 = vadd.f32 %v2977_v4, %v2889_v52  ;;  %v4234_v52 = vor.u32 %v4464_v57, %v4233_v43 }
 0x44e   :  { %3509 = vst [vmem:[%s7515_s7 + $0x90] sm:$0xff] %v4722_v0 }
 0x44f   :  { %4725 = vtanh.f32 %v2978_v42  ;;  %2930 = vmatmul.bf16.gmra.mxu2 %v5743_v32  ;;  %3323 = vmatpush.bf16.msra.mxu3 %v4234_v52 }
 0x450   :  { %v2302_v7 = vpop.f32.mrf.mxu0 }
 0x451   :  { %v2303_v11 = vadd.f32 %v2302_v7, %v6571_v22  ;;  %v2391_v48 = vpop.f32.mrf.mxu1  ;;  %3019 = vmatmul.bf16.gmra.mxu3 %v5935_v1 }
 0x452   :  { %v2891_v30 = vpop.f32.mrf.mxu2 }
 0x453   :  { %v4724_v49 = vpop.eup %4723  ;;  %v2392_v18 = vadd.f32 %v2391_v48, %v2303_v11  ;;  %v2892_v19 = vadd.f32 %v2891_v30, %v6907_v21  ;;  %3073 = vmatmul.bf16.gmra.mxu0 %v5561_v45 }
 0x454   :  { %2523 = vst [vmem:[%s7515_s7 + $0x4b0] sm:$0xff] %v4724_v49  ;;  %3162 = vmatmul.bf16.gmra.mxu1 %v5740_v13  ;;  %v2980_v12 = vpop.f32.mrf.mxu3 }
 0x455   :  { %v4726_v29 = vpop.eup %4725  ;;  %4727 = vtanh.f32 %v2392_v18  ;;  %v2981_v33 = vadd.f32 %v2980_v12, %v2892_v19 }
 0x456   :  { %3512 = vst [vmem:[%s7515_s7 + $0xc8] sm:$0xff] %v4726_v29 }
 0x457   :  { %4729 = vtanh.f32 %v2981_v33 }
 0x458   :  { %v2304_v55 = vpop.f32.mrf.mxu0 }
 0x459   :  { %v2305_v53 = vadd.f32 %v2304_v55, %v6571_v22  ;;  %v2393_v54 = vpop.f32.mrf.mxu1 }
 0x45a   :  { %v2893_v44 = vpop.f32.mrf.mxu2 }
 0x45b   :  { %v4728_v16 = vpop.eup %4727  ;;  %v2394_v37 = vadd.f32 %v2393_v54, %v2305_v53  ;;  %v2894_v51 = vadd.f32 %v2893_v44, %v6907_v21 }
 0x45c   :  { %2525 = vst [vmem:[%s7515_s7 + $0x4e8] sm:$0xff] %v4728_v16  ;;  %v2982_v17 = vpop.f32.mrf.mxu3 }
 0x45d   :  { %v4730_v58 = vpop.eup %4729  ;;  %4731 = vtanh.f32 %v2394_v37  ;;  %v2983_v38 = vadd.f32 %v2982_v17, %v2894_v51 }
 0x45e   :  { %3515 = vst [vmem:[%s7515_s7 + $0x100] sm:$0xff] %v4730_v58 }
 0x45f   :  { %4733 = vtanh.f32 %v2983_v38  ;;  %2935 = vmatmul.bf16.gmra.mxu2 %v5767_v3 }
 0x460   :  { %v2307_v4 = vpop.f32.mrf.mxu0 }
 0x461   :  { %v2308_v0 = vadd.f32 %v2307_v4, %v6571_v22  ;;  %v2396_v42 = vpop.f32.mrf.mxu1  ;;  %3024 = vmatmul.bf16.gmra.mxu3 %v5963_v34 }
 0x462   :  { %v2896_v7 = vpop.f32.mrf.mxu2 }
 0x463   :  { %v4732_v11 = vpop.eup %4731  ;;  %v2397_v48 = vadd.f32 %v2396_v42, %v2308_v0  ;;  %v2897_v30 = vadd.f32 %v2896_v7, %v6907_v21  ;;  %3078 = vmatmul.bf16.gmra.mxu0 %v5589_v28  ;;  %v4125_v0 = vld [vmem:[%s7511_s5 + $0x18] sm:$0xf]  ;;  %v4437_v42 = vld [vmem:[%s7511_s5 + $0x30] sm:$0xf0] }
 0x464   :  { %2527 = vst [vmem:[%s7515_s7 + $0x520] sm:$0xff] %v4732_v11  ;;  %3167 = vmatmul.bf16.gmra.mxu1 %v5761_v63  ;;  %v2985_v49 = vpop.f32.mrf.mxu3  ;;  %v4126_v7 = vor.u32 %v4437_v42, %v4125_v0 }
 0x465   :  { %v4734_v18 = vpop.eup %4733  ;;  %4735 = vtanh.f32 %v2397_v48  ;;  %v2986_v19 = vadd.f32 %v2985_v49, %v2897_v30 }
 0x466   :  { %3518 = vst [vmem:[%s7515_s7 + $0x138] sm:$0xff] %v4734_v18  ;;  %3235 = vmatpush.bf16.msra.mxu2 %v4126_v7 }
 0x467   :  { %4737 = vtanh.f32 %v2986_v19 }
 0x468   :  { %v2309_v12 = vpop.f32.mrf.mxu0 }
 0x469   :  { %v2310_v29 = vadd.f32 %v2309_v12, %v6571_v22  ;;  %v2398_v33 = vpop.f32.mrf.mxu1 }
 0x46a   :  { %v2898_v23 = vpop.f32.mrf.mxu2 }
 0x46b   :  { %v4736_v24 = vpop.eup %4735  ;;  %v2399_v27 = vadd.f32 %v2398_v33, %v2310_v29  ;;  %v2899_v55 = vadd.f32 %v2898_v23, %v6907_v21  ;;  %v4221_v33 = vld [vmem:[%s7511_s5 + $0x1d8] sm:$0xf]  ;;  %v4461_v23 = vld [vmem:[%s7511_s5 + $0x1f0] sm:$0xf0] }
 0x46c   :  { %2529 = vst [vmem:[%s7515_s7 + $0x558] sm:$0xff] %v4736_v24  ;;  %v2987_v53 = vpop.f32.mrf.mxu3 }
 0x46d   :  { %v4738_v54 = vpop.eup %4737  ;;  %4739 = vtanh.f32 %v2399_v27  ;;  %v2988_v44 = vadd.f32 %v2987_v53, %v2899_v55  ;;  %v4222_v55 = vor.u32 %v4461_v23, %v4221_v33 }
 0x46e   :  { %3521 = vst [vmem:[%s7515_s7 + $0x170] sm:$0xff] %v4738_v54 }
 0x46f   :  { %4741 = vtanh.f32 %v2988_v44  ;;  %2940 = vmatmul.bf16.gmra.mxu2 %v5839_v25  ;;  %3324 = vmatpush.bf16.msra.mxu3 %v4222_v55 }
 0x470   :  { %v2312_v16 = vpop.f32.mrf.mxu0 }
 0x471   :  { %v2313_v37 = vadd.f32 %v2312_v16, %v6571_v22  ;;  %v2401_v51 = vpop.f32.mrf.mxu1  ;;  %3029 = vmatmul.bf16.gmra.mxu3 %v5979_v46 }
 0x472   :  { %v2901_v17 = vpop.f32.mrf.mxu2 }
 0x473   :  { %v4740_v43 = vpop.eup %4739  ;;  %v2402_v57 = vadd.f32 %v2401_v51, %v2313_v37  ;;  %v2902_v58 = vadd.f32 %v2901_v17, %v6907_v21  ;;  %3083 = vmatmul.bf16.gmra.mxu0 %v5605_v59 }
 0x474   :  { %2531 = vst [vmem:[%s7515_s7 + $0x590] sm:$0xff] %v4740_v43  ;;  %3172 = vmatmul.bf16.gmra.mxu1 %v5833_v14  ;;  %v2990_v38 = vpop.f32.mrf.mxu3 }
 0x475   :  { %v4742_v52 = vpop.eup %4741  ;;  %4743 = vtanh.f32 %v2402_v57  ;;  %v2991_v4 = vadd.f32 %v2990_v38, %v2902_v58 }
 0x476   :  { %3524 = vst [vmem:[%s7515_s7 + $0x1a8] sm:$0xff] %v4742_v52 }
 0x477   :  { %4745 = vtanh.f32 %v2991_v4 }
 0x478   :  { %v2314_v11 = vpop.f32.mrf.mxu0 }
 0x479   :  { %v2315_v48 = vadd.f32 %v2314_v11, %v6571_v22  ;;  %v2403_v30 = vpop.f32.mrf.mxu1 }
 0x47a   :  { %v2903_v49 = vpop.f32.mrf.mxu2 }
 0x47b   :  { %v4744_v18 = vpop.eup %4743  ;;  %v2404_v19 = vadd.f32 %v2403_v30, %v2315_v48  ;;  %v2904_v12 = vadd.f32 %v2903_v49, %v6907_v21 }
 0x47c   :  { %2533 = vst [vmem:[%s7515_s7 + $0x5c8] sm:$0xff] %v4744_v18  ;;  %v2992_v29 = vpop.f32.mrf.mxu3 }
 0x47d   :  { %v4746_v24 = vpop.eup %4745  ;;  %4747 = vtanh.f32 %v2404_v19  ;;  %v2993_v27 = vadd.f32 %v2992_v29, %v2904_v12 }
 0x47e   :  { %3527 = vst [vmem:[%s7515_s7 + $0x1e0] sm:$0xff] %v4746_v24 }
 0x47f   :  { %4749 = vtanh.f32 %v2993_v27  ;;  %2945 = vmatmul.bf16.gmra.mxu2 %v5851_v41 }
 0x480   :  { %v2317_v53 = vpop.f32.mrf.mxu0 }
 0x481   :  { %v2318_v54 = vadd.f32 %v2317_v53, %v6571_v22  ;;  %v2406_v44 = vpop.f32.mrf.mxu1  ;;  %3034 = vmatmul.bf16.gmra.mxu3 %v6007_v61 }
 0x482   :  { %v2906_v16 = vpop.f32.mrf.mxu2 }
 0x483   :  { %v4748_v37 = vpop.eup %4747  ;;  %v2407_v51 = vadd.f32 %v2406_v44, %v2318_v54  ;;  %v2907_v17 = vadd.f32 %v2906_v16, %v6907_v21  ;;  %3088 = vmatmul.bf16.gmra.mxu0 %v5645_v40 }
 0x484   :  { %2535 = vst [vmem:[%s7515_s7 + $0x600] sm:$0xff] %v4748_v37  ;;  %3177 = vmatmul.bf16.gmra.mxu1 %v5848_v50  ;;  %v2995_v43 = vpop.f32.mrf.mxu3 }
 0x485   :  { %v4750_v57 = vpop.eup %4749  ;;  %4751 = vtanh.f32 %v2407_v51  ;;  %v2996_v58 = vadd.f32 %v2995_v43, %v2907_v17 }
 0x486   :  { %3530 = vst [vmem:[%s7515_s7 + $0x218] sm:$0xff] %v4750_v57 }
 0x487   :  { %4753 = vtanh.f32 %v2996_v58 }
 0x488   :  { %v2319_v38 = vpop.f32.mrf.mxu0 }
 0x489   :  { %v2320_v52 = vadd.f32 %v2319_v38, %v6571_v22  ;;  %v2408_v4 = vpop.f32.mrf.mxu1 }
 0x48a   :  { %v2908_v0 = vpop.f32.mrf.mxu2 }
 0x48b   :  { %v4752_v42 = vpop.eup %4751  ;;  %v2409_v7 = vadd.f32 %v2408_v4, %v2320_v52  ;;  %v2909_v11 = vadd.f32 %v2908_v0, %v6907_v21  ;;  %v7082_v52 = vperm.slane %v6900_v60, 1 }
 0x48c   :  { %2537 = vst [vmem:[%s7515_s7 + $0x638] sm:$0xff] %v4752_v42  ;;  %v2997_v48 = vpop.f32.mrf.mxu3 }
 0x48d   :  { %v4754_v30 = vpop.eup %4753  ;;  %4755 = vtanh.f32 %v2409_v7  ;;  %v2998_v49 = vadd.f32 %v2997_v48, %v2909_v11 }
 0x48e   :  { %3533 = vst [vmem:[%s7515_s7 + $0x250] sm:$0xff] %v4754_v30 }
 0x48f   :  { %4757 = vtanh.f32 %v2998_v49  ;;  %2950 = vmatmul.bf16.gmra.mxu2 %v5875_v39 }
 0x490   :  { %v2322_v18 = vpop.f32.mrf.mxu0 }
 0x491   :  { %v2323_v19 = vadd.f32 %v2322_v18, %v6571_v22  ;;  %v2411_v12 = vpop.f32.mrf.mxu1  ;;  %3039 = vmatmul.bf16.gmra.mxu3 %v6023_v15 }
 0x492   :  { %v2911_v29 = vpop.f32.mrf.mxu2 }
 0x493   :  { %v4756_v33 = vpop.eup %4755  ;;  %v2412_v23 = vadd.f32 %v2411_v12, %v2323_v19  ;;  %v2912_v24 = vadd.f32 %v2911_v29, %v6907_v21  ;;  %3093 = vmatmul.bf16.gmra.mxu0 %v5659_v2 }
 0x494   :  { %2539 = vst [vmem:[%s7515_s7 + $0x670] sm:$0xff] %v4756_v33  ;;  %3182 = vmatmul.bf16.gmra.mxu1 %v5872_v36  ;;  %v3000_v27 = vpop.f32.mrf.mxu3 }
 0x495   :  { %v4758_v55 = vpop.eup %4757  ;;  %4759 = vtanh.f32 %v2412_v23  ;;  %v3001_v53 = vadd.f32 %v3000_v27, %v2912_v24 }
 0x496   :  { %3536 = vst [vmem:[%s7515_s7 + $0x288] sm:$0xff] %v4758_v55 }
 0x497   :  { %4761 = vtanh.f32 %v3001_v53 }
 0x498   :  { %v2324_v54 = vpop.f32.mrf.mxu0 }
 0x499   :  { %v2325_v44 = vadd.f32 %v2324_v54, %v6571_v22  ;;  %v2413_v16 = vpop.f32.mrf.mxu1 }
 0x49a   :  { %v2913_v37 = vpop.f32.mrf.mxu2 }
 0x49b   :  { %v4760_v51 = vpop.eup %4759  ;;  %v2414_v17 = vadd.f32 %v2413_v16, %v2325_v44  ;;  %v2914_v43 = vadd.f32 %v2913_v37, %v6907_v21 }
 0x49c   :  { %2541 = vst [vmem:[%s7515_s7 + $0x6a8] sm:$0xff] %v4760_v51  ;;  %v3002_v57 = vpop.f32.mrf.mxu3 }
 0x49d   :  { %v4762_v58 = vpop.eup %4761  ;;  %4763 = vtanh.f32 %v2414_v17  ;;  %v3003_v38 = vadd.f32 %v3002_v57, %v2914_v43 }
 0x49e   :  { %3539 = vst [vmem:[%s7515_s7 + $0x2c0] sm:$0xff] %v4762_v58 }
 0x49f   :  { %4765 = vtanh.f32 %v3003_v38  ;;  %2955 = vmatmul.bf16.gmra.mxu2 %v5895_v20 }
 0x4a0   :  { %v3059_v22 = vpop.f32.mrf.mxu0 }
 0x4a1   :  { %v3060_v4 = vadd.f32 %v3059_v22, %v7082_v52  ;;  %v3148_v0 = vpop.f32.mrf.mxu1  ;;  %3044 = vmatmul.bf16.gmra.mxu3 %v6060_v10 }
 0x4a2   :  { %v2916_v42 = vpop.f32.mrf.mxu2 }
 0x4a3   :  { %v4764_v7 = vpop.eup %4763  ;;  %v3149_v11 = vadd.f32 %v3148_v0, %v3060_v4  ;;  %v2917_v48 = vadd.f32 %v2916_v42, %v6907_v21  ;;  %3098 = vmatmul.bf16.gmra.mxu0 %v5695_v8 }
 0x4a4   :  { %2543 = vst [vmem:[%s7515_s7 + $0x6e0] sm:$0xff] %v4764_v7  ;;  %3187 = vmatmul.bf16.gmra.mxu1 %v5889_v5  ;;  %v3005_v60 = vpop.f32.mrf.mxu3 }
 0x4a5   :  { %v4766_v30 = vpop.eup %4765  ;;  %4767 = vtanh.f32 %v3149_v11  ;;  %v3006_v49 = vadd.f32 %v3005_v60, %v2917_v48 }
 0x4a6   :  { %3542 = vst [vmem:[%s7515_s7 + $0x2f8] sm:$0xff] %v4766_v30 }
 0x4a7   :  { %4769 = vtanh.f32 %v3006_v49 }
 0x4a8   :  { %v3061_v18 = vpop.f32.mrf.mxu0 }
 0x4a9   :  { %v3062_v19 = vadd.f32 %v3061_v18, %v7082_v52  ;;  %v3150_v12 = vpop.f32.mrf.mxu1 }
 0x4aa   :  { %v2918_v29 = vpop.f32.mrf.mxu2 }
 0x4ab   :  { %v4768_v33 = vpop.eup %4767  ;;  %v3151_v23 = vadd.f32 %v3150_v12, %v3062_v19  ;;  %v2919_v24 = vadd.f32 %v2918_v29, %v6907_v21 }
 0x4ac   :  { %3503 = vst [vmem:[%s7515_s7 + $0x28] sm:$0xff] %v4768_v33  ;;  %v3007_v27 = vpop.f32.mrf.mxu3 }
 0x4ad   :  { %v4770_v55 = vpop.eup %4769  ;;  %4771 = vtanh.f32 %v3151_v23  ;;  %v3008_v53 = vadd.f32 %v3007_v27, %v2919_v24 }
 0x4ae   :  { %3545 = vst [vmem:[%s7515_s7 + $0x330] sm:$0xff] %v4770_v55 }
 0x4af   :  { %4773 = vtanh.f32 %v3008_v53  ;;  %3236 = vmatmul.bf16.vlgmr.msra.gmra.mxu2 %v5501_v62 }
 0x4b0   :  { %v3064_v54 = vpop.f32.mrf.mxu0 }
 0x4b1   :  { %v3065_v44 = vadd.f32 %v3064_v54, %v7082_v52  ;;  %v3153_v16 = vpop.f32.mrf.mxu1  ;;  %3325 = vmatmul.bf16.vlgmr.msra.gmra.mxu3 %v5656_v35 }
 0x4b2   :  { %v2921_v37 = vpop.f32.mrf.mxu2 }
 0x4b3   :  { %v4772_v51 = vpop.eup %4771  ;;  %v3154_v17 = vadd.f32 %v3153_v16, %v3065_v44  ;;  %v2922_v43 = vadd.f32 %v2921_v37, %v6907_v21  ;;  %3103 = vmatmul.bf16.gmra.mxu0 %v5707_v56 }
 0x4b4   :  { %3507 = vst [vmem:[%s7515_s7 + $0x60] sm:$0xff] %v4772_v51  ;;  %3192 = vmatmul.bf16.gmra.mxu1 %v5919_v47  ;;  %v3010_v62 = vpop.f32.mrf.mxu3 }
 0x4b5   :  { %v4774_v57 = vpop.eup %4773  ;;  %4775 = vtanh.f32 %v3154_v17  ;;  %v3011_v58 = vadd.f32 %v3010_v62, %v2922_v43 }
 0x4b6   :  { %3548 = vst [vmem:[%s7515_s7 + $0x368] sm:$0xff] %v4774_v57 }
 0x4b7   :  { %4777 = vtanh.f32 %v3011_v58 }
 0x4b8   :  { %v3066_v35 = vpop.f32.mrf.mxu0 }
 0x4b9   :  { %v3067_v38 = vadd.f32 %v3066_v35, %v7082_v52  ;;  %v3155_v22 = vpop.f32.mrf.mxu1 }
 0x4ba   :  { %v2923_v4 = vpop.f32.mrf.mxu2 }
 0x4bb   :  { %v4776_v0 = vpop.eup %4775  ;;  %v3156_v42 = vadd.f32 %v3155_v22, %v3067_v38  ;;  %v2924_v7 = vadd.f32 %v2923_v4, %v6907_v21 }
 0x4bc   :  { %3510 = vst [vmem:[%s7515_s7 + $0x98] sm:$0xff] %v4776_v0  ;;  %v3012_v11 = vpop.f32.mrf.mxu3 }
 0x4bd   :  { %v4778_v48 = vpop.eup %4777  ;;  %4779 = vtanh.f32 %v3156_v42  ;;  %v3013_v60 = vadd.f32 %v3012_v11, %v2924_v7 }
 0x4be   :  { %3551 = vst [vmem:[%s7515_s7 + $0x3a0] sm:$0xff] %v4778_v48 }
 0x4bf   :  { %4781 = vtanh.f32 %v3013_v60  ;;  %3241 = vmatmul.bf16.gmra.mxu2 %v5517_v31 }
 0x4c0   :  { %v3069_v30 = vpop.f32.mrf.mxu0 }
 0x4c1   :  { %v3070_v49 = vadd.f32 %v3069_v30, %v7082_v52  ;;  %v3158_v18 = vpop.f32.mrf.mxu1  ;;  %3330 = vmatmul.bf16.gmra.mxu3 %v5692_v6 }
 0x4c2   :  { %v2926_v19 = vpop.f32.mrf.mxu2 }
 0x4c3   :  { %v4780_v12 = vpop.eup %4779  ;;  %v3159_v29 = vadd.f32 %v3158_v18, %v3070_v49  ;;  %v2927_v33 = vadd.f32 %v2926_v19, %v6907_v21  ;;  %3108 = vmatmul.bf16.gmra.mxu0 %v5743_v32 }
 0x4c4   :  { %3513 = vst [vmem:[%s7515_s7 + $0xd0] sm:$0xff] %v4780_v12  ;;  %3197 = vmatmul.bf16.gmra.mxu1 %v5935_v1  ;;  %v3015_v31 = vpop.f32.mrf.mxu3 }
 0x4c5   :  { %v4782_v23 = vpop.eup %4781  ;;  %4783 = vtanh.f32 %v3159_v29  ;;  %v3016_v24 = vadd.f32 %v3015_v31, %v2927_v33 }
 0x4c6   :  { %3554 = vst [vmem:[%s7515_s7 + $0x3d8] sm:$0xff] %v4782_v23 }
 0x4c7   :  { %4785 = vtanh.f32 %v3016_v24 }
 0x4c8   :  { %v3071_v6 = vpop.f32.mrf.mxu0 }
 0x4c9   :  { %v3072_v27 = vadd.f32 %v3071_v6, %v7082_v52  ;;  %v3160_v55 = vpop.f32.mrf.mxu1 }
 0x4ca   :  { %v2928_v53 = vpop.f32.mrf.mxu2 }
 0x4cb   :  { %v4784_v54 = vpop.eup %4783  ;;  %v3161_v44 = vadd.f32 %v3160_v55, %v3072_v27  ;;  %v2929_v16 = vadd.f32 %v2928_v53, %v6907_v21 }
 0x4cc   :  { %3516 = vst [vmem:[%s7515_s7 + $0x108] sm:$0xff] %v4784_v54  ;;  %v3017_v37 = vpop.f32.mrf.mxu3 }
 0x4cd   :  { %v4786_v51 = vpop.eup %4785  ;;  %4787 = vtanh.f32 %v3161_v44  ;;  %v3018_v17 = vadd.f32 %v3017_v37, %v2929_v16 }
 0x4ce   :  { %3557 = vst [vmem:[%s7515_s7 + $0x410] sm:$0xff] %v4786_v51 }
 0x4cf   :  { %4789 = vtanh.f32 %v3018_v17  ;;  %3246 = vmatmul.bf16.gmra.mxu2 %v5545_v9 }
 0x4d0   :  { %v3074_v43 = vpop.f32.mrf.mxu0 }
 0x4d1   :  { %v3075_v62 = vadd.f32 %v3074_v43, %v7082_v52  ;;  %v3163_v57 = vpop.f32.mrf.mxu1  ;;  %3335 = vmatmul.bf16.gmra.mxu3 %v5704_v26 }
 0x4d2   :  { %v2931_v58 = vpop.f32.mrf.mxu2 }
 0x4d3   :  { %v4788_v35 = vpop.eup %4787  ;;  %v3164_v38 = vadd.f32 %v3163_v57, %v3075_v62  ;;  %v2932_v22 = vadd.f32 %v2931_v58, %v6907_v21  ;;  %3113 = vmatmul.bf16.gmra.mxu0 %v5767_v3 }
 0x4d4   :  { %3519 = vst [vmem:[%s7515_s7 + $0x140] sm:$0xff] %v4788_v35  ;;  %3202 = vmatmul.bf16.gmra.mxu1 %v5963_v34  ;;  %v3020_v9 = vpop.f32.mrf.mxu3 }
 0x4d5   :  { %v4790_v4 = vpop.eup %4789  ;;  %4791 = vtanh.f32 %v3164_v38  ;;  %v3021_v0 = vadd.f32 %v3020_v9, %v2932_v22 }
 0x4d6   :  { %3560 = vst [vmem:[%s7515_s7 + $0x448] sm:$0xff] %v4790_v4 }
 0x4d7   :  { %4793 = vtanh.f32 %v3021_v0 }
 0x4d8   :  { %v3076_v26 = vpop.f32.mrf.mxu0 }
 0x4d9   :  { %v3077_v42 = vadd.f32 %v3076_v26, %v7082_v52  ;;  %v3165_v7 = vpop.f32.mrf.mxu1 }
 0x4da   :  { %v2933_v11 = vpop.f32.mrf.mxu2 }
 0x4db   :  { %v4792_v48 = vpop.eup %4791  ;;  %v3166_v60 = vadd.f32 %v3165_v7, %v3077_v42  ;;  %v2934_v30 = vadd.f32 %v2933_v11, %v6907_v21 }
 0x4dc   :  { %3522 = vst [vmem:[%s7515_s7 + $0x178] sm:$0xff] %v4792_v48  ;;  %v3022_v49 = vpop.f32.mrf.mxu3 }
 0x4dd   :  { %v4794_v18 = vpop.eup %4793  ;;  %4795 = vtanh.f32 %v3166_v60  ;;  %v3023_v19 = vadd.f32 %v3022_v49, %v2934_v30 }
 0x4de   :  { %3563 = vst [vmem:[%s7515_s7 + $0x480] sm:$0xff] %v4794_v18 }
 0x4df   :  { %4797 = vtanh.f32 %v3023_v19  ;;  %3251 = vmatmul.bf16.gmra.mxu2 %v5561_v45 }
 0x4e0   :  { %v3079_v12 = vpop.f32.mrf.mxu0 }
 0x4e1   :  { %v3080_v29 = vadd.f32 %v3079_v12, %v7082_v52  ;;  %v3168_v33 = vpop.f32.mrf.mxu1  ;;  %3340 = vmatmul.bf16.gmra.mxu3 %v5740_v13 }
 0x4e2   :  { %v2936_v31 = vpop.f32.mrf.mxu2 }
 0x4e3   :  { %v4796_v23 = vpop.eup %4795  ;;  %v3169_v24 = vadd.f32 %v3168_v33, %v3080_v29  ;;  %v2937_v6 = vadd.f32 %v2936_v31, %v6907_v21  ;;  %3118 = vmatmul.bf16.gmra.mxu0 %v5839_v25 }
 0x4e4   :  { %3525 = vst [vmem:[%s7515_s7 + $0x1b0] sm:$0xff] %v4796_v23  ;;  %3207 = vmatmul.bf16.gmra.mxu1 %v5979_v46  ;;  %v3025_v45 = vpop.f32.mrf.mxu3 }
 0x4e5   :  { %v4798_v27 = vpop.eup %4797  ;;  %4799 = vtanh.f32 %v3169_v24  ;;  %v3026_v55 = vadd.f32 %v3025_v45, %v2937_v6 }
 0x4e6   :  { %3566 = vst [vmem:[%s7515_s7 + $0x4b8] sm:$0xff] %v4798_v27 }
 0x4e7   :  { %4801 = vtanh.f32 %v3026_v55 }
 0x4e8   :  { %v3081_v13 = vpop.f32.mrf.mxu0 }
 0x4e9   :  { %v3082_v53 = vadd.f32 %v3081_v13, %v7082_v52  ;;  %v3170_v54 = vpop.f32.mrf.mxu1 }
 0x4ea   :  { %v2938_v44 = vpop.f32.mrf.mxu2 }
 0x4eb   :  { %v4800_v16 = vpop.eup %4799  ;;  %v3171_v37 = vadd.f32 %v3170_v54, %v3082_v53  ;;  %v2939_v51 = vadd.f32 %v2938_v44, %v6907_v21 }
 0x4ec   :  { %3528 = vst [vmem:[%s7515_s7 + $0x1e8] sm:$0xff] %v4800_v16  ;;  %v3027_v17 = vpop.f32.mrf.mxu3 }
 0x4ed   :  { %v4802_v43 = vpop.eup %4801  ;;  %4803 = vtanh.f32 %v3171_v37  ;;  %v3028_v62 = vadd.f32 %v3027_v17, %v2939_v51 }
 0x4ee   :  { %3569 = vst [vmem:[%s7515_s7 + $0x4f0] sm:$0xff] %v4802_v43 }
 0x4ef   :  { %4805 = vtanh.f32 %v3028_v62  ;;  %3256 = vmatmul.bf16.gmra.mxu2 %v5589_v28 }
 0x4f0   :  { %v3084_v57 = vpop.f32.mrf.mxu0 }
 0x4f1   :  { %v3085_v58 = vadd.f32 %v3084_v57, %v7082_v52  ;;  %v3173_v35 = vpop.f32.mrf.mxu1  ;;  %3345 = vmatmul.bf16.gmra.mxu3 %v5761_v63 }
 0x4f2   :  { %v2941_v38 = vpop.f32.mrf.mxu2 }
 0x4f3   :  { %v4804_v22 = vpop.eup %4803  ;;  %v3174_v9 = vadd.f32 %v3173_v35, %v3085_v58  ;;  %v2942_v4 = vadd.f32 %v2941_v38, %v6907_v21  ;;  %3123 = vmatmul.bf16.gmra.mxu0 %v5851_v41 }
 0x4f4   :  { %3531 = vst [vmem:[%s7515_s7 + $0x220] sm:$0xff] %v4804_v22  ;;  %3212 = vmatmul.bf16.gmra.mxu1 %v6007_v61  ;;  %v3030_v28 = vpop.f32.mrf.mxu3 }
 0x4f5   :  { %v4806_v0 = vpop.eup %4805  ;;  %4807 = vtanh.f32 %v3174_v9  ;;  %v3031_v26 = vadd.f32 %v3030_v28, %v2942_v4 }
 0x4f6   :  { %3572 = vst [vmem:[%s7515_s7 + $0x528] sm:$0xff] %v4806_v0 }
 0x4f7   :  { %4809 = vtanh.f32 %v3031_v26 }
 0x4f8   :  { %v3086_v63 = vpop.f32.mrf.mxu0 }
 0x4f9   :  { %v3087_v42 = vadd.f32 %v3086_v63, %v7082_v52  ;;  %v3175_v7 = vpop.f32.mrf.mxu1 }
 0x4fa   :  { %v2943_v11 = vpop.f32.mrf.mxu2 }
 0x4fb   :  { %v4808_v48 = vpop.eup %4807  ;;  %v3176_v60 = vadd.f32 %v3175_v7, %v3087_v42  ;;  %v2944_v30 = vadd.f32 %v2943_v11, %v6907_v21 }
 0x4fc   :  { %3534 = vst [vmem:[%s7515_s7 + $0x258] sm:$0xff] %v4808_v48  ;;  %v3032_v49 = vpop.f32.mrf.mxu3 }
 0x4fd   :  { %v4810_v18 = vpop.eup %4809  ;;  %4811 = vtanh.f32 %v3176_v60  ;;  %v3033_v19 = vadd.f32 %v3032_v49, %v2944_v30 }
 0x4fe   :  { %3575 = vst [vmem:[%s7515_s7 + $0x560] sm:$0xff] %v4810_v18 }
 0x4ff   :  { %4813 = vtanh.f32 %v3033_v19  ;;  %3261 = vmatmul.bf16.gmra.mxu2 %v5605_v59 }
 0x500   :  { %v3089_v12 = vpop.f32.mrf.mxu0 }
 0x501   :  { %v3090_v29 = vadd.f32 %v3089_v12, %v7082_v52  ;;  %v3178_v33 = vpop.f32.mrf.mxu1  ;;  %3350 = vmatmul.bf16.gmra.mxu3 %v5833_v14 }
 0x502   :  { %v2946_v31 = vpop.f32.mrf.mxu2 }
 0x503   :  { %v4812_v23 = vpop.eup %4811  ;;  %v3179_v24 = vadd.f32 %v3178_v33, %v3090_v29  ;;  %v2947_v6 = vadd.f32 %v2946_v31, %v6907_v21  ;;  %3128 = vmatmul.bf16.gmra.mxu0 %v5875_v39 }
 0x504   :  { %3537 = vst [vmem:[%s7515_s7 + $0x290] sm:$0xff] %v4812_v23  ;;  %3217 = vmatmul.bf16.gmra.mxu1 %v6023_v15  ;;  %v3035_v59 = vpop.f32.mrf.mxu3 }
 0x505   :  { %v4814_v45 = vpop.eup %4813  ;;  %4815 = vtanh.f32 %v3179_v24  ;;  %v3036_v27 = vadd.f32 %v3035_v59, %v2947_v6 }
 0x506   :  { %3578 = vst [vmem:[%s7515_s7 + $0x598] sm:$0xff] %v4814_v45 }
 0x507   :  { %4817 = vtanh.f32 %v3036_v27 }
 0x508   :  { %v3091_v14 = vpop.f32.mrf.mxu0 }
 0x509   :  { %v3092_v55 = vadd.f32 %v3091_v14, %v7082_v52  ;;  %v3180_v13 = vpop.f32.mrf.mxu1 }
 0x50a   :  { %v2948_v53 = vpop.f32.mrf.mxu2 }
 0x50b   :  { %v4816_v54 = vpop.eup %4815  ;;  %v3181_v44 = vadd.f32 %v3180_v13, %v3092_v55  ;;  %v2949_v16 = vadd.f32 %v2948_v53, %v6907_v21 }
 0x50c   :  { %3540 = vst [vmem:[%s7515_s7 + $0x2c8] sm:$0xff] %v4816_v54  ;;  %v3037_v37 = vpop.f32.mrf.mxu3  ;;  %v4931_v54 = vld [vmem:[%s7514_s6 + $0x4] sm:$0x7] }
 0x50d   :  { %v4818_v51 = vpop.eup %4817  ;;  %4819 = vtanh.f32 %v3181_v44  ;;  %v3038_v17 = vadd.f32 %v3037_v37, %v2949_v16 }
 0x50e   :  { %3581 = vst [vmem:[%s7515_s7 + $0x5d0] sm:$0xff] %v4818_v51 }
 0x50f   :  { %4821 = vtanh.f32 %v3038_v17  ;;  %3266 = vmatmul.bf16.gmra.mxu2 %v5645_v40 }
 0x510   :  { %v3094_v43 = vpop.f32.mrf.mxu0 }
 0x511   :  { %v3095_v62 = vadd.f32 %v3094_v43, %v7082_v52  ;;  %v3183_v57 = vpop.f32.mrf.mxu1  ;;  %3355 = vmatmul.bf16.gmra.mxu3 %v5848_v50 }
 0x512   :  { %v2951_v58 = vpop.f32.mrf.mxu2 }
 0x513   :  { %v4820_v35 = vpop.eup %4819  ;;  %v3184_v38 = vadd.f32 %v3183_v57, %v3095_v62  ;;  %v2952_v22 = vadd.f32 %v2951_v58, %v6907_v21  ;;  %3133 = vmatmul.bf16.gmra.mxu0 %v5895_v20 }
 0x514   :  { %3543 = vst [vmem:[%s7515_s7 + $0x300] sm:$0xff] %v4820_v35  ;;  %3222 = vmatmul.bf16.gmra.mxu1 %v6060_v10  ;;  %v3040_v40 = vpop.f32.mrf.mxu3 }
 0x515   :  { %v4822_v9 = vpop.eup %4821  ;;  %4823 = vtanh.f32 %v3184_v38  ;;  %v3041_v4 = vadd.f32 %v3040_v40, %v2952_v22 }
 0x516   :  { %3584 = vst [vmem:[%s7515_s7 + $0x608] sm:$0xff] %v4822_v9 }
 0x517   :  { %4825 = vtanh.f32 %v3041_v4 }
 0x518   :  { %v3096_v50 = vpop.f32.mrf.mxu0 }
 0x519   :  { %v3097_v28 = vadd.f32 %v3096_v50, %v7082_v52  ;;  %v3185_v0 = vpop.f32.mrf.mxu1 }
 0x51a   :  { %v2953_v26 = vpop.f32.mrf.mxu2 }
 0x51b   :  { %v4824_v63 = vpop.eup %4823  ;;  %v3186_v42 = vadd.f32 %v3185_v0, %v3097_v28  ;;  %v2954_v7 = vadd.f32 %v2953_v26, %v6907_v21 }
 0x51c   :  { %3546 = vst [vmem:[%s7515_s7 + $0x338] sm:$0xff] %v4824_v63  ;;  %v3042_v11 = vpop.f32.mrf.mxu3 }
 0x51d   :  { %v4826_v48 = vpop.eup %4825  ;;  %4827 = vtanh.f32 %v3186_v42  ;;  %v3043_v60 = vadd.f32 %v3042_v11, %v2954_v7 }
 0x51e   :  { %3587 = vst [vmem:[%s7515_s7 + $0x640] sm:$0xff] %v4826_v48 }
 0x51f   :  { %4829 = vtanh.f32 %v3043_v60  ;;  %3271 = vmatmul.bf16.gmra.mxu2 %v5659_v2 }
 0x520   :  { %v3099_v30 = vpop.f32.mrf.mxu0 }
 0x521   :  { %v3100_v49 = vadd.f32 %v3099_v30, %v7082_v52  ;;  %v3188_v18 = vpop.f32.mrf.mxu1  ;;  %3360 = vmatmul.bf16.gmra.mxu3 %v5872_v36 }
 0x522   :  { %v2956_v19 = vpop.f32.mrf.mxu2 }
 0x523   :  { %v4828_v12 = vpop.eup %4827  ;;  %v3189_v29 = vadd.f32 %v3188_v18, %v3100_v49  ;;  %v2957_v33 = vadd.f32 %v2956_v19, %v6907_v21 }
 0x524   :  { %3549 = vst [vmem:[%s7515_s7 + $0x370] sm:$0xff] %v4828_v12  ;;  %v3045_v31 = vpop.f32.mrf.mxu3 }
 0x525   :  { %v4830_v23 = vpop.eup %4829  ;;  %4831 = vtanh.f32 %v3189_v29  ;;  %v3046_v24 = vadd.f32 %v3045_v31, %v2957_v33 }
 0x526   :  { %3590 = vst [vmem:[%s7515_s7 + $0x678] sm:$0xff] %v4830_v23 }
 0x527   :  { %4833 = vtanh.f32 %v3046_v24 }
 0x528   :  { %v3101_v2 = vpop.f32.mrf.mxu0 }
 0x529   :  { %v3102_v36 = vadd.f32 %v3101_v2, %v7082_v52  ;;  %v3190_v6 = vpop.f32.mrf.mxu1 }
 0x52a   :  { %v2958_v59 = vpop.f32.mrf.mxu2 }
 0x52b   :  { %v4832_v45 = vpop.eup %4831  ;;  %v3191_v27 = vadd.f32 %v3190_v6, %v3102_v36  ;;  %v2959_v14 = vadd.f32 %v2958_v59, %v6907_v21  ;;  %v7269_v21 = vperm.slane %v4931_v54, 2 }
 0x52c   :  { %3552 = vst [vmem:[%s7515_s7 + $0x3a8] sm:$0xff] %v4832_v45  ;;  %v3047_v55 = vpop.f32.mrf.mxu3 }
 0x52d   :  { %v4834_v13 = vpop.eup %4833  ;;  %4835 = vtanh.f32 %v3191_v27  ;;  %v3048_v53 = vadd.f32 %v3047_v55, %v2959_v14 }
 0x52e   :  { %3593 = vst [vmem:[%s7515_s7 + $0x6b0] sm:$0xff] %v4834_v13 }
 0x52f   :  { %4837 = vtanh.f32 %v3048_v53  ;;  %3276 = vmatmul.bf16.gmra.mxu2 %v5695_v8 }
 0x530   :  { %v3104_v44 = vpop.f32.mrf.mxu0 }
 0x531   :  { %v3105_v16 = vadd.f32 %v3104_v44, %v7082_v52  ;;  %v3193_v37 = vpop.f32.mrf.mxu1  ;;  %3365 = vmatmul.bf16.gmra.mxu3 %v5889_v5 }
 0x532   :  { %v3237_v51 = vpop.f32.mrf.mxu2 }
 0x533   :  { %v4836_v17 = vpop.eup %4835  ;;  %v3194_v43 = vadd.f32 %v3193_v37, %v3105_v16  ;;  %v3238_v62 = vadd.f32 %v3237_v51, %v7269_v21 }
 0x534   :  { %3555 = vst [vmem:[%s7515_s7 + $0x3e0] sm:$0xff] %v4836_v17  ;;  %v3326_v8 = vpop.f32.mrf.mxu3 }
 0x535   :  { %v4838_v57 = vpop.eup %4837  ;;  %4839 = vtanh.f32 %v3194_v43  ;;  %v3327_v58 = vadd.f32 %v3326_v8, %v3238_v62 }
 0x536   :  { %3596 = vst [vmem:[%s7515_s7 + $0x6e8] sm:$0xff] %v4838_v57 }
 0x537   :  { %4841 = vtanh.f32 %v3327_v58 }
 0x538   :  { %v3106_v35 = vpop.f32.mrf.mxu0 }
 0x539   :  { %v3107_v5 = vadd.f32 %v3106_v35, %v7082_v52  ;;  %v3195_v38 = vpop.f32.mrf.mxu1 }
 0x53a   :  { %v3239_v22 = vpop.f32.mrf.mxu2 }
 0x53b   :  { %v4840_v40 = vpop.eup %4839  ;;  %v3196_v9 = vadd.f32 %v3195_v38, %v3107_v5  ;;  %v3240_v4 = vadd.f32 %v3239_v22, %v7269_v21 }
 0x53c   :  { %3558 = vst [vmem:[%s7515_s7 + $0x418] sm:$0xff] %v4840_v40  ;;  %v3328_v50 = vpop.f32.mrf.mxu3 }
 0x53d   :  { %v4842_v28 = vpop.eup %4841  ;;  %4843 = vtanh.f32 %v3196_v9  ;;  %v3329_v0 = vadd.f32 %v3328_v50, %v3240_v4 }
 0x53e   :  { %3505 = vst.msk [vmem:[%s7515_s7 + $0x30] sm:$0xff] %vm3504_vm0, %v4842_v28 }
 0x53f   :  { %4845 = vtanh.f32 %v3329_v0  ;;  %3281 = vmatmul.bf16.gmra.mxu2 %v5707_v56 }
 0x540   :  { %v3109_v26 = vpop.f32.mrf.mxu0 }
 0x541   :  { %v3110_v63 = vadd.f32 %v3109_v26, %v7082_v52  ;;  %v3198_v42 = vpop.f32.mrf.mxu1  ;;  %3370 = vmatmul.bf16.gmra.mxu3 %v5919_v47 }
 0x542   :  { %v3242_v7 = vpop.f32.mrf.mxu2 }
 0x543   :  { %v4844_v11 = vpop.eup %4843  ;;  %v3199_v48 = vadd.f32 %v3198_v42, %v3110_v63  ;;  %v3243_v60 = vadd.f32 %v3242_v7, %v7269_v21 }
 0x544   :  { %3561 = vst [vmem:[%s7515_s7 + $0x450] sm:$0xff] %v4844_v11  ;;  %v3331_v30 = vpop.f32.mrf.mxu3 }
 0x545   :  { %v4846_v49 = vpop.eup %4845  ;;  %4847 = vtanh.f32 %v3199_v48  ;;  %v3332_v18 = vadd.f32 %v3331_v30, %v3243_v60 }
 0x546   :  { %3508 = vst.msk [vmem:[%s7515_s7 + $0x68] sm:$0xff] %vm3504_vm0, %v4846_v49 }
 0x547   :  { %4849 = vtanh.f32 %v3332_v18 }
 0x548   :  { %v3111_v56 = vpop.f32.mrf.mxu0 }
 0x549   :  { %v3112_v47 = vadd.f32 %v3111_v56, %v7082_v52  ;;  %v3200_v19 = vpop.f32.mrf.mxu1 }
 0x54a   :  { %v3244_v12 = vpop.f32.mrf.mxu2 }
 0x54b   :  { %v4848_v29 = vpop.eup %4847  ;;  %v3201_v33 = vadd.f32 %v3200_v19, %v3112_v47  ;;  %v3245_v31 = vadd.f32 %v3244_v12, %v7269_v21 }
 0x54c   :  { %3564 = vst [vmem:[%s7515_s7 + $0x488] sm:$0xff] %v4848_v29  ;;  %v3333_v23 = vpop.f32.mrf.mxu3 }
 0x54d   :  { %v4850_v24 = vpop.eup %4849  ;;  %4851 = vtanh.f32 %v3201_v33  ;;  %v3334_v2 = vadd.f32 %v3333_v23, %v3245_v31 }
 0x54e   :  { %3511 = vst.msk [vmem:[%s7515_s7 + $0xa0] sm:$0xff] %vm3504_vm0, %v4850_v24 }
 0x54f   :  { %4853 = vtanh.f32 %v3334_v2  ;;  %3286 = vmatmul.bf16.gmra.mxu2 %v5743_v32 }
 0x550   :  { %v3114_v36 = vpop.f32.mrf.mxu0 }
 0x551   :  { %v3115_v6 = vadd.f32 %v3114_v36, %v7082_v52  ;;  %v3203_v59 = vpop.f32.mrf.mxu1  ;;  %3375 = vmatmul.bf16.gmra.mxu3 %v5935_v1 }
 0x552   :  { %v3247_v45 = vpop.f32.mrf.mxu2 }
 0x553   :  { %v4852_v27 = vpop.eup %4851  ;;  %v3204_v14 = vadd.f32 %v3203_v59, %v3115_v6  ;;  %v3248_v55 = vadd.f32 %v3247_v45, %v7269_v21 }
 0x554   :  { %3567 = vst [vmem:[%s7515_s7 + $0x4c0] sm:$0xff] %v4852_v27  ;;  %v3336_v13 = vpop.f32.mrf.mxu3 }
 0x555   :  { %v4854_v53 = vpop.eup %4853  ;;  %4855 = vtanh.f32 %v3204_v14  ;;  %v3337_v54 = vadd.f32 %v3336_v13, %v3248_v55 }
 0x556   :  { %3514 = vst.msk [vmem:[%s7515_s7 + $0xd8] sm:$0xff] %vm3504_vm0, %v4854_v53 }
 0x557   :  { %4857 = vtanh.f32 %v3337_v54 }
 0x558   :  { %v3116_v32 = vpop.f32.mrf.mxu0 }
 0x559   :  { %v3117_v1 = vadd.f32 %v3116_v32, %v7082_v52  ;;  %v3205_v44 = vpop.f32.mrf.mxu1 }
 0x55a   :  { %v3249_v16 = vpop.f32.mrf.mxu2 }
 0x55b   :  { %v4856_v37 = vpop.eup %4855  ;;  %v3206_v51 = vadd.f32 %v3205_v44, %v3117_v1  ;;  %v3250_v17 = vadd.f32 %v3249_v16, %v7269_v21 }
 0x55c   :  { %3570 = vst [vmem:[%s7515_s7 + $0x4f8] sm:$0xff] %v4856_v37  ;;  %v3338_v43 = vpop.f32.mrf.mxu3 }
 0x55d   :  { %v4858_v62 = vpop.eup %4857  ;;  %4859 = vtanh.f32 %v3206_v51  ;;  %v3339_v8 = vadd.f32 %v3338_v43, %v3250_v17 }
 0x55e   :  { %3517 = vst.msk [vmem:[%s7515_s7 + $0x110] sm:$0xff] %vm3504_vm0, %v4858_v62 }
 0x55f   :  { %4861 = vtanh.f32 %v3339_v8  ;;  %3291 = vmatmul.bf16.gmra.mxu2 %v5767_v3 }
 0x560   :  { %v3119_v57 = vpop.f32.mrf.mxu0 }
 0x561   :  { %v3120_v58 = vadd.f32 %v3119_v57, %v7082_v52  ;;  %v3208_v35 = vpop.f32.mrf.mxu1  ;;  %3380 = vmatmul.bf16.gmra.mxu3 %v5963_v34 }
 0x562   :  { %v3252_v5 = vpop.f32.mrf.mxu2 }
 0x563   :  { %v4860_v38 = vpop.eup %4859  ;;  %v3209_v22 = vadd.f32 %v3208_v35, %v3120_v58  ;;  %v3253_v40 = vadd.f32 %v3252_v5, %v7269_v21 }
 0x564   :  { %3573 = vst [vmem:[%s7515_s7 + $0x530] sm:$0xff] %v4860_v38  ;;  %v3341_v9 = vpop.f32.mrf.mxu3 }
 0x565   :  { %v4862_v4 = vpop.eup %4861  ;;  %4863 = vtanh.f32 %v3209_v22  ;;  %v3342_v50 = vadd.f32 %v3341_v9, %v3253_v40 }
 0x566   :  { %3520 = vst.msk [vmem:[%s7515_s7 + $0x148] sm:$0xff] %vm3504_vm0, %v4862_v4 }
 0x567   :  { %4865 = vtanh.f32 %v3342_v50 }
 0x568   :  { %v3121_v3 = vpop.f32.mrf.mxu0 }
 0x569   :  { %v3122_v34 = vadd.f32 %v3121_v3, %v7082_v52  ;;  %v3210_v28 = vpop.f32.mrf.mxu1 }
 0x56a   :  { %v3254_v0 = vpop.f32.mrf.mxu2 }
 0x56b   :  { %v4864_v26 = vpop.eup %4863  ;;  %v3211_v63 = vadd.f32 %v3210_v28, %v3122_v34  ;;  %v3255_v42 = vadd.f32 %v3254_v0, %v7269_v21 }
 0x56c   :  { %3576 = vst [vmem:[%s7515_s7 + $0x568] sm:$0xff] %v4864_v26  ;;  %v3343_v7 = vpop.f32.mrf.mxu3 }
 0x56d   :  { %v4866_v11 = vpop.eup %4865  ;;  %4867 = vtanh.f32 %v3211_v63  ;;  %v3344_v48 = vadd.f32 %v3343_v7, %v3255_v42 }
 0x56e   :  { %3523 = vst.msk [vmem:[%s7515_s7 + $0x180] sm:$0xff] %vm3504_vm0, %v4866_v11 }
 0x56f   :  { %4869 = vtanh.f32 %v3344_v48  ;;  %3296 = vmatmul.bf16.gmra.mxu2 %v5839_v25 }
 0x570   :  { %v3124_v60 = vpop.f32.mrf.mxu0 }
 0x571   :  { %v3125_v30 = vadd.f32 %v3124_v60, %v7082_v52  ;;  %v3213_v49 = vpop.f32.mrf.mxu1  ;;  %3385 = vmatmul.bf16.gmra.mxu3 %v5979_v46 }
 0x572   :  { %v3257_v18 = vpop.f32.mrf.mxu2 }
 0x573   :  { %v4868_v56 = vpop.eup %4867  ;;  %v3214_v47 = vadd.f32 %v3213_v49, %v3125_v30  ;;  %v3258_v19 = vadd.f32 %v3257_v18, %v7269_v21 }
 0x574   :  { %3579 = vst [vmem:[%s7515_s7 + $0x5a0] sm:$0xff] %v4868_v56  ;;  %v3346_v12 = vpop.f32.mrf.mxu3 }
 0x575   :  { %v4870_v29 = vpop.eup %4869  ;;  %4871 = vtanh.f32 %v3214_v47  ;;  %v3347_v33 = vadd.f32 %v3346_v12, %v3258_v19 }
 0x576   :  { %3526 = vst.msk [vmem:[%s7515_s7 + $0x1b8] sm:$0xff] %vm3504_vm0, %v4870_v29 }
 0x577   :  { %4873 = vtanh.f32 %v3347_v33 }
 0x578   :  { %v3126_v25 = vpop.f32.mrf.mxu0 }
 0x579   :  { %v3127_v46 = vadd.f32 %v3126_v25, %v7082_v52  ;;  %v3215_v31 = vpop.f32.mrf.mxu1 }
 0x57a   :  { %v3259_v23 = vpop.f32.mrf.mxu2 }
 0x57b   :  { %v4872_v24 = vpop.eup %4871  ;;  %v3216_v2 = vadd.f32 %v3215_v31, %v3127_v46  ;;  %v3260_v36 = vadd.f32 %v3259_v23, %v7269_v21 }
 0x57c   :  { %3582 = vst [vmem:[%s7515_s7 + $0x5d8] sm:$0xff] %v4872_v24  ;;  %v3348_v6 = vpop.f32.mrf.mxu3 }
 0x57d   :  { %v4874_v59 = vpop.eup %4873  ;;  %4875 = vtanh.f32 %v3216_v2  ;;  %v3349_v45 = vadd.f32 %v3348_v6, %v3260_v36 }
 0x57e   :  { %3529 = vst.msk [vmem:[%s7515_s7 + $0x1f0] sm:$0xff] %vm3504_vm0, %v4874_v59 }
 0x57f   :  { %4877 = vtanh.f32 %v3349_v45  ;;  %3301 = vmatmul.bf16.gmra.mxu2 %v5851_v41 }
 0x580   :  { %v3129_v27 = vpop.f32.mrf.mxu0 }
 0x581   :  { %v3130_v14 = vadd.f32 %v3129_v27, %v7082_v52  ;;  %v3218_v55 = vpop.f32.mrf.mxu1  ;;  %3390 = vmatmul.bf16.gmra.mxu3 %v6007_v61 }
 0x582   :  { %v3262_v13 = vpop.f32.mrf.mxu2 }
 0x583   :  { %v4876_v53 = vpop.eup %4875  ;;  %v3219_v54 = vadd.f32 %v3218_v55, %v3130_v14  ;;  %v3263_v32 = vadd.f32 %v3262_v13, %v7269_v21 }
 0x584   :  { %3585 = vst [vmem:[%s7515_s7 + $0x610] sm:$0xff] %v4876_v53  ;;  %v3351_v1 = vpop.f32.mrf.mxu3 }
 0x585   :  { %v4878_v44 = vpop.eup %4877  ;;  %4879 = vtanh.f32 %v3219_v54  ;;  %v3352_v16 = vadd.f32 %v3351_v1, %v3263_v32 }
 0x586   :  { %3532 = vst.msk [vmem:[%s7515_s7 + $0x228] sm:$0xff] %vm3504_vm0, %v4878_v44 }
 0x587   :  { %4881 = vtanh.f32 %v3352_v16 }
 0x588   :  { %v3131_v41 = vpop.f32.mrf.mxu0 }
 0x589   :  { %v3132_v61 = vadd.f32 %v3131_v41, %v7082_v52  ;;  %v3220_v37 = vpop.f32.mrf.mxu1 }
 0x58a   :  { %v3264_v51 = vpop.f32.mrf.mxu2 }
 0x58b   :  { %v4880_v17 = vpop.eup %4879  ;;  %v3221_v43 = vadd.f32 %v3220_v37, %v3132_v61  ;;  %v3265_v62 = vadd.f32 %v3264_v51, %v7269_v21 }
 0x58c   :  { %3588 = vst [vmem:[%s7515_s7 + $0x648] sm:$0xff] %v4880_v17  ;;  %v3353_v8 = vpop.f32.mrf.mxu3 }
 0x58d   :  { %v4882_v57 = vpop.eup %4881  ;;  %4883 = vtanh.f32 %v3221_v43  ;;  %v3354_v58 = vadd.f32 %v3353_v8, %v3265_v62 }
 0x58e   :  { %3535 = vst.msk [vmem:[%s7515_s7 + $0x260] sm:$0xff] %vm3504_vm0, %v4882_v57 }
 0x58f   :  { %4885 = vtanh.f32 %v3354_v58  ;;  %3306 = vmatmul.bf16.gmra.mxu2 %v5875_v39 }
 0x590   :  { %v3134_v35 = vpop.f32.mrf.mxu0 }
 0x591   :  { %v3135_v5 = vadd.f32 %v3134_v35, %v7082_v52  ;;  %v3223_v38 = vpop.f32.mrf.mxu1  ;;  %3395 = vmatmul.bf16.gmra.mxu3 %v6023_v15 }
 0x592   :  { %v3267_v22 = vpop.f32.mrf.mxu2 }
 0x593   :  { %v4884_v40 = vpop.eup %4883  ;;  %v3224_v9 = vadd.f32 %v3223_v38, %v3135_v5  ;;  %v3268_v4 = vadd.f32 %v3267_v22, %v7269_v21 }
 0x594   :  { %3591 = vst [vmem:[%s7515_s7 + $0x680] sm:$0xff] %v4884_v40  ;;  %v3356_v50 = vpop.f32.mrf.mxu3 }
 0x595   :  { %v4886_v3 = vpop.eup %4885  ;;  %4887 = vtanh.f32 %v3224_v9  ;;  %v3357_v34 = vadd.f32 %v3356_v50, %v3268_v4 }
 0x596   :  { %3538 = vst.msk [vmem:[%s7515_s7 + $0x298] sm:$0xff] %vm3504_vm0, %v4886_v3 }
 0x597   :  { %4889 = vtanh.f32 %v3357_v34 }
 0x598   :  { %v3136_v39 = vpop.f32.mrf.mxu0 }
 0x599   :  { %v3137_v15 = vadd.f32 %v3136_v39, %v7082_v52  ;;  %v3225_v28 = vpop.f32.mrf.mxu1 }
 0x59a   :  { %v3269_v0 = vpop.f32.mrf.mxu2 }
 0x59b   :  { %v4888_v26 = vpop.eup %4887  ;;  %v3226_v63 = vadd.f32 %v3225_v28, %v3137_v15  ;;  %v3270_v42 = vadd.f32 %v3269_v0, %v7269_v21 }
 0x59c   :  { %3594 = vst [vmem:[%s7515_s7 + $0x6b8] sm:$0xff] %v4888_v26  ;;  %v3358_v7 = vpop.f32.mrf.mxu3 }
 0x59d   :  { %v4890_v11 = vpop.eup %4889  ;;  %4891 = vtanh.f32 %v3226_v63  ;;  %v3359_v48 = vadd.f32 %v3358_v7, %v3270_v42 }
 0x59e   :  { %3541 = vst.msk [vmem:[%s7515_s7 + $0x2d0] sm:$0xff] %vm3504_vm0, %v4890_v11 }
 0x59f   :  { %4893 = vtanh.f32 %v3359_v48  ;;  %3311 = vmatmul.bf16.gmra.mxu2 %v5895_v20 }
 0x5a1   :  { %3400 = vmatmul.bf16.gmra.mxu3 %v6060_v10 }
 0x5a2   :  { %v3272_v52 = vpop.f32.mrf.mxu2 }
 0x5a3   :  { %v4892_v60 = vpop.eup %4891  ;;  %v3273_v30 = vadd.f32 %v3272_v52, %v7269_v21 }
 0x5a4   :  { %3597 = vst [vmem:[%s7515_s7 + $0x6f0] sm:$0xff] %v4892_v60  ;;  %v3361_v49 = vpop.f32.mrf.mxu3 }
 0x5a5   :  { %v4894_v18 = vpop.eup %4893  ;;  %v3362_v56 = vadd.f32 %v3361_v49, %v3273_v30 }
 0x5a6   :  { %3544 = vst.msk [vmem:[%s7515_s7 + $0x308] sm:$0xff] %vm3504_vm0, %v4894_v18 }
 0x5a7   :  { %4895 = vtanh.f32 %v3362_v56 }
 0x5aa   :  { %v3274_v20 = vpop.f32.mrf.mxu2 }
 0x5ab   :  { %v3275_v10 = vadd.f32 %v3274_v20, %v7269_v21 }
 0x5ac   :  { %v3363_v47 = vpop.f32.mrf.mxu3 }
 0x5ad   :  { %v4896_v19 = vpop.eup %4895  ;;  %v3364_v12 = vadd.f32 %v3363_v47, %v3275_v10 }
 0x5ae   :  { %3547 = vst.msk [vmem:[%s7515_s7 + $0x340] sm:$0xff] %vm3504_vm0, %v4896_v19 }
 0x5af   :  { %4897 = vtanh.f32 %v3364_v12 }
 0x5b2   :  { %v3277_v29 = vpop.f32.mrf.mxu2 }
 0x5b3   :  { %v3278_v33 = vadd.f32 %v3277_v29, %v7269_v21 }
 0x5b4   :  { %v3366_v25 = vpop.f32.mrf.mxu3 }
 0x5b5   :  { %v4898_v46 = vpop.eup %4897  ;;  %v3367_v31 = vadd.f32 %v3366_v25, %v3278_v33 }
 0x5b6   :  { %3550 = vst.msk [vmem:[%s7515_s7 + $0x378] sm:$0xff] %vm3504_vm0, %v4898_v46 }
 0x5b7   :  { %4899 = vtanh.f32 %v3367_v31 }
 0x5ba   :  { %v3279_v23 = vpop.f32.mrf.mxu2 }
 0x5bb   :  { %v3280_v24 = vadd.f32 %v3279_v23, %v7269_v21 }
 0x5bc   :  { %v3368_v2 = vpop.f32.mrf.mxu3 }
 0x5bd   :  { %v4900_v36 = vpop.eup %4899  ;;  %v3369_v6 = vadd.f32 %v3368_v2, %v3280_v24 }
 0x5be   :  { %3553 = vst.msk [vmem:[%s7515_s7 + $0x3b0] sm:$0xff] %vm3504_vm0, %v4900_v36 }
 0x5bf   :  { %4901 = vtanh.f32 %v3369_v6 }
 0x5c2   :  { %v3282_v59 = vpop.f32.mrf.mxu2 }
 0x5c3   :  { %v3283_v45 = vadd.f32 %v3282_v59, %v7269_v21 }
 0x5c4   :  { %v3371_v27 = vpop.f32.mrf.mxu3 }
 0x5c5   :  { %v4902_v14 = vpop.eup %4901  ;;  %v3372_v55 = vadd.f32 %v3371_v27, %v3283_v45 }
 0x5c6   :  { %3556 = vst.msk [vmem:[%s7515_s7 + $0x3e8] sm:$0xff] %vm3504_vm0, %v4902_v14 }
 0x5c7   :  { %4903 = vtanh.f32 %v3372_v55 }
 0x5ca   :  { %v3284_v13 = vpop.f32.mrf.mxu2 }
 0x5cb   :  { %v3285_v53 = vadd.f32 %v3284_v13, %v7269_v21 }
 0x5cc   :  { %v3373_v54 = vpop.f32.mrf.mxu3 }
 0x5cd   :  { %v4904_v32 = vpop.eup %4903  ;;  %v3374_v1 = vadd.f32 %v3373_v54, %v3285_v53 }
 0x5ce   :  { %3559 = vst.msk [vmem:[%s7515_s7 + $0x420] sm:$0xff] %vm3504_vm0, %v4904_v32 }
 0x5cf   :  { %4905 = vtanh.f32 %v3374_v1 }
 0x5d2   :  { %v3287_v44 = vpop.f32.mrf.mxu2 }
 0x5d3   :  { %v3288_v16 = vadd.f32 %v3287_v44, %v7269_v21 }
 0x5d4   :  { %v3376_v41 = vpop.f32.mrf.mxu3 }
 0x5d5   :  { %v4906_v61 = vpop.eup %4905  ;;  %v3377_v37 = vadd.f32 %v3376_v41, %v3288_v16 }
 0x5d6   :  { %3562 = vst.msk [vmem:[%s7515_s7 + $0x458] sm:$0xff] %vm3504_vm0, %v4906_v61 }
 0x5d7   :  { %4907 = vtanh.f32 %v3377_v37 }
 0x5da   :  { %v3289_v51 = vpop.f32.mrf.mxu2 }
 0x5db   :  { %v3290_v17 = vadd.f32 %v3289_v51, %v7269_v21 }
 0x5dc   :  { %v3378_v43 = vpop.f32.mrf.mxu3 }
 0x5dd   :  { %v4908_v62 = vpop.eup %4907  ;;  %v3379_v8 = vadd.f32 %v3378_v43, %v3290_v17 }
 0x5de   :  { %3565 = vst.msk [vmem:[%s7515_s7 + $0x490] sm:$0xff] %vm3504_vm0, %v4908_v62 }
 0x5df   :  { %4909 = vtanh.f32 %v3379_v8 }
 0x5e2   :  { %v3292_v57 = vpop.f32.mrf.mxu2 }
 0x5e3   :  { %v3293_v58 = vadd.f32 %v3292_v57, %v7269_v21 }
 0x5e4   :  { %v3381_v35 = vpop.f32.mrf.mxu3 }
 0x5e5   :  { %v4910_v5 = vpop.eup %4909  ;;  %v3382_v38 = vadd.f32 %v3381_v35, %v3293_v58 }
 0x5e6   :  { %3568 = vst.msk [vmem:[%s7515_s7 + $0x4c8] sm:$0xff] %vm3504_vm0, %v4910_v5 }
 0x5e7   :  { %4911 = vtanh.f32 %v3382_v38 }
 0x5ea   :  { %v3294_v22 = vpop.f32.mrf.mxu2 }
 0x5eb   :  { %v3295_v40 = vadd.f32 %v3294_v22, %v7269_v21 }
 0x5ec   :  { %v3383_v9 = vpop.f32.mrf.mxu3 }
 0x5ed   :  { %v4912_v4 = vpop.eup %4911  ;;  %v3384_v50 = vadd.f32 %v3383_v9, %v3295_v40 }
 0x5ee   :  { %3571 = vst.msk [vmem:[%s7515_s7 + $0x500] sm:$0xff] %vm3504_vm0, %v4912_v4 }
 0x5ef   :  { %4913 = vtanh.f32 %v3384_v50 }
 0x5f2   :  { %v3297_v3 = vpop.f32.mrf.mxu2 }
 0x5f3   :  { %v3298_v34 = vadd.f32 %v3297_v3, %v7269_v21 }
 0x5f4   :  { %v3386_v39 = vpop.f32.mrf.mxu3 }
 0x5f5   :  { %v4914_v15 = vpop.eup %4913  ;;  %v3387_v28 = vadd.f32 %v3386_v39, %v3298_v34 }
 0x5f6   :  { %3574 = vst.msk [vmem:[%s7515_s7 + $0x538] sm:$0xff] %vm3504_vm0, %v4914_v15 }
 0x5f7   :  { %4915 = vtanh.f32 %v3387_v28 }
 0x5fa   :  { %v3299_v0 = vpop.f32.mrf.mxu2 }
 0x5fb   :  { %v3300_v26 = vadd.f32 %v3299_v0, %v7269_v21 }
 0x5fc   :  { %v3388_v63 = vpop.f32.mrf.mxu3 }
 0x5fd   :  { %v4916_v42 = vpop.eup %4915  ;;  %v3389_v7 = vadd.f32 %v3388_v63, %v3300_v26 }
 0x5fe   :  { %3577 = vst.msk [vmem:[%s7515_s7 + $0x570] sm:$0xff] %vm3504_vm0, %v4916_v42 }
 0x5ff   :  { %4917 = vtanh.f32 %v3389_v7 }
 0x602   :  { %v3302_v11 = vpop.f32.mrf.mxu2 }
 0x603   :  { %v3303_v48 = vadd.f32 %v3302_v11, %v7269_v21 }
 0x604   :  { %v3391_v52 = vpop.f32.mrf.mxu3 }
 0x605   :  { %v4918_v60 = vpop.eup %4917  ;;  %v3392_v30 = vadd.f32 %v3391_v52, %v3303_v48 }
 0x606   :  { %3580 = vst.msk [vmem:[%s7515_s7 + $0x5a8] sm:$0xff] %vm3504_vm0, %v4918_v60 }
 0x607   :  { %4919 = vtanh.f32 %v3392_v30 }
 0x60a   :  { %v3304_v49 = vpop.f32.mrf.mxu2 }
 0x60b   :  { %v3305_v18 = vadd.f32 %v3304_v49, %v7269_v21 }
 0x60c   :  { %v3393_v56 = vpop.f32.mrf.mxu3 }
 0x60d   :  { %v4920_v20 = vpop.eup %4919  ;;  %v3394_v10 = vadd.f32 %v3393_v56, %v3305_v18 }
 0x60e   :  { %3583 = vst.msk [vmem:[%s7515_s7 + $0x5e0] sm:$0xff] %vm3504_vm0, %v4920_v20 }
 0x60f   :  { %4921 = vtanh.f32 %v3394_v10 }
 0x612   :  { %v3307_v47 = vpop.f32.mrf.mxu2 }
 0x613   :  { %v3308_v19 = vadd.f32 %v3307_v47, %v7269_v21 }
 0x614   :  { %v3396_v12 = vpop.f32.mrf.mxu3 }
 0x615   :  { %v4922_v29 = vpop.eup %4921  ;;  %v3397_v33 = vadd.f32 %v3396_v12, %v3308_v19 }
 0x616   :  { %3586 = vst.msk [vmem:[%s7515_s7 + $0x618] sm:$0xff] %vm3504_vm0, %v4922_v29 }
 0x617   :  { %4923 = vtanh.f32 %v3397_v33 }
 0x61a   :  { %v3309_v25 = vpop.f32.mrf.mxu2 }
 0x61b   :  { %v3310_v46 = vadd.f32 %v3309_v25, %v7269_v21 }
 0x61c   :  { %v3398_v31 = vpop.f32.mrf.mxu3 }
 0x61d   :  { %v4924_v23 = vpop.eup %4923  ;;  %v3399_v24 = vadd.f32 %v3398_v31, %v3310_v46 }
 0x61e   :  { %3589 = vst.msk [vmem:[%s7515_s7 + $0x650] sm:$0xff] %vm3504_vm0, %v4924_v23 }
 0x61f   :  { %4925 = vtanh.f32 %v3399_v24 }
 0x622   :  { %v3312_v2 = vpop.f32.mrf.mxu2 }
 0x623   :  { %v3313_v36 = vadd.f32 %v3312_v2, %v7269_v21 }
 0x624   :  { %v3401_v6 = vpop.f32.mrf.mxu3 }
 0x625   :  { %v4926_v59 = vpop.eup %4925  ;;  %v3402_v45 = vadd.f32 %v3401_v6, %v3313_v36 }
 0x626   :  { %3592 = vst.msk [vmem:[%s7515_s7 + $0x688] sm:$0xff] %vm3504_vm0, %v4926_v59 }
 0x627   :  { %4927 = vtanh.f32 %v3402_v45 }
 0x62a   :  { %v3314_v27 = vpop.f32.mrf.mxu2 }
 0x62b   :  { %v3315_v14 = vadd.f32 %v3314_v27, %v7269_v21 }
 0x62c   :  { %v3403_v55 = vpop.f32.mrf.mxu3 }
 0x62d   :  { %v4928_v13 = vpop.eup %4927  ;;  %v3404_v53 = vadd.f32 %v3403_v55, %v3315_v14 }
 0x62e   :  { %3595 = vst.msk [vmem:[%s7515_s7 + $0x6c0] sm:$0xff] %vm3504_vm0, %v4928_v13 }
 0x62f   :  { %4929 = vtanh.f32 %v3404_v53 }
 0x635   :  { %v4930_v54 = vpop.eup %4929 }
 0x636   :  { %3598 = vst.msk [vmem:[%s7515_s7 + $0x6f8] sm:$0xff] %vm3504_vm0, %v4930_v54 }

</bundles_post_ra>
